<compile_context>
chip_gen: v7x
topology: tpu7x:2x2x1
jax: 0.10.0
libtpu: 0.0.40
codegen_flags: <defaults>
</compile_context>

<pallas_src>
import numpy as np
import jax
import jax.numpy as jnp
from jax.experimental import pallas as pl
from jax.experimental.pallas import tpu as pltpu

# ---------------- config (small shapes consistent with the module) ----------
ORIG_ATOM_FEA_LEN = 8
NBR_FEA_LEN = 16          # B
ATOM_FEA_LEN = 32         # A
H_FEA_LEN = 64            # H
N_CONV = 3
N_H = 1                   # -> no extra fcs / fcs_crys
MODEL_NUM_INPUT = 1
BN_EPS = 1e-5

N_ATOMS = 16              # N
M_NBRS = 8                # M
N_CRYSTALS = 2            # N0

CONST_ROWS = 8            # per-conv-layer constant rows, padded to a sublane tile
W_ROWS = 2 * ATOM_FEA_LEN + NBR_FEA_LEN   # fc_full input rows per layer (= 80)


# ------------------------------- fused kernel --------------------------------
def cgcnn_fused_kernel(atom0_ref, gbond_ref, gavg_ref, bond_ref, ssum_ref,
                       filt_ref, pool_ref,
                       emb_ref, wconv_ref, cconst_ref,
                       wcfc_ref, hconst_ref, wcrys_ref, wocrys_ref, crysc_ref,
                       out_ref, outcrys_ref):
    A = ATOM_FEA_LEN

    # ---- embedding -----------------------------------------------------------
    emb = emb_ref[...]                                   # (orig+1, A): rows[:orig]=W, row[-1]=b
    atom = (jnp.dot(atom0_ref[...], emb[:ORIG_ATOM_FEA_LEN, :],
                    preferred_element_type=jnp.float32)
            + emb[ORIG_ATOM_FEA_LEN:ORIG_ATOM_FEA_LEN + 1, :])          # (N, A)

    gbond = gbond_ref[...]                               # (N*M, 2N+B) = [g_self | g_nbr | bond]
    s_sum = ssum_ref[...]                                # (N, N*M) neighbor-sum matrix
    filt = filt_ref[...]                                 # (N*M, 1)
    mask = filt > 0.5

    # ---- conv layers (unrolled, everything stays 2D / lane-dense) ------------
    for l in range(N_CONV):
        base = l * W_ROWS
        Wself = wconv_ref[base:base + A, :]              # (A, 2A)
        Wnbr = wconv_ref[base + A:base + 2 * A, :]       # (A, 2A)
        Wbond = wconv_ref[base + 2 * A:base + W_ROWS, :] # (B, 2A)
        cc = cconst_ref[l * CONST_ROWS:(l + 1) * CONST_ROWS, :]
        b_full = cc[0:1, :]                              # (1, 2A) fc_full bias
        s1 = cc[1:2, :]                                  # folded bn1 scale
        c1 = cc[2:3, :]                                  # b_full*s1 + folded bn1 shift
        s2 = cc[3:4, :A]                                 # folded bn2 scale
        sh2 = cc[3:4, A:]                                # folded bn2 shift

        # fc_full on cat([self, nbr, bond]) fused into ONE big MXU matmul:
        # [g_self | g_nbr | bond] @ [atom@Wself ; atom@Wnbr ; Wbond]
        p_self = jnp.dot(atom, Wself, preferred_element_type=jnp.float32)   # (N, 2A)
        p_nbr = jnp.dot(atom, Wnbr, preferred_element_type=jnp.float32)     # (N, 2A)
        rhs = jnp.concatenate([p_self, p_nbr, Wbond], axis=0)               # (2N+B, 2A)
        raw = jnp.dot(gbond, rhs, preferred_element_type=jnp.float32)       # (N*M, 2A)

        # inference-mode BN only where padding filter is set (bias folded in)
        gated = jnp.where(mask, raw * s1 + c1, raw + b_full)
        nbr_filter = jax.nn.sigmoid(gated[:, :A])
        nbr_core = jax.nn.softplus(gated[:, A:])
        prod = nbr_filter * nbr_core * filt                                  # (N*M, A)
        summed = jnp.dot(s_sum, prod, preferred_element_type=jnp.float32)    # (N, A)
        atom = jax.nn.softplus(atom + summed * s2 + sh2)

    # ---- per-neighbor head ----------------------------------------------------
    Wc = wcfc_ref[...]                                   # (A+B, H)
    hc = hconst_ref[...]                                 # (3, H): [b1; fc_out_w.T; fc_out_b]
    bond = bond_ref[...]                                 # (N*M, B)
    # 0.5*(self-gather + nbr-gather) folded into one host-built matrix g_avg
    avg = jnp.dot(gavg_ref[...], atom, preferred_element_type=jnp.float32)   # (N*M, A)
    h = (jnp.dot(jax.nn.softplus(avg), Wc[:A, :], preferred_element_type=jnp.float32)
         + jnp.dot(jax.nn.softplus(bond), Wc[A:, :], preferred_element_type=jnp.float32)
         + hc[0:1, :])
    h = jax.nn.softplus(h)
    # fc_out has a single output column -> VPU multiply + lane reduce, no 1-lane matmul
    out_row = jnp.sum(h * hc[1:2, :], axis=-1, keepdims=True) + hc[2:3, 0:1]
    out_ref[...] = out_row * filt                        # (N*M, 1)

    # ---- crystal head ---------------------------------------------------------
    crysc = crysc_ref[...]                               # (2, H): [b_crys; fc_out_crys_b padded]
    crys = jnp.dot(pool_ref[...], atom, preferred_element_type=jnp.float32)   # (N0, A)
    hcr = jax.nn.softplus(
        jnp.dot(jax.nn.softplus(crys), wcrys_ref[...],
                preferred_element_type=jnp.float32) + crysc[0:1, :])
    outcrys_ref[...] = (jnp.dot(hcr, wocrys_ref[...],
                                preferred_element_type=jnp.float32)
                        + crysc[1:2, :2])


# --------------------------- pallas_call glue ---------------------------------
def _full_spec(shape):
    nd = len(shape)
    return pl.BlockSpec(shape, lambda *_args, _nd=nd: (0,) * _nd)


def _fold_bn(gamma, beta, mean, var):
    scale = gamma / jnp.sqrt(var + BN_EPS)
    shift = beta - mean * scale
    return scale, shift


def pack_params(params):
    A, B, H = ATOM_FEA_LEN, NBR_FEA_LEN, H_FEA_LEN
    emb = jnp.concatenate([params['emb_w'], params['emb_b'][None, :]], axis=0)
    wconv, cconst = [], []
    for layer in params['convs']:
        W, b = layer['w_full'], layer['b_full']          # rows already [self; nbr; bond]
        s1, sh1 = _fold_bn(layer['bn1_gamma'], layer['bn1_beta'],
                           layer['bn1_mean'], layer['bn1_var'])
        s2, sh2 = _fold_bn(layer['bn2_gamma'], layer['bn2_beta'],
                           layer['bn2_mean'], layer['bn2_var'])
        wconv.append(W)
        block = jnp.zeros((CONST_ROWS, 2 * A), jnp.float32)
        block = block.at[0].set(b)
        block = block.at[1].set(s1)
        block = block.at[2].set(b * s1 + sh1)
        block = block.at[3].set(jnp.concatenate([s2, sh2]))
        cconst.append(block)
    head_consts = jnp.stack([
        params['conv_to_fc_b'],
        params['fc_out_w'][:, 0],
        jnp.broadcast_to(params['fc_out_b'][0], (H,)),
    ], axis=0)
    crys_consts = jnp.stack([
        params['conv_to_fc_crys_b'],
        jnp.zeros((H,), jnp.float32).at[:2].set(params['fc_out_crys_b']),
    ], axis=0)
    return dict(
        emb=emb,
        wconv=jnp.concatenate(wconv, axis=0),            # (N_CONV*(2A+B), 2A)
        cconst=jnp.concatenate(cconst, axis=0),          # (N_CONV*CONST_ROWS, 2A)
        wcfc=params['conv_to_fc_w'],
        hconst=head_consts,
        wcrys=params['conv_to_fc_crys_w'],
        wocrys=params['fc_out_crys_w'],
        crysc=crys_consts,
    )


# ------------------------------- parameters -----------------------------------
def init_params(key):
    keys = iter(jax.random.split(key, 64))

    def w(shape, scale=0.1):
        return jax.random.normal(next(keys), shape, jnp.float32) * scale

    A, B = ATOM_FEA_LEN, NBR_FEA_LEN
    p = {
        'emb_w': w((ORIG_ATOM_FEA_LEN, A)), 'emb_b': w((A,)),
        'conv_to_fc_w': w((A + B, H_FEA_LEN)), 'conv_to_fc_b': w((H_FEA_LEN,)),
        'conv_to_fc_crys_w': w((A, H_FEA_LEN)), 'conv_to_fc_crys_b': w((H_FEA_LEN,)),
        'fc_out_w': w((H_FEA_LEN, MODEL_NUM_INPUT)), 'fc_out_b': w((MODEL_NUM_INPUT,)),
        'fc_out_crys_w': w((H_FEA_LEN, 2)), 'fc_out_crys_b': w((2,)),
        'convs': [],
    }
    for _ in range(N_CONV):
        p['convs'].append(dict(
            w_full=w((2 * A + B, 2 * A)),
            b_full=w((2 * A,)),
            bn1_gamma=1.0 + w((2 * A,)), bn1_beta=w((2 * A,)),
            bn1_mean=w((2 * A,), 0.05), bn1_var=1.0 + jnp.abs(w((2 * A,))),
            bn2_gamma=1.0 + w((A,)), bn2_beta=w((A,)),
            bn2_mean=w((A,), 0.05), bn2_var=1.0 + jnp.abs(w((A,))),
        ))
    return p


# ------------------------------ forward (Pallas) -------------------------------
def crystal_graph_conv_net_forward(params, atom_fea, nbr_fea, nbr_fea_idx,
                                   padding_filter, crystal_atom_idx, site_idx):
    assert MODEL_NUM_INPUT == 1  # fc_out lane-reduce path assumes 1 output column
    N, M = nbr_fea_idx.shape
    B = nbr_fea.shape[-1]
    packed = pack_params(params)

    # Structural glue built once on the host: one-hot gather / sum / pooling
    # matrices (consumed as MXU matmuls inside the fused kernel).
    row_atom = jnp.repeat(jnp.arange(N, dtype=jnp.int32), M)
    g_self = jax.nn.one_hot(row_atom, N, dtype=jnp.float32)           # (N*M, N)
    g_nbr = jax.nn.one_hot(nbr_fea_idx.reshape(-1), N, dtype=jnp.float32)
    s_sum = g_self.T                                                   # (N, N*M)
    bond_flat = nbr_fea.reshape(N * M, B)
    gbond = jnp.concatenate([g_self, g_nbr, bond_flat], axis=1)       # (N*M, 2N+B)
    g_avg = 0.5 * (g_self + g_nbr)                                     # (N*M, N)
    filt_flat = padding_filter.reshape(N * M, 1)
    pool_idx = jnp.stack([m[i] for m, i in zip(crystal_atom_idx, site_idx)])
    pool_onehot = jax.nn.one_hot(pool_idx, N, dtype=jnp.float32)       # (N0, N)
    n0 = pool_onehot.shape[0]

    inputs = [atom_fea, gbond, g_avg, bond_flat, s_sum, filt_flat, pool_onehot,
              packed['emb'], packed['wconv'], packed['cconst'],
              packed['wcfc'], packed['hconst'],
              packed['wcrys'], packed['wocrys'], packed['crysc']]

    out_shapes = (jax.ShapeDtypeStruct((N * M, 1), jnp.float32),
                  jax.ShapeDtypeStruct((n0, 2), jnp.float32))

    out_flat, out_crys = pl.pallas_call(
        cgcnn_fused_kernel,
        grid=(1,),
        in_specs=[_full_spec(x.shape) for x in inputs],
        out_specs=(_full_spec(out_shapes[0].shape), _full_spec(out_shapes[1].shape)),
        out_shape=out_shapes,
        compiler_params=pltpu.CompilerParams(dimension_semantics=("arbitrary",)),
    )(*inputs)
    return out_flat.reshape(N, M, MODEL_NUM_INPUT), out_crys


# ------------------------------ pure-JAX reference -----------------------------
def ref_forward(params, atom_fea, nbr_fea, nbr_fea_idx, filt,
                crystal_atom_idx, site_idx):
    A = ATOM_FEA_LEN
    atom = atom_fea @ params['emb_w'] + params['emb_b']
    N, M = nbr_fea_idx.shape
    for layer in params['convs']:
        atom_nbr = atom[nbr_fea_idx]
        total = jnp.concatenate(
            [jnp.broadcast_to(atom[:, None, :], (N, M, A)), atom_nbr, nbr_fea], axis=2)
        gated = total @ layer['w_full'] + layer['b_full']
        s1, sh1 = _fold_bn(layer['bn1_gamma'], layer['bn1_beta'],
                           layer['bn1_mean'], layer['bn1_var'])
        gated = jnp.where(filt[:, :, None] == 1.0, gated * s1 + sh1, gated)
        nf = jax.nn.sigmoid(gated[..., :A])
        nc = jax.nn.softplus(gated[..., A:])
        summed = jnp.sum(nf * nc * filt[:, :, None], axis=1)
        s2, sh2 = _fold_bn(layer['bn2_gamma'], layer['bn2_beta'],
                           layer['bn2_mean'], layer['bn2_var'])
        atom = jax.nn.softplus(atom + summed * s2 + sh2)
    atom_nbr = atom[nbr_fea_idx]
    avg = (jnp.broadcast_to(atom[:, None, :], (N, M, A)) + atom_nbr) / 2.0
    total = jnp.concatenate([avg, nbr_fea], axis=2)
    t = jax.nn.softplus(jax.nn.softplus(total) @ params['conv_to_fc_w']
                        + params['conv_to_fc_b'])
    out = (t @ params['fc_out_w'] + params['fc_out_b']) * filt[:, :, None]
    pool_idx = jnp.stack([m[i] for m, i in zip(crystal_atom_idx, site_idx)])
    crys = atom[pool_idx]
    c = jax.nn.softplus(jax.nn.softplus(crys) @ params['conv_to_fc_crys_w']
                        + params['conv_to_fc_crys_b'])
    out_crys = c @ params['fc_out_crys_w'] + params['fc_out_crys_b']
    return out, out_crys


# ------------------------------------ main -------------------------------------
if __name__ == "__main__":
    key = jax.random.PRNGKey(0)
    kp, k1, k2, k3, k4 = jax.random.split(key, 5)
    params = init_params(kp)

    atom_fea = jax.random.normal(k1, (N_ATOMS, ORIG_ATOM_FEA_LEN), jnp.float32)
    nbr_fea = jax.random.normal(k2, (N_ATOMS, M_NBRS, NBR_FEA_LEN), jnp.float32)
    nbr_fea_idx = jax.random.randint(k3, (N_ATOMS, M_NBRS), 0, N_ATOMS)
    padding_filter = jax.random.bernoulli(k4, 0.8, (N_ATOMS, M_NBRS)).astype(jnp.float32)
    crystal_atom_idx = [jnp.arange(0, 8), jnp.arange(8, 16)]
    site_idx = [2, 5]

    out, out_crys = crystal_graph_conv_net_forward(
        params, atom_fea, nbr_fea, nbr_fea_idx, padding_filter,
        crystal_atom_idx, site_idx)
    out = jax.block_until_ready(out)
    out_crys = jax.block_until_ready(out_crys)

    ref_out, ref_out_crys = ref_forward(
        params, atom_fea, nbr_fea, nbr_fea_idx, padding_filter,
        crystal_atom_idx, site_idx)

    assert out.shape == (N_ATOMS, M_NBRS, MODEL_NUM_INPUT)
    assert out_crys.shape == (N_CRYSTALS, 2)
    np.testing.assert_allclose(np.asarray(out), np.asarray(ref_out),
                               rtol=5e-4, atol=5e-4)
    np.testing.assert_allclose(np.asarray(out_crys), np.asarray(ref_out_crys),
                               rtol=5e-4, atol=5e-4)
    print("KERNEL_OK")
</pallas_src>

<mosaic_0001>
module attributes {stable_mosaic.version = 11 : i64} {
  func.func @cgcnn_fused_kernel(%arg0: i32, %arg1: memref<16x8xf32, #tpu.memory_space<vmem>>, %arg2: memref<128x48xf32, #tpu.memory_space<vmem>>, %arg3: memref<128x16xf32, #tpu.memory_space<vmem>>, %arg4: memref<128x16xf32, #tpu.memory_space<vmem>>, %arg5: memref<16x128xf32, #tpu.memory_space<vmem>>, %arg6: memref<128x1xf32, #tpu.memory_space<vmem>>, %arg7: memref<2x16xf32, #tpu.memory_space<vmem>>, %arg8: memref<9x32xf32, #tpu.memory_space<vmem>>, %arg9: memref<240x64xf32, #tpu.memory_space<vmem>>, %arg10: memref<24x64xf32, #tpu.memory_space<vmem>>, %arg11: memref<48x64xf32, #tpu.memory_space<vmem>>, %arg12: memref<3x64xf32, #tpu.memory_space<vmem>>, %arg13: memref<32x64xf32, #tpu.memory_space<vmem>>, %arg14: memref<64x2xf32, #tpu.memory_space<vmem>>, %arg15: memref<2x64xf32, #tpu.memory_space<vmem>>, %arg16: memref<128x1xf32, #tpu.memory_space<vmem>>, %arg17: memref<2x2xf32, #tpu.memory_space<vmem>>) attributes {dimension_semantics = [#tpu.dimension_semantics<arbitrary>], iteration_bounds = array<i64: 1>, scalar_prefetch = 0 : i64, scratch_operands = 0 : i64, tpu.core_type = #tpu.core_type<tc>, window_params = [{pipeline_mode = #tpu.pipeline_mode<synchronous>, transform_indices = @transform_0, window_bounds = array<i64: 16, 8>}, {pipeline_mode = #tpu.pipeline_mode<synchronous>, transform_indices = @transform_1, window_bounds = array<i64: 128, 48>}, {pipeline_mode = #tpu.pipeline_mode<synchronous>, transform_indices = @transform_2, window_bounds = array<i64: 128, 16>}, {pipeline_mode = #tpu.pipeline_mode<synchronous>, transform_indices = @transform_3, window_bounds = array<i64: 128, 16>}, {pipeline_mode = #tpu.pipeline_mode<synchronous>, transform_indices = @transform_4, window_bounds = array<i64: 16, 128>}, {pipeline_mode = #tpu.pipeline_mode<synchronous>, transform_indices = @transform_5, window_bounds = array<i64: 128, 1>}, {pipeline_mode = #tpu.pipeline_mode<synchronous>, transform_indices = @transform_6, window_bounds = array<i64: 2, 16>}, {pipeline_mode = #tpu.pipeline_mode<synchronous>, transform_indices = @transform_7, window_bounds = array<i64: 9, 32>}, {pipeline_mode = #tpu.pipeline_mode<synchronous>, transform_indices = @transform_8, window_bounds = array<i64: 240, 64>}, {pipeline_mode = #tpu.pipeline_mode<synchronous>, transform_indices = @transform_9, window_bounds = array<i64: 24, 64>}, {pipeline_mode = #tpu.pipeline_mode<synchronous>, transform_indices = @transform_10, window_bounds = array<i64: 48, 64>}, {pipeline_mode = #tpu.pipeline_mode<synchronous>, transform_indices = @transform_11, window_bounds = array<i64: 3, 64>}, {pipeline_mode = #tpu.pipeline_mode<synchronous>, transform_indices = @transform_12, window_bounds = array<i64: 32, 64>}, {pipeline_mode = #tpu.pipeline_mode<synchronous>, transform_indices = @transform_13, window_bounds = array<i64: 64, 2>}, {pipeline_mode = #tpu.pipeline_mode<synchronous>, transform_indices = @transform_14, window_bounds = array<i64: 2, 64>}, {pipeline_mode = #tpu.pipeline_mode<synchronous>, transform_indices = @transform_15, window_bounds = array<i64: 128, 1>}, {pipeline_mode = #tpu.pipeline_mode<synchronous>, transform_indices = @transform_16, window_bounds = array<i64: 2, 2>}]} {
    %c0 = arith.constant 0 : index
    %c0_0 = arith.constant 0 : index
    %0 = vector.load %arg8[%c0, %c0_0] : memref<9x32xf32, #tpu.memory_space<vmem>>, vector<9x32xf32>
    %c0_1 = arith.constant 0 : index
    %c0_2 = arith.constant 0 : index
    %1 = vector.load %arg1[%c0_1, %c0_2] : memref<16x8xf32, #tpu.memory_space<vmem>>, vector<16x8xf32>
    %2 = vector.extract_strided_slice %0 {offsets = [0, 0], sizes = [8, 32], strides = [1, 1]} : vector<9x32xf32> to vector<8x32xf32>
    %cst = arith.constant dense<0.000000e+00> : vector<16x32xf32>
    %3 = tpu.matmul %1, %2, %cst {dimension_numbers = #tpu.dot_dimension_numbers<[1], [0], [0], [1], [0, 0, 1, 1], [], []>} : vector<16x8xf32>, vector<8x32xf32>, vector<16x32xf32> -> vector<16x32xf32>
    %4 = vector.extract_strided_slice %0 {offsets = [8, 0], sizes = [1, 32], strides = [1, 1]} : vector<9x32xf32> to vector<1x32xf32>
    %5 = vector.broadcast %4 : vector<1x32xf32> to vector<16x32xf32>
    %6 = arith.addf %3, %5 : vector<16x32xf32>
    %c0_3 = arith.constant 0 : index
    %c0_4 = arith.constant 0 : index
    %7 = vector.load %arg2[%c0_3, %c0_4] : memref<128x48xf32, #tpu.memory_space<vmem>>, vector<128x48xf32>
    %c0_5 = arith.constant 0 : index
    %c0_6 = arith.constant 0 : index
    %8 = vector.load %arg5[%c0_5, %c0_6] : memref<16x128xf32, #tpu.memory_space<vmem>>, vector<16x128xf32>
    %c0_7 = arith.constant 0 : index
    %c0_8 = arith.constant 0 : index
    %9 = vector.load %arg6[%c0_7, %c0_8] : memref<128x1xf32, #tpu.memory_space<vmem>>, vector<128x1xf32>
    %cst_9 = arith.constant 5.000000e-01 : f32
    %10 = vector.broadcast %cst_9 : f32 to vector<128x1xf32>
    %11 = arith.cmpf ogt, %9, %10 : vector<128x1xf32>
    %c0_10 = arith.constant 0 : index
    %c0_11 = arith.constant 0 : index
    %12 = vector.load %arg9[%c0_10, %c0_11] : memref<240x64xf32, #tpu.memory_space<vmem>>, vector<32x64xf32>
    %c32 = arith.constant 32 : index
    %c0_12 = arith.constant 0 : index
    %13 = vector.load %arg9[%c32, %c0_12] : memref<240x64xf32, #tpu.memory_space<vmem>>, vector<32x64xf32>
    %c64 = arith.constant 64 : index
    %c0_13 = arith.constant 0 : index
    %14 = vector.load %arg9[%c64, %c0_13] : memref<240x64xf32, #tpu.memory_space<vmem>>, vector<16x64xf32>
    %c0_14 = arith.constant 0 : index
    %c0_15 = arith.constant 0 : index
    %15 = vector.load %arg10[%c0_14, %c0_15] : memref<24x64xf32, #tpu.memory_space<vmem>>, vector<8x64xf32>
    %16 = vector.extract_strided_slice %15 {offsets = [0, 0], sizes = [1, 64], strides = [1, 1]} : vector<8x64xf32> to vector<1x64xf32>
    %17 = vector.extract_strided_slice %15 {offsets = [1, 0], sizes = [1, 64], strides = [1, 1]} : vector<8x64xf32> to vector<1x64xf32>
    %18 = vector.extract_strided_slice %15 {offsets = [2, 0], sizes = [1, 64], strides = [1, 1]} : vector<8x64xf32> to vector<1x64xf32>
    %19 = vector.extract_strided_slice %15 {offsets = [3, 0], sizes = [1, 32], strides = [1, 1]} : vector<8x64xf32> to vector<1x32xf32>
    %20 = vector.extract_strided_slice %15 {offsets = [3, 32], sizes = [1, 32], strides = [1, 1]} : vector<8x64xf32> to vector<1x32xf32>
    %cst_16 = arith.constant dense<0.000000e+00> : vector<16x64xf32>
    %21 = tpu.matmul %6, %12, %cst_16 {dimension_numbers = #tpu.dot_dimension_numbers<[1], [0], [0], [1], [0, 0, 1, 1], [], []>} : vector<16x32xf32>, vector<32x64xf32>, vector<16x64xf32> -> vector<16x64xf32>
    %cst_17 = arith.constant dense<0.000000e+00> : vector<16x64xf32>
    %22 = tpu.matmul %6, %13, %cst_17 {dimension_numbers = #tpu.dot_dimension_numbers<[1], [0], [0], [1], [0, 0, 1, 1], [], []>} : vector<16x32xf32>, vector<32x64xf32>, vector<16x64xf32> -> vector<16x64xf32>
    %23 = tpu.concatenate %21, %22, %14 in 0 : vector<16x64xf32>, vector<16x64xf32>, vector<16x64xf32> -> vector<48x64xf32>
    %cst_18 = arith.constant dense<0.000000e+00> : vector<128x64xf32>
    %24 = tpu.matmul %7, %23, %cst_18 {dimension_numbers = #tpu.dot_dimension_numbers<[1], [0], [0], [1], [0, 0, 1, 1], [], []>} : vector<128x48xf32>, vector<48x64xf32>, vector<128x64xf32> -> vector<128x64xf32>
    %25 = vector.broadcast %17 : vector<1x64xf32> to vector<128x64xf32>
    %26 = arith.mulf %24, %25 : vector<128x64xf32>
    %27 = vector.broadcast %18 : vector<1x64xf32> to vector<128x64xf32>
    %28 = arith.addf %26, %27 : vector<128x64xf32>
    %29 = vector.broadcast %16 : vector<1x64xf32> to vector<128x64xf32>
    %30 = arith.addf %24, %29 : vector<128x64xf32>
    %31 = vector.shape_cast %11 : vector<128x1xi1> to vector<128x1xi1>
    %32 = vector.broadcast %31 : vector<128x1xi1> to vector<128x64xi1>
    %33 = arith.select %32, %28, %30 : vector<128x64xi1>, vector<128x64xf32>
    %34 = vector.extract_strided_slice %33 {offsets = [0, 0], sizes = [128, 32], strides = [1, 1]} : vector<128x64xf32> to vector<128x32xf32>
    %35 = arith.negf %34 : vector<128x32xf32>
    %36 = math.exp %35 : vector<128x32xf32>
    %cst_19 = arith.constant 1.000000e+00 : f32
    %37 = vector.broadcast %cst_19 : f32 to vector<128x32xf32>
    %38 = arith.addf %37, %36 : vector<128x32xf32>
    %39 = arith.divf %37, %38 : vector<128x32xf32>
    %40 = vector.extract_strided_slice %33 {offsets = [0, 32], sizes = [128, 32], strides = [1, 1]} : vector<128x64xf32> to vector<128x32xf32>
    %cst_20 = arith.constant 0.000000e+00 : f32
    %41 = vector.broadcast %cst_20 : f32 to vector<128x32xf32>
    %42 = arith.maximumf %40, %41 : vector<128x32xf32>
    %43 = vector.broadcast %cst_20 : f32 to vector<128x32xf32>
    %44 = arith.subf %40, %43 : vector<128x32xf32>
    %45 = arith.cmpf one, %44, %44 : vector<128x32xf32>
    %46 = vector.broadcast %cst_20 : f32 to vector<128x32xf32>
    %47 = arith.addf %40, %46 : vector<128x32xf32>
    %48 = math.absf %44 : vector<128x32xf32>
    %cst_21 = arith.constant 0.000000e+00 : f32
    %49 = vector.broadcast %cst_21 : f32 to vector<128x32xf32>
    %50 = arith.subf %49, %48 : vector<128x32xf32>
    %51 = math.exp %50 : vector<128x32xf32>
    %52 = math.log1p %51 : vector<128x32xf32>
    %53 = arith.addf %42, %52 : vector<128x32xf32>
    %54 = arith.select %45, %47, %53 : vector<128x32xi1>, vector<128x32xf32>
    %55 = arith.mulf %39, %54 : vector<128x32xf32>
    %56 = vector.broadcast %9 : vector<128x1xf32> to vector<128x32xf32>
    %57 = arith.mulf %55, %56 : vector<128x32xf32>
    %cst_22 = arith.constant dense<0.000000e+00> : vector<16x32xf32>
    %58 = tpu.matmul %8, %57, %cst_22 {dimension_numbers = #tpu.dot_dimension_numbers<[1], [0], [0], [1], [0, 0, 1, 1], [], []>} : vector<16x128xf32>, vector<128x32xf32>, vector<16x32xf32> -> vector<16x32xf32>
    %59 = vector.broadcast %19 : vector<1x32xf32> to vector<16x32xf32>
    %60 = arith.mulf %58, %59 : vector<16x32xf32>
    %61 = arith.addf %6, %60 : vector<16x32xf32>
    %62 = vector.broadcast %20 : vector<1x32xf32> to vector<16x32xf32>
    %63 = arith.addf %61, %62 : vector<16x32xf32>
    %cst_23 = arith.constant 0.000000e+00 : f32
    %64 = vector.broadcast %cst_23 : f32 to vector<16x32xf32>
    %65 = arith.maximumf %63, %64 : vector<16x32xf32>
    %66 = vector.broadcast %cst_23 : f32 to vector<16x32xf32>
    %67 = arith.subf %63, %66 : vector<16x32xf32>
    %68 = arith.cmpf one, %67, %67 : vector<16x32xf32>
    %69 = vector.broadcast %cst_23 : f32 to vector<16x32xf32>
    %70 = arith.addf %63, %69 : vector<16x32xf32>
    %71 = math.absf %67 : vector<16x32xf32>
    %cst_24 = arith.constant 0.000000e+00 : f32
    %72 = vector.broadcast %cst_24 : f32 to vector<16x32xf32>
    %73 = arith.subf %72, %71 : vector<16x32xf32>
    %74 = math.exp %73 : vector<16x32xf32>
    %75 = math.log1p %74 : vector<16x32xf32>
    %76 = arith.addf %65, %75 : vector<16x32xf32>
    %77 = arith.select %68, %70, %76 : vector<16x32xi1>, vector<16x32xf32>
    %c80 = arith.constant 80 : index
    %c0_25 = arith.constant 0 : index
    %78 = vector.load %arg9[%c80, %c0_25] : memref<240x64xf32, #tpu.memory_space<vmem>>, vector<32x64xf32>
    %c112 = arith.constant 112 : index
    %c0_26 = arith.constant 0 : index
    %79 = vector.load %arg9[%c112, %c0_26] : memref<240x64xf32, #tpu.memory_space<vmem>>, vector<32x64xf32>
    %c144 = arith.constant 144 : index
    %c0_27 = arith.constant 0 : index
    %80 = vector.load %arg9[%c144, %c0_27] : memref<240x64xf32, #tpu.memory_space<vmem>>, vector<16x64xf32>
    %c8 = arith.constant 8 : index
    %c0_28 = arith.constant 0 : index
    %81 = vector.load %arg10[%c8, %c0_28] : memref<24x64xf32, #tpu.memory_space<vmem>>, vector<8x64xf32>
    %82 = vector.extract_strided_slice %81 {offsets = [0, 0], sizes = [1, 64], strides = [1, 1]} : vector<8x64xf32> to vector<1x64xf32>
    %83 = vector.extract_strided_slice %81 {offsets = [1, 0], sizes = [1, 64], strides = [1, 1]} : vector<8x64xf32> to vector<1x64xf32>
    %84 = vector.extract_strided_slice %81 {offsets = [2, 0], sizes = [1, 64], strides = [1, 1]} : vector<8x64xf32> to vector<1x64xf32>
    %85 = vector.extract_strided_slice %81 {offsets = [3, 0], sizes = [1, 32], strides = [1, 1]} : vector<8x64xf32> to vector<1x32xf32>
    %86 = vector.extract_strided_slice %81 {offsets = [3, 32], sizes = [1, 32], strides = [1, 1]} : vector<8x64xf32> to vector<1x32xf32>
    %cst_29 = arith.constant dense<0.000000e+00> : vector<16x64xf32>
    %87 = tpu.matmul %77, %78, %cst_29 {dimension_numbers = #tpu.dot_dimension_numbers<[1], [0], [0], [1], [0, 0, 1, 1], [], []>} : vector<16x32xf32>, vector<32x64xf32>, vector<16x64xf32> -> vector<16x64xf32>
    %cst_30 = arith.constant dense<0.000000e+00> : vector<16x64xf32>
    %88 = tpu.matmul %77, %79, %cst_30 {dimension_numbers = #tpu.dot_dimension_numbers<[1], [0], [0], [1], [0, 0, 1, 1], [], []>} : vector<16x32xf32>, vector<32x64xf32>, vector<16x64xf32> -> vector<16x64xf32>
    %89 = tpu.concatenate %87, %88, %80 in 0 : vector<16x64xf32>, vector<16x64xf32>, vector<16x64xf32> -> vector<48x64xf32>
    %cst_31 = arith.constant dense<0.000000e+00> : vector<128x64xf32>
    %90 = tpu.matmul %7, %89, %cst_31 {dimension_numbers = #tpu.dot_dimension_numbers<[1], [0], [0], [1], [0, 0, 1, 1], [], []>} : vector<128x48xf32>, vector<48x64xf32>, vector<128x64xf32> -> vector<128x64xf32>
    %91 = vector.broadcast %83 : vector<1x64xf32> to vector<128x64xf32>
    %92 = arith.mulf %90, %91 : vector<128x64xf32>
    %93 = vector.broadcast %84 : vector<1x64xf32> to vector<128x64xf32>
    %94 = arith.addf %92, %93 : vector<128x64xf32>
    %95 = vector.broadcast %82 : vector<1x64xf32> to vector<128x64xf32>
    %96 = arith.addf %90, %95 : vector<128x64xf32>
    %97 = vector.shape_cast %11 : vector<128x1xi1> to vector<128x1xi1>
    %98 = vector.broadcast %97 : vector<128x1xi1> to vector<128x64xi1>
    %99 = arith.select %98, %94, %96 : vector<128x64xi1>, vector<128x64xf32>
    %100 = vector.extract_strided_slice %99 {offsets = [0, 0], sizes = [128, 32], strides = [1, 1]} : vector<128x64xf32> to vector<128x32xf32>
    %101 = arith.negf %100 : vector<128x32xf32>
    %102 = math.exp %101 : vector<128x32xf32>
    %cst_32 = arith.constant 1.000000e+00 : f32
    %103 = vector.broadcast %cst_32 : f32 to vector<128x32xf32>
    %104 = arith.addf %103, %102 : vector<128x32xf32>
    %105 = arith.divf %103, %104 : vector<128x32xf32>
    %106 = vector.extract_strided_slice %99 {offsets = [0, 32], sizes = [128, 32], strides = [1, 1]} : vector<128x64xf32> to vector<128x32xf32>
    %cst_33 = arith.constant 0.000000e+00 : f32
    %107 = vector.broadcast %cst_33 : f32 to vector<128x32xf32>
    %108 = arith.maximumf %106, %107 : vector<128x32xf32>
    %109 = vector.broadcast %cst_33 : f32 to vector<128x32xf32>
    %110 = arith.subf %106, %109 : vector<128x32xf32>
    %111 = arith.cmpf one, %110, %110 : vector<128x32xf32>
    %112 = vector.broadcast %cst_33 : f32 to vector<128x32xf32>
    %113 = arith.addf %106, %112 : vector<128x32xf32>
    %114 = math.absf %110 : vector<128x32xf32>
    %cst_34 = arith.constant 0.000000e+00 : f32
    %115 = vector.broadcast %cst_34 : f32 to vector<128x32xf32>
    %116 = arith.subf %115, %114 : vector<128x32xf32>
    %117 = math.exp %116 : vector<128x32xf32>
    %118 = math.log1p %117 : vector<128x32xf32>
    %119 = arith.addf %108, %118 : vector<128x32xf32>
    %120 = arith.select %111, %113, %119 : vector<128x32xi1>, vector<128x32xf32>
    %121 = arith.mulf %105, %120 : vector<128x32xf32>
    %122 = vector.broadcast %9 : vector<128x1xf32> to vector<128x32xf32>
    %123 = arith.mulf %121, %122 : vector<128x32xf32>
    %cst_35 = arith.constant dense<0.000000e+00> : vector<16x32xf32>
    %124 = tpu.matmul %8, %123, %cst_35 {dimension_numbers = #tpu.dot_dimension_numbers<[1], [0], [0], [1], [0, 0, 1, 1], [], []>} : vector<16x128xf32>, vector<128x32xf32>, vector<16x32xf32> -> vector<16x32xf32>
    %125 = vector.broadcast %85 : vector<1x32xf32> to vector<16x32xf32>
    %126 = arith.mulf %124, %125 : vector<16x32xf32>
    %127 = arith.addf %77, %126 : vector<16x32xf32>
    %128 = vector.broadcast %86 : vector<1x32xf32> to vector<16x32xf32>
    %129 = arith.addf %127, %128 : vector<16x32xf32>
    %cst_36 = arith.constant 0.000000e+00 : f32
    %130 = vector.broadcast %cst_36 : f32 to vector<16x32xf32>
    %131 = arith.maximumf %129, %130 : vector<16x32xf32>
    %132 = vector.broadcast %cst_36 : f32 to vector<16x32xf32>
    %133 = arith.subf %129, %132 : vector<16x32xf32>
    %134 = arith.cmpf one, %133, %133 : vector<16x32xf32>
    %135 = vector.broadcast %cst_36 : f32 to vector<16x32xf32>
    %136 = arith.addf %129, %135 : vector<16x32xf32>
    %137 = math.absf %133 : vector<16x32xf32>
    %cst_37 = arith.constant 0.000000e+00 : f32
    %138 = vector.broadcast %cst_37 : f32 to vector<16x32xf32>
    %139 = arith.subf %138, %137 : vector<16x32xf32>
    %140 = math.exp %139 : vector<16x32xf32>
    %141 = math.log1p %140 : vector<16x32xf32>
    %142 = arith.addf %131, %141 : vector<16x32xf32>
    %143 = arith.select %134, %136, %142 : vector<16x32xi1>, vector<16x32xf32>
    %c160 = arith.constant 160 : index
    %c0_38 = arith.constant 0 : index
    %144 = vector.load %arg9[%c160, %c0_38] : memref<240x64xf32, #tpu.memory_space<vmem>>, vector<32x64xf32>
    %c192 = arith.constant 192 : index
    %c0_39 = arith.constant 0 : index
    %145 = vector.load %arg9[%c192, %c0_39] : memref<240x64xf32, #tpu.memory_space<vmem>>, vector<32x64xf32>
    %c224 = arith.constant 224 : index
    %c0_40 = arith.constant 0 : index
    %146 = vector.load %arg9[%c224, %c0_40] : memref<240x64xf32, #tpu.memory_space<vmem>>, vector<16x64xf32>
    %c16 = arith.constant 16 : index
    %c0_41 = arith.constant 0 : index
    %147 = vector.load %arg10[%c16, %c0_41] : memref<24x64xf32, #tpu.memory_space<vmem>>, vector<8x64xf32>
    %148 = vector.extract_strided_slice %147 {offsets = [0, 0], sizes = [1, 64], strides = [1, 1]} : vector<8x64xf32> to vector<1x64xf32>
    %149 = vector.extract_strided_slice %147 {offsets = [1, 0], sizes = [1, 64], strides = [1, 1]} : vector<8x64xf32> to vector<1x64xf32>
    %150 = vector.extract_strided_slice %147 {offsets = [2, 0], sizes = [1, 64], strides = [1, 1]} : vector<8x64xf32> to vector<1x64xf32>
    %151 = vector.extract_strided_slice %147 {offsets = [3, 0], sizes = [1, 32], strides = [1, 1]} : vector<8x64xf32> to vector<1x32xf32>
    %152 = vector.extract_strided_slice %147 {offsets = [3, 32], sizes = [1, 32], strides = [1, 1]} : vector<8x64xf32> to vector<1x32xf32>
    %cst_42 = arith.constant dense<0.000000e+00> : vector<16x64xf32>
    %153 = tpu.matmul %143, %144, %cst_42 {dimension_numbers = #tpu.dot_dimension_numbers<[1], [0], [0], [1], [0, 0, 1, 1], [], []>} : vector<16x32xf32>, vector<32x64xf32>, vector<16x64xf32> -> vector<16x64xf32>
    %cst_43 = arith.constant dense<0.000000e+00> : vector<16x64xf32>
    %154 = tpu.matmul %143, %145, %cst_43 {dimension_numbers = #tpu.dot_dimension_numbers<[1], [0], [0], [1], [0, 0, 1, 1], [], []>} : vector<16x32xf32>, vector<32x64xf32>, vector<16x64xf32> -> vector<16x64xf32>
    %155 = tpu.concatenate %153, %154, %146 in 0 : vector<16x64xf32>, vector<16x64xf32>, vector<16x64xf32> -> vector<48x64xf32>
    %cst_44 = arith.constant dense<0.000000e+00> : vector<128x64xf32>
    %156 = tpu.matmul %7, %155, %cst_44 {dimension_numbers = #tpu.dot_dimension_numbers<[1], [0], [0], [1], [0, 0, 1, 1], [], []>} : vector<128x48xf32>, vector<48x64xf32>, vector<128x64xf32> -> vector<128x64xf32>
    %157 = vector.broadcast %149 : vector<1x64xf32> to vector<128x64xf32>
    %158 = arith.mulf %156, %157 : vector<128x64xf32>
    %159 = vector.broadcast %150 : vector<1x64xf32> to vector<128x64xf32>
    %160 = arith.addf %158, %159 : vector<128x64xf32>
    %161 = vector.broadcast %148 : vector<1x64xf32> to vector<128x64xf32>
    %162 = arith.addf %156, %161 : vector<128x64xf32>
    %163 = vector.shape_cast %11 : vector<128x1xi1> to vector<128x1xi1>
    %164 = vector.broadcast %163 : vector<128x1xi1> to vector<128x64xi1>
    %165 = arith.select %164, %160, %162 : vector<128x64xi1>, vector<128x64xf32>
    %166 = vector.extract_strided_slice %165 {offsets = [0, 0], sizes = [128, 32], strides = [1, 1]} : vector<128x64xf32> to vector<128x32xf32>
    %167 = arith.negf %166 : vector<128x32xf32>
    %168 = math.exp %167 : vector<128x32xf32>
    %cst_45 = arith.constant 1.000000e+00 : f32
    %169 = vector.broadcast %cst_45 : f32 to vector<128x32xf32>
    %170 = arith.addf %169, %168 : vector<128x32xf32>
    %171 = arith.divf %169, %170 : vector<128x32xf32>
    %172 = vector.extract_strided_slice %165 {offsets = [0, 32], sizes = [128, 32], strides = [1, 1]} : vector<128x64xf32> to vector<128x32xf32>
    %cst_46 = arith.constant 0.000000e+00 : f32
    %173 = vector.broadcast %cst_46 : f32 to vector<128x32xf32>
    %174 = arith.maximumf %172, %173 : vector<128x32xf32>
    %175 = vector.broadcast %cst_46 : f32 to vector<128x32xf32>
    %176 = arith.subf %172, %175 : vector<128x32xf32>
    %177 = arith.cmpf one, %176, %176 : vector<128x32xf32>
    %178 = vector.broadcast %cst_46 : f32 to vector<128x32xf32>
    %179 = arith.addf %172, %178 : vector<128x32xf32>
    %180 = math.absf %176 : vector<128x32xf32>
    %cst_47 = arith.constant 0.000000e+00 : f32
    %181 = vector.broadcast %cst_47 : f32 to vector<128x32xf32>
    %182 = arith.subf %181, %180 : vector<128x32xf32>
    %183 = math.exp %182 : vector<128x32xf32>
    %184 = math.log1p %183 : vector<128x32xf32>
    %185 = arith.addf %174, %184 : vector<128x32xf32>
    %186 = arith.select %177, %179, %185 : vector<128x32xi1>, vector<128x32xf32>
    %187 = arith.mulf %171, %186 : vector<128x32xf32>
    %188 = vector.broadcast %9 : vector<128x1xf32> to vector<128x32xf32>
    %189 = arith.mulf %187, %188 : vector<128x32xf32>
    %cst_48 = arith.constant dense<0.000000e+00> : vector<16x32xf32>
    %190 = tpu.matmul %8, %189, %cst_48 {dimension_numbers = #tpu.dot_dimension_numbers<[1], [0], [0], [1], [0, 0, 1, 1], [], []>} : vector<16x128xf32>, vector<128x32xf32>, vector<16x32xf32> -> vector<16x32xf32>
    %191 = vector.broadcast %151 : vector<1x32xf32> to vector<16x32xf32>
    %192 = arith.mulf %190, %191 : vector<16x32xf32>
    %193 = arith.addf %143, %192 : vector<16x32xf32>
    %194 = vector.broadcast %152 : vector<1x32xf32> to vector<16x32xf32>
    %195 = arith.addf %193, %194 : vector<16x32xf32>
    %cst_49 = arith.constant 0.000000e+00 : f32
    %196 = vector.broadcast %cst_49 : f32 to vector<16x32xf32>
    %197 = arith.maximumf %195, %196 : vector<16x32xf32>
    %198 = vector.broadcast %cst_49 : f32 to vector<16x32xf32>
    %199 = arith.subf %195, %198 : vector<16x32xf32>
    %200 = arith.cmpf one, %199, %199 : vector<16x32xf32>
    %201 = vector.broadcast %cst_49 : f32 to vector<16x32xf32>
    %202 = arith.addf %195, %201 : vector<16x32xf32>
    %203 = math.absf %199 : vector<16x32xf32>
    %cst_50 = arith.constant 0.000000e+00 : f32
    %204 = vector.broadcast %cst_50 : f32 to vector<16x32xf32>
    %205 = arith.subf %204, %203 : vector<16x32xf32>
    %206 = math.exp %205 : vector<16x32xf32>
    %207 = math.log1p %206 : vector<16x32xf32>
    %208 = arith.addf %197, %207 : vector<16x32xf32>
    %209 = arith.select %200, %202, %208 : vector<16x32xi1>, vector<16x32xf32>
    %c0_51 = arith.constant 0 : index
    %c0_52 = arith.constant 0 : index
    %210 = vector.load %arg11[%c0_51, %c0_52] : memref<48x64xf32, #tpu.memory_space<vmem>>, vector<48x64xf32>
    %c0_53 = arith.constant 0 : index
    %c0_54 = arith.constant 0 : index
    %211 = vector.load %arg12[%c0_53, %c0_54] : memref<3x64xf32, #tpu.memory_space<vmem>>, vector<3x64xf32>
    %c0_55 = arith.constant 0 : index
    %c0_56 = arith.constant 0 : index
    %212 = vector.load %arg4[%c0_55, %c0_56] : memref<128x16xf32, #tpu.memory_space<vmem>>, vector<128x16xf32>
    %c0_57 = arith.constant 0 : index
    %c0_58 = arith.constant 0 : index
    %213 = vector.load %arg3[%c0_57, %c0_58] : memref<128x16xf32, #tpu.memory_space<vmem>>, vector<128x16xf32>
    %cst_59 = arith.constant dense<0.000000e+00> : vector<128x32xf32>
    %214 = tpu.matmul %213, %209, %cst_59 {dimension_numbers = #tpu.dot_dimension_numbers<[1], [0], [0], [1], [0, 0, 1, 1], [], []>} : vector<128x16xf32>, vector<16x32xf32>, vector<128x32xf32> -> vector<128x32xf32>
    %cst_60 = arith.constant 0.000000e+00 : f32
    %215 = vector.broadcast %cst_60 : f32 to vector<128x32xf32>
    %216 = arith.maximumf %214, %215 : vector<128x32xf32>
    %217 = vector.broadcast %cst_60 : f32 to vector<128x32xf32>
    %218 = arith.subf %214, %217 : vector<128x32xf32>
    %219 = arith.cmpf one, %218, %218 : vector<128x32xf32>
    %220 = vector.broadcast %cst_60 : f32 to vector<128x32xf32>
    %221 = arith.addf %214, %220 : vector<128x32xf32>
    %222 = math.absf %218 : vector<128x32xf32>
    %cst_61 = arith.constant 0.000000e+00 : f32
    %223 = vector.broadcast %cst_61 : f32 to vector<128x32xf32>
    %224 = arith.subf %223, %222 : vector<128x32xf32>
    %225 = math.exp %224 : vector<128x32xf32>
    %226 = math.log1p %225 : vector<128x32xf32>
    %227 = arith.addf %216, %226 : vector<128x32xf32>
    %228 = arith.select %219, %221, %227 : vector<128x32xi1>, vector<128x32xf32>
    %229 = vector.extract_strided_slice %210 {offsets = [0, 0], sizes = [32, 64], strides = [1, 1]} : vector<48x64xf32> to vector<32x64xf32>
    %cst_62 = arith.constant dense<0.000000e+00> : vector<128x64xf32>
    %230 = tpu.matmul %228, %229, %cst_62 {dimension_numbers = #tpu.dot_dimension_numbers<[1], [0], [0], [1], [0, 0, 1, 1], [], []>} : vector<128x32xf32>, vector<32x64xf32>, vector<128x64xf32> -> vector<128x64xf32>
    %cst_63 = arith.constant 0.000000e+00 : f32
    %231 = vector.broadcast %cst_63 : f32 to vector<128x16xf32>
    %232 = arith.maximumf %212, %231 : vector<128x16xf32>
    %233 = vector.broadcast %cst_63 : f32 to vector<128x16xf32>
    %234 = arith.subf %212, %233 : vector<128x16xf32>
    %235 = arith.cmpf one, %234, %234 : vector<128x16xf32>
    %236 = vector.broadcast %cst_63 : f32 to vector<128x16xf32>
    %237 = arith.addf %212, %236 : vector<128x16xf32>
    %238 = math.absf %234 : vector<128x16xf32>
    %cst_64 = arith.constant 0.000000e+00 : f32
    %239 = vector.broadcast %cst_64 : f32 to vector<128x16xf32>
    %240 = arith.subf %239, %238 : vector<128x16xf32>
    %241 = math.exp %240 : vector<128x16xf32>
    %242 = math.log1p %241 : vector<128x16xf32>
    %243 = arith.addf %232, %242 : vector<128x16xf32>
    %244 = arith.select %235, %237, %243 : vector<128x16xi1>, vector<128x16xf32>
    %245 = vector.extract_strided_slice %210 {offsets = [32, 0], sizes = [16, 64], strides = [1, 1]} : vector<48x64xf32> to vector<16x64xf32>
    %cst_65 = arith.constant dense<0.000000e+00> : vector<128x64xf32>
    %246 = tpu.matmul %244, %245, %cst_65 {dimension_numbers = #tpu.dot_dimension_numbers<[1], [0], [0], [1], [0, 0, 1, 1], [], []>} : vector<128x16xf32>, vector<16x64xf32>, vector<128x64xf32> -> vector<128x64xf32>
    %247 = arith.addf %230, %246 : vector<128x64xf32>
    %248 = vector.extract_strided_slice %211 {offsets = [0, 0], sizes = [1, 64], strides = [1, 1]} : vector<3x64xf32> to vector<1x64xf32>
    %249 = vector.broadcast %248 : vector<1x64xf32> to vector<128x64xf32>
    %250 = arith.addf %247, %249 : vector<128x64xf32>
    %cst_66 = arith.constant 0.000000e+00 : f32
    %251 = vector.broadcast %cst_66 : f32 to vector<128x64xf32>
    %252 = arith.maximumf %250, %251 : vector<128x64xf32>
    %253 = vector.broadcast %cst_66 : f32 to vector<128x64xf32>
    %254 = arith.subf %250, %253 : vector<128x64xf32>
    %255 = arith.cmpf one, %254, %254 : vector<128x64xf32>
    %256 = vector.broadcast %cst_66 : f32 to vector<128x64xf32>
    %257 = arith.addf %250, %256 : vector<128x64xf32>
    %258 = math.absf %254 : vector<128x64xf32>
    %cst_67 = arith.constant 0.000000e+00 : f32
    %259 = vector.broadcast %cst_67 : f32 to vector<128x64xf32>
    %260 = arith.subf %259, %258 : vector<128x64xf32>
    %261 = math.exp %260 : vector<128x64xf32>
    %262 = math.log1p %261 : vector<128x64xf32>
    %263 = arith.addf %252, %262 : vector<128x64xf32>
    %264 = arith.select %255, %257, %263 : vector<128x64xi1>, vector<128x64xf32>
    %265 = vector.extract_strided_slice %211 {offsets = [1, 0], sizes = [1, 64], strides = [1, 1]} : vector<3x64xf32> to vector<1x64xf32>
    %266 = vector.broadcast %265 : vector<1x64xf32> to vector<128x64xf32>
    %267 = arith.mulf %264, %266 : vector<128x64xf32>
    %cst_68 = arith.constant dense<0.000000e+00> : vector<128xf32>
    %268 = vector.multi_reduction <add>, %267, %cst_68 [1] : vector<128x64xf32> to vector<128xf32>
    %269 = vector.shape_cast %268 : vector<128xf32> to vector<128x1xf32>
    %270 = vector.extract_strided_slice %211 {offsets = [2, 0], sizes = [1, 1], strides = [1, 1]} : vector<3x64xf32> to vector<1x1xf32>
    %271 = vector.broadcast %270 : vector<1x1xf32> to vector<128x1xf32>
    %272 = arith.addf %269, %271 : vector<128x1xf32>
    %273 = arith.mulf %272, %9 : vector<128x1xf32>
    %c0_69 = arith.constant 0 : index
    %c0_70 = arith.constant 0 : index
    %274 = vector.load %arg16[%c0_69, %c0_70] : memref<128x1xf32, #tpu.memory_space<vmem>>, vector<128x1xf32>
    tpu.vector_store %arg16[%c0_69, %c0_70], %273 {strides = array<i32>} : memref<128x1xf32, #tpu.memory_space<vmem>>, vector<128x1xf32>,
    %c0_71 = arith.constant 0 : index
    %c0_72 = arith.constant 0 : index
    %275 = vector.load %arg15[%c0_71, %c0_72] : memref<2x64xf32, #tpu.memory_space<vmem>>, vector<2x64xf32>
    %c0_73 = arith.constant 0 : index
    %c0_74 = arith.constant 0 : index
    %276 = vector.load %arg7[%c0_73, %c0_74] : memref<2x16xf32, #tpu.memory_space<vmem>>, vector<2x16xf32>
    %cst_75 = arith.constant dense<0.000000e+00> : vector<2x32xf32>
    %277 = tpu.matmul %276, %209, %cst_75 {dimension_numbers = #tpu.dot_dimension_numbers<[1], [0], [0], [1], [0, 0, 1, 1], [], []>} : vector<2x16xf32>, vector<16x32xf32>, vector<2x32xf32> -> vector<2x32xf32>
    %cst_76 = arith.constant 0.000000e+00 : f32
    %278 = vector.broadcast %cst_76 : f32 to vector<2x32xf32>
    %279 = arith.maximumf %277, %278 : vector<2x32xf32>
    %280 = vector.broadcast %cst_76 : f32 to vector<2x32xf32>
    %281 = arith.subf %277, %280 : vector<2x32xf32>
    %282 = arith.cmpf one, %281, %281 : vector<2x32xf32>
    %283 = vector.broadcast %cst_76 : f32 to vector<2x32xf32>
    %284 = arith.addf %277, %283 : vector<2x32xf32>
    %285 = math.absf %281 : vector<2x32xf32>
    %cst_77 = arith.constant 0.000000e+00 : f32
    %286 = vector.broadcast %cst_77 : f32 to vector<2x32xf32>
    %287 = arith.subf %286, %285 : vector<2x32xf32>
    %288 = math.exp %287 : vector<2x32xf32>
    %289 = math.log1p %288 : vector<2x32xf32>
    %290 = arith.addf %279, %289 : vector<2x32xf32>
    %291 = arith.select %282, %284, %290 : vector<2x32xi1>, vector<2x32xf32>
    %c0_78 = arith.constant 0 : index
    %c0_79 = arith.constant 0 : index
    %292 = vector.load %arg13[%c0_78, %c0_79] : memref<32x64xf32, #tpu.memory_space<vmem>>, vector<32x64xf32>
    %cst_80 = arith.constant dense<0.000000e+00> : vector<2x64xf32>
    %293 = tpu.matmul %291, %292, %cst_80 {dimension_numbers = #tpu.dot_dimension_numbers<[1], [0], [0], [1], [0, 0, 1, 1], [], []>} : vector<2x32xf32>, vector<32x64xf32>, vector<2x64xf32> -> vector<2x64xf32>
    %294 = vector.extract_strided_slice %275 {offsets = [0, 0], sizes = [1, 64], strides = [1, 1]} : vector<2x64xf32> to vector<1x64xf32>
    %295 = vector.broadcast %294 : vector<1x64xf32> to vector<2x64xf32>
    %296 = arith.addf %293, %295 : vector<2x64xf32>
    %cst_81 = arith.constant 0.000000e+00 : f32
    %297 = vector.broadcast %cst_81 : f32 to vector<2x64xf32>
    %298 = arith.maximumf %296, %297 : vector<2x64xf32>
    %299 = vector.broadcast %cst_81 : f32 to vector<2x64xf32>
    %300 = arith.subf %296, %299 : vector<2x64xf32>
    %301 = arith.cmpf one, %300, %300 : vector<2x64xf32>
    %302 = vector.broadcast %cst_81 : f32 to vector<2x64xf32>
    %303 = arith.addf %296, %302 : vector<2x64xf32>
    %304 = math.absf %300 : vector<2x64xf32>
    %cst_82 = arith.constant 0.000000e+00 : f32
    %305 = vector.broadcast %cst_82 : f32 to vector<2x64xf32>
    %306 = arith.subf %305, %304 : vector<2x64xf32>
    %307 = math.exp %306 : vector<2x64xf32>
    %308 = math.log1p %307 : vector<2x64xf32>
    %309 = arith.addf %298, %308 : vector<2x64xf32>
    %310 = arith.select %301, %303, %309 : vector<2x64xi1>, vector<2x64xf32>
    %c0_83 = arith.constant 0 : index
    %c0_84 = arith.constant 0 : index
    %311 = vector.load %arg14[%c0_83, %c0_84] : memref<64x2xf32, #tpu.memory_space<vmem>>, vector<64x2xf32>
    %cst_85 = arith.constant dense<0.000000e+00> : vector<2x2xf32>
    %312 = tpu.matmul %310, %311, %cst_85 {dimension_numbers = #tpu.dot_dimension_numbers<[1], [0], [0], [1], [0, 0, 1, 1], [], []>} : vector<2x64xf32>, vector<64x2xf32>, vector<2x2xf32> -> vector<2x2xf32>
    %313 = vector.extract_strided_slice %275 {offsets = [1, 0], sizes = [1, 2], strides = [1, 1]} : vector<2x64xf32> to vector<1x2xf32>
    %314 = vector.broadcast %313 : vector<1x2xf32> to vector<2x2xf32>
    %315 = arith.addf %312, %314 : vector<2x2xf32>
    %c0_86 = arith.constant 0 : index
    %c0_87 = arith.constant 0 : index
    %316 = vector.load %arg17[%c0_86, %c0_87] : memref<2x2xf32, #tpu.memory_space<vmem>>, vector<2x2xf32>
    tpu.vector_store %arg17[%c0_86, %c0_87], %315 {strides = array<i32>} : memref<2x2xf32, #tpu.memory_space<vmem>>, vector<2x2xf32>,
    return
  }
  func.func @transform_0(%arg0: i32) -> (i32, i32) {
    %c0_i32 = arith.constant 0 : i32
    %c0_i32_0 = arith.constant 0 : i32
    %c0_i32_1 = arith.constant 0 : i32
    return %c0_i32, %c0_i32_0 : i32, i32
  }
  func.func @transform_1(%arg0: i32) -> (i32, i32) {
    %c0_i32 = arith.constant 0 : i32
    %c0_i32_0 = arith.constant 0 : i32
    %c0_i32_1 = arith.constant 0 : i32
    return %c0_i32, %c0_i32_0 : i32, i32
  }
  func.func @transform_2(%arg0: i32) -> (i32, i32) {
    %c0_i32 = arith.constant 0 : i32
    %c0_i32_0 = arith.constant 0 : i32
    %c0_i32_1 = arith.constant 0 : i32
    return %c0_i32, %c0_i32_0 : i32, i32
  }
  func.func @transform_3(%arg0: i32) -> (i32, i32) {
    %c0_i32 = arith.constant 0 : i32
    %c0_i32_0 = arith.constant 0 : i32
    %c0_i32_1 = arith.constant 0 : i32
    return %c0_i32, %c0_i32_0 : i32, i32
  }
  func.func @transform_4(%arg0: i32) -> (i32, i32) {
    %c0_i32 = arith.constant 0 : i32
    %c0_i32_0 = arith.constant 0 : i32
    %c0_i32_1 = arith.constant 0 : i32
    return %c0_i32, %c0_i32_0 : i32, i32
  }
  func.func @transform_5(%arg0: i32) -> (i32, i32) {
    %c0_i32 = arith.constant 0 : i32
    %c0_i32_0 = arith.constant 0 : i32
    %c0_i32_1 = arith.constant 0 : i32
    return %c0_i32, %c0_i32_0 : i32, i32
  }
  func.func @transform_6(%arg0: i32) -> (i32, i32) {
    %c0_i32 = arith.constant 0 : i32
    %c0_i32_0 = arith.constant 0 : i32
    %c0_i32_1 = arith.constant 0 : i32
    return %c0_i32, %c0_i32_0 : i32, i32
  }
  func.func @transform_7(%arg0: i32) -> (i32, i32) {
    %c0_i32 = arith.constant 0 : i32
    %c0_i32_0 = arith.constant 0 : i32
    %c0_i32_1 = arith.constant 0 : i32
    return %c0_i32, %c0_i32_0 : i32, i32
  }
  func.func @transform_8(%arg0: i32) -> (i32, i32) {
    %c0_i32 = arith.constant 0 : i32
    %c0_i32_0 = arith.constant 0 : i32
    %c0_i32_1 = arith.constant 0 : i32
    return %c0_i32, %c0_i32_0 : i32, i32
  }
  func.func @transform_9(%arg0: i32) -> (i32, i32) {
    %c0_i32 = arith.constant 0 : i32
    %c0_i32_0 = arith.constant 0 : i32
    %c0_i32_1 = arith.constant 0 : i32
    return %c0_i32, %c0_i32_0 : i32, i32
  }
  func.func @transform_10(%arg0: i32) -> (i32, i32) {
    %c0_i32 = arith.constant 0 : i32
    %c0_i32_0 = arith.constant 0 : i32
    %c0_i32_1 = arith.constant 0 : i32
    return %c0_i32, %c0_i32_0 : i32, i32
  }
  func.func @transform_11(%arg0: i32) -> (i32, i32) {
    %c0_i32 = arith.constant 0 : i32
    %c0_i32_0 = arith.constant 0 : i32
    %c0_i32_1 = arith.constant 0 : i32
    return %c0_i32, %c0_i32_0 : i32, i32
  }
  func.func @transform_12(%arg0: i32) -> (i32, i32) {
    %c0_i32 = arith.constant 0 : i32
    %c0_i32_0 = arith.constant 0 : i32
    %c0_i32_1 = arith.constant 0 : i32
    return %c0_i32, %c0_i32_0 : i32, i32
  }
  func.func @transform_13(%arg0: i32) -> (i32, i32) {
    %c0_i32 = arith.constant 0 : i32
    %c0_i32_0 = arith.constant 0 : i32
    %c0_i32_1 = arith.constant 0 : i32
    return %c0_i32, %c0_i32_0 : i32, i32
  }
  func.func @transform_14(%arg0: i32) -> (i32, i32) {
    %c0_i32 = arith.constant 0 : i32
    %c0_i32_0 = arith.constant 0 : i32
    %c0_i32_1 = arith.constant 0 : i32
    return %c0_i32, %c0_i32_0 : i32, i32
  }
  func.func @transform_15(%arg0: i32) -> (i32, i32) {
    %c0_i32 = arith.constant 0 : i32
    %c0_i32_0 = arith.constant 0 : i32
    %c0_i32_1 = arith.constant 0 : i32
    return %c0_i32, %c0_i32_0 : i32, i32
  }
  func.func @transform_16(%arg0: i32) -> (i32, i32) {
    %c0_i32 = arith.constant 0 : i32
    %c0_i32_0 = arith.constant 0 : i32
    %c0_i32_1 = arith.constant 0 : i32
    return %c0_i32, %c0_i32_0 : i32, i32
  }
}

</mosaic_0001>

<bundles_post_ra>
// kernel: tpu_custom_call.1
= control target key start
LH: loop header
LB: loop body
LE: loop exit
PB: predicated region body
PF: predicated region fallthrough
CT: control target
= control target key end

     0   :  { %s10229_s0 = inlined_call_operand.vmem [shape: f32[16,8], index: 0, kind: input, shape index: {}]   ;;  %s10230_s1 = inlined_call_operand.vmem [shape: f32[128,48], index: 1, kind: input, shape index: {}]   ;;  %s10231_s2 = inlined_call_operand.vmem [shape: f32[128,16], index: 2, kind: input, shape index: {}]   ;;  %s10232_s3 = inlined_call_operand.vmem [shape: f32[128,16], index: 3, kind: input, shape index: {}]   ;;  %s10233_s4 = inlined_call_operand.vmem [shape: f32[16,128], index: 4, kind: input, shape index: {}]   ;;  %s10234_s5 = inlined_call_operand.vmem [shape: f32[128,1], index: 5, kind: input, shape index: {}]   ;;  %s10235_s6 = inlined_call_operand.vmem [shape: f32[2,16], index: 6, kind: input, shape index: {}]   ;;  %s10236_s7 = inlined_call_operand.vmem [shape: f32[9,32], index: 7, kind: input, shape index: {}]   ;;  %s10237_s8 = inlined_call_operand.vmem [shape: f32[240,64], index: 8, kind: input, shape index: {}]   ;;  %s10238_s9 = inlined_call_operand.vmem [shape: f32[24,64], index: 9, kind: input, shape index: {}]   ;;  %s10239_s10 = inlined_call_operand.vmem [shape: f32[48,64], index: 10, kind: input, shape index: {}]   ;;  %s10240_s11 = inlined_call_operand.vmem [shape: f32[3,64], index: 11, kind: input, shape index: {}]   ;;  %s10241_s12 = inlined_call_operand.vmem [shape: f32[32,64], index: 12, kind: input, shape index: {}]   ;;  %s10242_s13 = inlined_call_operand.vmem [shape: f32[64,2], index: 13, kind: input, shape index: {}]   ;;  %s10243_s14 = inlined_call_operand.vmem [shape: f32[2,64], index: 14, kind: input, shape index: {}]   ;;  %s10244_s15 = inlined_call_operand.vmem [shape: f32[128,1], index: 15, kind: output, shape index: {0}]   ;;  %s10245_s16 = inlined_call_operand.hbm [shape: f32[2,2], index: 16, kind: output, shape index: {1}]  }
   0x1   :  { %10328 = sst [smem:[#allocation38_spill]] %s10229_s0 }
   0x2   :  { %v53_v0 = vld [vmem:[%s10236_s7] sm:$0xff]  ;;  %s10329_s25 = sld [smem:[#allocation38_spill]]  ;;  %vm61_vm0 = vcmask 64512   ;;  %v194_v4 = vld [vmem:[%s10237_s8 + $0x8] sm:$0xff] }
   0x3   :  { %5698 = vmatprep.subr.mxu0 %v53_v0  ;;  %v193_v3 = vld [vmem:[%s10237_s8] sm:$0xff]  ;;  %v198_v7 = vld [vmem:[%s10237_s8 + $0x28] sm:$0xff] }
   0x4   :  { %v197_v5 = vld [vmem:[%s10237_s8 + $0x20] sm:$0xff]  ;;  %5699 = vmatpush3.msra.mxu0 %v53_v0  ;;  %v6107_v6 = vpack.c.bf16 %v194_v4, %v193_v3 }
   0x8   :  { %v55_v1 = vld [vmem:[%s10329_s25] sm:$0xff]  ;;  %v56_v2 = vld [vmem:[%s10329_s25 + $0x8] sm:$0xff] }
   0x9   :  { %5700 = vmatprep.mubr.msk.f32.mxu0 %vm61_vm0, %v55_v1 }
   0xa   :  { %22 = vsyncpa [#allocation3], 0  ;;  %5701 = vmatmul.mubr.msk.f32.vlgmr.msra.gmra.mrb[0].mxu0 %vm61_vm0, %v56_v2  ;;  %v6115_v8 = vpack.c.bf16 %v198_v7, %v197_v5  ;;  %6108 = vmatprep.subr.bf16.mxu1 %v6107_v6  ;;  %v195_v9 = vld [vmem:[%s10237_s8 + $0x10] sm:$0xff]  ;;  %v196_v10 = vld [vmem:[%s10237_s8 + $0x18] sm:$0xff]  ;;  %vm204_vm1 = vcmask 261120   ;;  %vm361_vm2 = vcmask 392192  }
   0xb   :  { %6110 = vmatpush3.bf16.msra.mxu1 %v6107_v6  ;;  %v199_v11 = vld [vmem:[%s10237_s8 + $0x30] sm:$0xff]  ;;  %v6111_v12 = vpack.c.bf16 %v196_v10, %v195_v9  ;;  %v200_v13 = vld [vmem:[%s10237_s8 + $0x38] sm:$0xff]  ;;  %v5304_v15 = vld [vmem:[%s10236_s7 + $0x8] ss:$0 sm:$0xff]  ;;  %v7033_v21 = vmov 0   ;;  %s7034_s21 = smov 96  }
   0xc   :  { %6116 = vmatprep.subr.bf16.mxu0 %v6115_v8  ;;  %v6119_v14 = vpack.c.bf16 %v200_v13, %v199_v11  ;;  %v143_v20 = vld [vmem:[%s10230_s1] sm:$0xff]  ;;  %6348 = vset.pattern.permute.xlu0 %v7033_v21  ;;  %v163_v24 = vld [vmem:[%s10234_s5 + $0x10] sm:$0xff]  ;;  %v162_v25 = vld [vmem:[%s10234_s5 + $0x8] sm:$0xff] }
   0xd   :  { %6118 = vmatpush3.bf16.msra.mxu0 %v6115_v8  ;;  %6112 = vmatprep.subr.bf16.mxu1 %v6111_v12  ;;  %v7180_v22 = vld [vmem:[%s10234_s5] sm:$0xff]  ;;  %vm179_vm4 = vcmp.gt.f32.partialorder %v163_v24, 0.5  ;;  %vm178_vm5 = vcmp.gt.f32.partialorder %v162_v25, 0.5  ;;  %v164_v28 = vld [vmem:[%s10234_s5 + $0x18] sm:$0xff]  ;;  %v166_v30 = vld [vmem:[%s10234_s5 + $0x28] sm:$0xff] }
   0xe   :  { %6120 = vmatprep.subr.bf16.mxu0 %v6119_v14  ;;  %6349 = vset.pattern.permute.xlu1 %v7033_v21  ;;  %vm177_vm3 = vcmp.gt.f32.partialorder %v7180_v22, 0.5  ;;  %v617_v26 = vsel %vm179_vm4, 1, %v7033_v21  ;;  %v616_v27 = vsel %vm178_vm5, 1, %v7033_v21  ;;  %v165_v29 = vld [vmem:[%s10234_s5 + $0x20] sm:$0xff]  ;;  %vm180_vm6 = vcmp.gt.f32.partialorder %v164_v28, 0.5  ;;  %v167_v31 = vld [vmem:[%s10234_s5 + $0x30] sm:$0xff] }
   0xf   :  { %6114 = vmatpush3.bf16.msra.mxu1 %v6111_v12  ;;  %v615_v23 = vsel %vm177_vm3, 1, %v7033_v21  ;;  %638 = vperm.xlu1 %6349, %v617_v26   ;;  %vm181_vm7 = vcmp.gt.f32.partialorder %v165_v29, 0.5  ;;  %v618_v32 = vsel %vm180_vm6, 1, %v7033_v21  ;;  %vm182_vm8 = vcmp.gt.f32.partialorder %v166_v30, 0.5  ;;  %v168_v34 = vld [vmem:[%s10234_s5 + $0x38] sm:$0xff]  ;;  %v169_v35 = vld [vmem:[%s10234_s5 + $0x40] sm:$0xff] }
  0x10   :  { %632 = vperm.xlu0 %6348, %v615_v23   ;;  %v619_v33 = vsel %vm181_vm7, 1, %v7033_v21  ;;  %vm183_vm9 = vcmp.gt.f32.partialorder %v167_v31, 0.5  ;;  %v620_v36 = vsel %vm182_vm8, 1, %v7033_v21  ;;  %vm184_vm10 = vcmp.gt.f32.partialorder %v168_v34, 0.5  ;;  %v170_v38 = vld [vmem:[%s10234_s5 + $0x48] sm:$0xff]  ;;  %v171_v39 = vld [vmem:[%s10234_s5 + $0x50] sm:$0xff] }
  0x11   :  { %6122 = vmatpush3.bf16.msra.mxu0 %v6119_v14  ;;  %v621_v37 = vsel %vm183_vm9, 1, %v7033_v21  ;;  %vm185_vm11 = vcmp.gt.f32.partialorder %v169_v35, 0.5  ;;  %v622_v40 = vsel %vm184_vm10, 1, %v7033_v21  ;;  %vm186_vm12 = vcmp.gt.f32.partialorder %v170_v38, 0.5  ;;  %v172_v42 = vld [vmem:[%s10234_s5 + $0x58] sm:$0xff]  ;;  %v173_v43 = vld [vmem:[%s10234_s5 + $0x60] sm:$0xff] }
  0x12   :  { %v623_v41 = vsel %vm185_vm11, 1, %v7033_v21  ;;  %vm187_vm13 = vcmp.gt.f32.partialorder %v171_v39, 0.5  ;;  %v624_v44 = vsel %vm186_vm12, 1, %v7033_v21  ;;  %vm188_vm14 = vcmp.gt.f32.partialorder %v172_v42, 0.5  ;;  %v174_v46 = vld [vmem:[%s10234_s5 + $0x68] sm:$0xff]  ;;  %v175_v47 = vld [vmem:[%s10234_s5 + $0x70] sm:$0xff] }
  0x13   :  { %641 = vperm.xlu1 %6349, %v618_v32   ;;  %v625_v45 = vsel %vm187_vm13, 1, %v7033_v21  ;;  %vm189_vm15 = vcmp.gt.f32.partialorder %v173_v43, 0.5  ;;  %v626_v48 = vsel %vm188_vm14, 1, %v7033_v21  ;;  %vm190_vm0 = vcmp.gt.f32.partialorder %v174_v46, 0.5  ;;  %v176_v50 = vld [vmem:[%s10234_s5 + $0x78] sm:$0xff]  ;;  %v201_v60 = vld [vmem:[%s10237_s8 + $0x40] sm:$0xff] }
  0x14   :  { %635 = vperm.xlu0 %6348, %v616_v27   ;;  %v627_v49 = vsel %vm189_vm15, 1, %v7033_v21  ;;  %vm191_vm3 = vcmp.gt.f32.partialorder %v175_v47, 0.5  ;;  %v628_v51 = vsel %vm190_vm0, 1, %v7033_v21  ;;  %vm192_vm4 = vcmp.gt.f32.partialorder %v176_v50, 0.5  ;;  %v202_v61 = vld [vmem:[%s10237_s8 + $0x48] sm:$0xff]  ;;  %v145_v0 = vld [vmem:[%s10230_s1 + $0x10] sm:$0xff] }
  0x15   :  { %v629_v52 = vsel %vm191_vm3, 1, %v7033_v21  ;;  %v630_v53 = vsel %vm192_vm4, 1, %v7033_v21  ;;  %v6131_v62 = vpack.c.bf16 %v202_v61, %v201_v60  ;;  %v144_v63 = vld [vmem:[%s10230_s1 + $0x8] sm:$0xff]  ;;  %v146_v1 = vld [vmem:[%s10230_s1 + $0x18] sm:$0xff]  ;;  %v147_v2 = vld [vmem:[%s10230_s1 + $0x20] sm:$0xff] }
  0x16   :  { %v148_v3 = vld [vmem:[%s10230_s1 + $0x28] sm:$0xff]  ;;  %v149_v4 = vld [vmem:[%s10230_s1 + $0x30] sm:$0xff]  ;;  %v150_v5 = vld [vmem:[%s10230_s1 + $0x38] sm:$0xff] }
  0x17   :  { %647 = vperm.xlu1 %6349, %v620_v36   ;;  %v151_v6 = vld [vmem:[%s10230_s1 + $0x40] sm:$0xff]  ;;  %v152_v7 = vld [vmem:[%s10230_s1 + $0x48] sm:$0xff]  ;;  %v153_v8 = vld [vmem:[%s10230_s1 + $0x50] sm:$0xff] }
  0x18   :  { %644 = vperm.xlu0 %6348, %v619_v33   ;;  %v154_v9 = vld [vmem:[%s10230_s1 + $0x58] sm:$0xff]  ;;  %v155_v10 = vld [vmem:[%s10230_s1 + $0x60] sm:$0xff]  ;;  %v156_v11 = vld [vmem:[%s10230_s1 + $0x68] sm:$0xff] }
  0x19   :  { %v157_v12 = vld [vmem:[%s10230_s1 + $0x70] sm:$0xff]  ;;  %v158_v13 = vld [vmem:[%s10230_s1 + $0x78] sm:$0xff]  ;;  %v7328_v23 = vld [vmem:[%s10238_s9] sm:$0xff] }
  0x1b   :  { %653 = vperm.xlu1 %6349, %v622_v40  }
  0x1c   :  { %650 = vperm.xlu0 %6348, %v621_v37  }
  0x1f   :  { %659 = vperm.xlu1 %6349, %v624_v44  }
  0x20   :  { %656 = vperm.xlu0 %6348, %v623_v41  }
  0x23   :  { %665 = vperm.xlu1 %6349, %v626_v48  }
  0x24   :  { %662 = vperm.xlu0 %6348, %v625_v45  }
  0x27   :  { %671 = vperm.xlu1 %6349, %v628_v51  }
  0x28   :  { %668 = vperm.xlu0 %6348, %v627_v49  }
  0x2b   :  { %677 = vperm.xlu1 %6349, %v630_v53  }
  0x2c   :  { %674 = vperm.xlu0 %6348, %v629_v52  }
  0x2f   :  { %1182 = vperm.xlu1 %6349, %v162_v25  }
  0x30   :  { %1177 = vperm.xlu0 %6348, %v7180_v22  }
  0x33   :  { %1192 = vperm.xlu1 %6349, %v164_v28  }
  0x34   :  { %1187 = vperm.xlu0 %6348, %v163_v24  }
  0x37   :  { %1202 = vperm.xlu1 %6349, %v166_v30  }
  0x38   :  { %1197 = vperm.xlu0 %6348, %v165_v29  }
  0x3b   :  { %1212 = vperm.xlu1 %6349, %v168_v34  }
  0x3c   :  { %1207 = vperm.xlu0 %6348, %v167_v31  }
  0x3f   :  { %1222 = vperm.xlu1 %6349, %v170_v38  }
  0x40   :  { %1217 = vperm.xlu0 %6348, %v169_v35  }
  0x43   :  { %1232 = vperm.xlu1 %6349, %v172_v42  }
  0x44   :  { %1227 = vperm.xlu0 %6348, %v171_v39  }
  0x47   :  { %1242 = vperm.xlu1 %6349, %v174_v46  }
  0x48   :  { %1237 = vperm.xlu0 %6348, %v173_v43  }
  0x4b   :  { %1252 = vperm.xlu1 %6349, %v176_v50  }
  0x4c   :  { %1247 = vperm.xlu0 %6348, %v175_v47  }
  0x8e   :  { %v7312_v14 = vpop.permute.xlu1 %638 }
  0x8f   :  { %10330 = vst [vmem:[#allocation5_spill] sm:$0xff] %v7312_v14  ;;  %vm681_vm8 = vcmp.eq.s32.totalorder %v7312_v14, 1 }
  0xdd   :  { %v5702_v16 = vpop.f32.mrb[0].mxu0 }
  0xde   :  { %v134_v17 = vpop.f32.mrb[1].mxu0  ;;  %v7162_v19 = vadd.f32 %v5702_v16, %v5304_v15  ;;  %v7314_v16 = vpop.permute.xlu0 %632 }
  0xdf   :  { %v7160_v18 = vadd.f32 %v5304_v15, %v134_v17  ;;  %v555_v15 = vlaneseq  ;;  %10331 = vst [vmem:[#allocation6_spill] sm:$0xff] %v7314_v16  ;;  %vm679_vm6 = vcmp.eq.s32.totalorder %v7314_v16, 1 }
  0xe1   :  { %5711 = vmatprep.mubr.msk.f32.mxu1 %vm204_vm1, %v7160_v18  ;;  %5722 = vmatprep.mubr.msk.f32.mxu0 %vm204_vm1, %v7160_v18  ;;  %v7316_v17 = vshrl.u32 %v555_v15, 7 }
  0xe2   :  { %5712 = vmatmul.mubr.msk.f32.vlgmr.msra.gmra.mrb[0].mxu1 %vm204_vm1, %v7162_v19  ;;  %5723 = vmatmul.mubr.msk.f32.vlgmr.msra.gmra.mrb[2].mxu0 %vm204_vm1, %v7162_v19  ;;  %v7320_v21 = vpop.permute.xlu0 %635 }
  0xe3   :  { %5737 = vmatprep.mubr.msk.f32.mxu1 %vm361_vm2, %v143_v20  ;;  %v7318_v20 = vpop.permute.xlu1 %641  ;;  %10333 = vst [vmem:[#allocation8_spill] sm:$0xff] %v7320_v21  ;;  %v7323_v22 = vsub.s32 1, %v7316_v17  ;;  %v7337_v27 = vsub.s32 2, %v7316_v17  ;;  %v7342_v30 = vsub.s32 0, %v7316_v17  ;;  %vm680_vm5 = vcmp.eq.s32.totalorder %v7320_v21, 1 }
  0xe4   :  { %10332 = vst [vmem:[#allocation7_spill] sm:$0xff] %v7318_v20  ;;  %vm682_vm7 = vcmp.eq.s32.totalorder %v7318_v20, 1 }
  0xe5   :  { %10334 = vst [vmem:[#allocation9_spill] sm:$0xff] %v7323_v22  ;;  %v7334_v26 = vrot.slane %v7328_v23, %v7323_v22  ;;  %10336 = vst [vmem:[#allocation11_spill] sm:$0xff] %v7337_v27  ;;  %v7347_v33 = vrot.slane %v7328_v23, %v7337_v27  ;;  %v7354_v37 = vrot.slane %v7328_v23, %v7342_v30 }
  0xe6   :  { %v7339_v29 = vpop.permute.xlu0 %644  ;;  %10338 = vst [vmem:[#allocation13_spill] sm:$0xff] %v7342_v30 }
  0xe7   :  { %v7330_v24 = vpop.permute.xlu1 %647  ;;  %10337 = vst [vmem:[#allocation12_spill] sm:$0xff] %v7339_v29  ;;  %vm10287_vm9 = vcmp.eq.s32.totalorder %v7339_v29, 1 }
  0xe8   :  { %10335 = vst [vmem:[#allocation10_spill] sm:$0xff] %v7330_v24  ;;  %vm10288_vm10 = vcmp.eq.s32.totalorder %v7330_v24, 1 }
  0xea   :  { %v7358_v41 = vpop.permute.xlu0 %650 }
  0xeb   :  { %v7349_v35 = vpop.permute.xlu1 %653  ;;  %10340 = vst [vmem:[#allocation15_spill] sm:$0xff] %v7358_v41  ;;  %vm10277_vm11 = vcmp.eq.s32.totalorder %v7358_v41, 1 }
  0xec   :  { %10339 = vst [vmem:[#allocation14_spill] sm:$0xff] %v7349_v35  ;;  %vm10278_vm12 = vcmp.eq.s32.totalorder %v7349_v35, 1 }
  0xef   :  { %v7365_v47 = vpop.permute.xlu1 %659 }
  0xf0   :  { %10341 = vst [vmem:[#allocation16_spill] sm:$0xff] %v7365_v47  ;;  %vm10264_vm14 = vcmp.eq.s32.totalorder %v7365_v47, 1 }
 0x1b5   :  { %v5713_v54 = vpop.f32.mrb[0].mxu1  ;;  %v5724_v55 = vpop.f32.mrb[2].mxu0 }
 0x1b6   :  { %v277_v56 = vpop.f32.mrb[1].mxu1  ;;  %v352_v57 = vpop.f32.mrb[3].mxu0 }
 0x1b7   :  { %v6123_v58 = vpack.c.bf16 %v5713_v54, %v277_v56  ;;  %v6127_v59 = vpack.c.bf16 %v5724_v55, %v352_v57 }
 0x1b9   :  { %6124 = vmatprep.subr.bf16.mxu1 %v6123_v58 }
 0x1ba   :  { %6126 = vmatpush3.bf16.msra.mxu1 %v6123_v58  ;;  %v7384_v58 = vpop.permute.xlu0 %656 }
 0x1bb   :  { %6128 = vmatprep.subr.bf16.mxu1 %v6127_v59  ;;  %10342 = vst [vmem:[#allocation17_spill] sm:$0xff] %v7384_v58  ;;  %vm10263_vm13 = vcmp.eq.s32.totalorder %v7384_v58, 1 }
 0x1be   :  { %6130 = vmatpush3.bf16.msra.mxu1 %v6127_v59  ;;  %v7417_v15 = vpop.permute.xlu0 %662 }
 0x1bf   :  { %6132 = vmatprep.subr.bf16.mxu1 %v6131_v62  ;;  %10344 = vst [vmem:[#allocation19_spill] sm:$0xff] %v7417_v15  ;;  %vm10255_vm15 = vcmp.eq.s32.totalorder %v7417_v15, 1 }
 0x1c2   :  { %6134 = vmatpush3.bf16.msra.mxu1 %v6131_v62 }
 0x1c5   :  { %5738 = vmatmul.mubr.msk.f32.vlgmr.msra.gmra.mrb[2].mxu1 %vm361_vm2, %v144_v63 }
 0x1c6   :  { %5740 = vmatprep.mubr.msk.f32.mxu1 %vm361_vm2, %v145_v0 }
 0x1c9   :  { %5741 = vmatmul.mubr.msk.f32.gmra.mrb[4].mxu1 %vm361_vm2, %v146_v1 }
 0x1ca   :  { %5743 = vmatprep.mubr.msk.f32.mxu1 %vm361_vm2, %v147_v2 }
 0x1cd   :  { %5744 = vmatmul.mubr.msk.f32.gmra.mrb[6].mxu1 %vm361_vm2, %v148_v3  ;;  %v7401_v3 = vpop.permute.xlu1 %665 }
 0x1ce   :  { %5746 = vmatprep.mubr.msk.f32.mxu1 %vm361_vm2, %v149_v4  ;;  %10343 = vst [vmem:[#allocation18_spill] sm:$0xff] %v7401_v3  ;;  %vm10260_vm0 = vcmp.eq.s32.totalorder %v7401_v3, 1 }
 0x1d1   :  { %5747 = vmatmul.mubr.msk.f32.gmra.mrb[8].mxu1 %vm361_vm2, %v150_v5 }
 0x1d2   :  { %5749 = vmatprep.mubr.msk.f32.mxu1 %vm361_vm2, %v151_v6 }
 0x1d5   :  { %5750 = vmatmul.mubr.msk.f32.gmra.mrb[10].mxu1 %vm361_vm2, %v152_v7 }
 0x1d6   :  { %5752 = vmatprep.mubr.msk.f32.mxu1 %vm361_vm2, %v153_v8 }
 0x1d9   :  { %5753 = vmatmul.mubr.msk.f32.gmra.mrb[12].mxu1 %vm361_vm2, %v154_v9 }
 0x1da   :  { %5755 = vmatprep.mubr.msk.f32.mxu1 %vm361_vm2, %v155_v10 }
 0x1dd   :  { %5756 = vmatmul.mubr.msk.f32.gmra.mrb[14].mxu1 %vm361_vm2, %v156_v11 }
 0x1de   :  { %5758 = vmatprep.mubr.msk.f32.mxu1 %vm361_vm2, %v157_v12 }
 0x1e1   :  { %5759 = vmatmul.mubr.msk.f32.gmra.mrb[16].mxu1 %vm361_vm2, %v158_v13 }
 0x298   :  { %v5739_v25 = vpop.f32.mrb[2].mxu1 }
 0x299   :  { %v476_v28 = vpop.f32.mrb[3].mxu1  ;;  %v560_v32 = vmul.f32 %v5739_v25, %v7334_v26  ;;  %v600_v45 = vadd.f32 %v5739_v25, %v7354_v37 }
 0x29a   :  { %v559_v36 = vmul.f32 %v7334_v26, %v476_v28  ;;  %v599_v48 = vadd.f32 %v7354_v37, %v476_v28 }
 0x29b   :  { %v580_v42 = vadd.f32 %v7347_v33, %v560_v32 }
 0x29c   :  { %v5742_v31 = vpop.f32.mrb[4].mxu1  ;;  %v579_v44 = vadd.f32 %v7347_v33, %v559_v36 }
 0x29d   :  { %v486_v34 = vpop.f32.mrb[5].mxu1  ;;  %v562_v38 = vmul.f32 %v5742_v31, %v7334_v26  ;;  %v7373_v52 = vsel %vm680_vm5, %v580_v42, %v600_v45  ;;  %v602_v53 = vadd.f32 %v5742_v31, %v7354_v37 }
 0x29e   :  { %v561_v39 = vmul.f32 %v7334_v26, %v486_v34  ;;  %v7379_v55 = vsel %vm679_vm6, %v579_v44, %v599_v48  ;;  %v601_v56 = vadd.f32 %v7354_v37, %v486_v34  ;;  %v856_v60 = vand.u32 2147483647, %v7373_v52 }
 0x29f   :  { %v582_v46 = vadd.f32 %v7347_v33, %v562_v38  ;;  %v855_v0 = vand.u32 2147483647, %v7379_v55 }
 0x2a0   :  { %v5745_v40 = vpop.f32.mrb[6].mxu1  ;;  %v581_v49 = vadd.f32 %v7347_v33, %v561_v39  ;;  %v872_v9 = vsub.f32 0.0, %v856_v60 }
 0x2a1   :  { %v496_v43 = vpop.f32.mrb[7].mxu1  ;;  %v564_v50 = vmul.f32 %v5745_v40, %v7334_v26  ;;  %v7388_v59 = vsel %vm682_vm7, %v582_v46, %v602_v53  ;;  %v604_v5 = vadd.f32 %v5745_v40, %v7354_v37  ;;  %v871_v25 = vsub.f32 0.0, %v855_v0 }
 0x2a2   :  { %v563_v57 = vmul.f32 %v7334_v26, %v496_v43  ;;  %v7393_v61 = vsel %vm681_vm8, %v581_v49, %v601_v56  ;;  %v858_v4 = vand.u32 2147483647, %v7388_v59  ;;  %v603_v11 = vadd.f32 %v7354_v37, %v496_v43  ;;  %v7430_v43 = vpop.permute.xlu1 %671 }
 0x2a3   :  { %v584_v62 = vadd.f32 %v7347_v33, %v564_v50  ;;  %v857_v7 = vand.u32 2147483647, %v7393_v61  ;;  %10345 = vst [vmem:[#allocation20_spill] sm:$0xff] %v7430_v43  ;;  %v889_v44 = vmul.f32 1.442695, %v872_v9  ;;  %vm10247_vm3 = vcmp.eq.s32.totalorder %v7430_v43, 1 }
 0x2a4   :  { %v5748_v51 = vpop.f32.mrb[8].mxu1  ;;  %v583_v6 = vadd.f32 %v7347_v33, %v563_v57  ;;  %v874_v34 = vsub.f32 0.0, %v858_v4  ;;  %v887_v50 = vmul.f32 1.442695, %v871_v25 }
 0x2a5   :  { %v506_v54 = vpop.f32.mrb[9].mxu1  ;;  %v566_v1 = vmul.f32 %v5748_v51, %v7334_v26  ;;  %v7412_v10 = vsel %vm10288_vm10, %v584_v62, %v604_v5  ;;  %v873_v38 = vsub.f32 0.0, %v857_v7  ;;  %v606_v40 = vadd.f32 %v5748_v51, %v7354_v37 }
 0x2a6   :  { %v565_v8 = vmul.f32 %v7334_v26, %v506_v54  ;;  %v7425_v36 = vsel %vm10287_vm9, %v583_v6, %v603_v11  ;;  %v860_v39 = vand.u32 2147483647, %v7412_v10  ;;  %v605_v56 = vadd.f32 %v7354_v37, %v506_v54 }
 0x2a7   :  { %v586_v28 = vadd.f32 %v7347_v33, %v566_v1  ;;  %v859_v53 = vand.u32 2147483647, %v7425_v36  ;;  %v893_v4 = vmul.f32 1.442695, %v874_v34  ;;  %v891_v5 = vmul.f32 1.442695, %v873_v38 }
 0x2a8   :  { %v5751_v63 = vpop.f32.mrb[10].mxu1  ;;  %v585_v42 = vadd.f32 %v7347_v33, %v565_v8  ;;  %v876_v6 = vsub.f32 0.0, %v860_v39  ;;  %v7450_v8 = vpop.permute.xlu0 %668  ;;  %6350 = vpow2.f32 %v889_v44  ;;  %v812_v47 = vmax.f32 %v7412_v10, 0.0 }
 0x2a9   :  { %v516_v2 = vpop.f32.mrb[11].mxu1  ;;  %v568_v12 = vmul.f32 %v5751_v63, %v7334_v26  ;;  %v7439_v51 = vsel %vm10278_vm12, %v586_v28, %v606_v40  ;;  %v608_v60 = vadd.f32 %v5751_v63, %v7354_v37  ;;  %10346 = vst [vmem:[#allocation21_spill] sm:$0xff] %v7450_v8  ;;  %vm10254_vm4 = vcmp.eq.s32.totalorder %v7450_v8, 1 }
 0x2aa   :  { %v567_v31 = vmul.f32 %v7334_v26, %v516_v2  ;;  %v607_v62 = vadd.f32 %v7354_v37, %v516_v2  ;;  %v7448_v7 = vsel %vm10277_vm11, %v585_v42, %v605_v56  ;;  %v862_v25 = vand.u32 2147483647, %v7439_v51 }
 0x2ab   :  { %v588_v45 = vadd.f32 %v7347_v33, %v568_v12  ;;  %v875_v12 = vsub.f32 0.0, %v859_v53  ;;  %6352 = vpow2.f32 %v887_v50  ;;  %v810_v8 = vmax.f32 %v7388_v59, 0.0 }
 0x2ac   :  { %v5754_v13 = vpop.f32.mrb[12].mxu1  ;;  %v587_v46 = vadd.f32 %v7347_v33, %v567_v31  ;;  %v861_v31 = vand.u32 2147483647, %v7448_v7  ;;  %6354 = vpow2.f32 %v893_v4  ;;  %vm825_vm11 = vcmp.ne.f32.partialorder %v7393_v61, %v7393_v61 }
 0x2ad   :  { %v526_v32 = vpop.f32.mrb[13].mxu1  ;;  %v570_v48 = vmul.f32 %v5754_v13, %v7334_v26  ;;  %v7454_v54 = vsel %vm10264_vm14, %v588_v45, %v608_v60  ;;  %v610_v2 = vadd.f32 %v5754_v13, %v7354_v37  ;;  %6356 = vpow2.f32 %v891_v5 }
 0x2ae   :  { %v569_v1 = vmul.f32 %v7334_v26, %v526_v32  ;;  %v7458_v63 = vsel %vm10263_vm13, %v587_v46, %v607_v62  ;;  %v609_v28 = vadd.f32 %v7354_v37, %v526_v32  ;;  %v864_v39 = vand.u32 2147483647, %v7454_v54 }
 0x2af   :  { %v590_v0 = vadd.f32 %v7347_v33, %v570_v48  ;;  %v863_v40 = vand.u32 2147483647, %v7458_v63  ;;  %v897_v32 = vmul.f32 1.442695, %v876_v6  ;;  %v895_v46 = vmul.f32 1.442695, %v875_v12  ;;  %v7489_v6 = vpop.permute.xlu1 %677 }
 0x2b0   :  { %v5757_v49 = vpop.f32.mrb[14].mxu1  ;;  %v589_v9 = vadd.f32 %v7347_v33, %v569_v1  ;;  %v878_v48 = vsub.f32 0.0, %v862_v25  ;;  %v877_v56 = vsub.f32 0.0, %v861_v31  ;;  %v880_v1 = vsub.f32 0.0, %v864_v39  ;;  %10347 = vst [vmem:[#allocation22_spill] sm:$0xff] %v7489_v6 }
 0x2b1   :  { %v536_v57 = vpop.f32.mrb[15].mxu1  ;;  %v7468_v34 = vsel %vm10260_vm0, %v590_v0, %v610_v2  ;;  %v572_v13 = vmul.f32 %v5757_v49, %v7334_v26  ;;  %v612_v45 = vadd.f32 %v5757_v49, %v7354_v37  ;;  %v879_v4 = vsub.f32 0.0, %v863_v40 }
 0x2b2   :  { %v7475_v42 = vsel %vm10255_vm15, %v589_v9, %v609_v28  ;;  %v866_v50 = vand.u32 2147483647, %v7468_v34  ;;  %v571_v53 = vmul.f32 %v7334_v26, %v536_v57  ;;  %v611_v49 = vadd.f32 %v7354_v37, %v536_v57 }
 0x2b3   :  { %v592_v44 = vadd.f32 %v7347_v33, %v572_v13  ;;  %v865_v60 = vand.u32 2147483647, %v7475_v42  ;;  %6358 = vpow2.f32 %v897_v32  ;;  %v901_v28 = vmul.f32 1.442695, %v878_v48 }
 0x2b4   :  { %v5760_v11 = vpop.f32.mrb[16].mxu1  ;;  %v591_v2 = vadd.f32 %v7347_v33, %v571_v53  ;;  %v882_v31 = vsub.f32 0.0, %v866_v50  ;;  %v899_v13 = vmul.f32 1.442695, %v877_v56  ;;  %6360 = vpow2.f32 %v895_v46  ;;  %v7512_v56 = vpop.permute.xlu0 %674 }
 0x2b5   :  { %v546_v38 = vpop.f32.mrb[17].mxu1  ;;  %v7484_v62 = vsel %vm10247_vm3, %v592_v44, %v612_v45  ;;  %v574_v0 = vmul.f32 %v5760_v11, %v7334_v26  ;;  %v614_v12 = vadd.f32 %v5760_v11, %v7354_v37  ;;  %vm10248_vm3 = vcmp.eq.s32.totalorder %v7489_v6, 1  ;;  %v7504_v44 = vpop.eup %6350  ;;  %10348 = vst [vmem:[#allocation23_spill] sm:$0xff] %v7512_v56 }
 0x2b6   :  { %v868_v5 = vand.u32 2147483647, %v7484_v62  ;;  %v573_v25 = vmul.f32 %v7334_v26, %v546_v38  ;;  %v881_v39 = vsub.f32 0.0, %v865_v60  ;;  %v7498_v57 = vsel %vm10254_vm4, %v591_v2, %v611_v49  ;;  %v7508_v48 = vpop.eup %6352 }
 0x2b7   :  { %v594_v9 = vadd.f32 %v7347_v33, %v574_v0  ;;  %v905_v11 = vmul.f32 1.442695, %v880_v1  ;;  %v867_v26 = vand.u32 2147483647, %v7498_v57  ;;  %v903_v50 = vmul.f32 1.442695, %v879_v4  ;;  %v7510_v53 = vpop.eup %6354 }
 0x2b8   :  { %v884_v45 = vsub.f32 0.0, %v868_v5  ;;  %v593_v32 = vadd.f32 %v7347_v33, %v573_v25  ;;  %6362 = vpow2.f32 %v901_v28  ;;  %v909_v60 = vmul.f32 1.442695, %v882_v31  ;;  %v7516_v1 = vpop.eup %6356 }
 0x2b9   :  { %v7502_v40 = vsel %vm10248_vm3, %v594_v9, %v614_v12  ;;  %v613_v49 = vadd.f32 %v7354_v37, %v546_v38  ;;  %vm10249_vm3 = vcmp.eq.s32.totalorder %v7512_v56, 1  ;;  %6364 = vpow2.f32 %v899_v13 }
 0x2ba   :  { %v870_v0 = vand.u32 2147483647, %v7502_v40  ;;  %v907_v33 = vmul.f32 1.442695, %v881_v39  ;;  %6366 = vpow2.f32 %v905_v11  ;;  %v913_v5 = vmul.f32 1.442695, %v884_v45 }
 0x2bb   :  { %v883_v46 = vsub.f32 0.0, %v867_v26  ;;  %v7521_v4 = vsel %vm10249_vm3, %v593_v32, %v613_v49  ;;  %6368 = vpow2.f32 %v903_v50  ;;  %v928_v2 = vadd.f32 1.0, %v7504_v44 }
 0x2bc   :  { %6370 = vpow2.f32 %v909_v60  ;;  %v886_v9 = vsub.f32 0.0, %v870_v0  ;;  %v919_v37 = vadd.f32 1.0, %v7508_v48  ;;  %v869_v38 = vand.u32 2147483647, %v7521_v4 }
 0x2bd   :  { %6372 = vpow2.f32 %v907_v33  ;;  %v7526_v12 = vpop.eup %6358  ;;  %v911_v25 = vmul.f32 1.442695, %v883_v46  ;;  %v931_v28 = vmul.f32 -0.5, %v7504_v44  ;;  %v946_v31 = vadd.f32 1.0, %v7510_v53 }
 0x2be   :  { %6374 = vpow2.f32 %v913_v5  ;;  %v922_v13 = vmul.f32 -0.5, %v7508_v48  ;;  %v917_v39 = vmul.f32 1.442695, %v886_v9  ;;  %v934_v11 = vand.u32 2147483647, %v7504_v44  ;;  %v7532_v45 = vpop.eup %6360 }
 0x2bf   :  { %6376 = vlog2.f32 %v928_v2  ;;  %v885_v26 = vsub.f32 0.0, %v869_v38  ;;  %v949_v32 = vmul.f32 -0.5, %v7510_v53  ;;  %v937_v50 = vadd.f32 1.0, %v7516_v1 }
 0x2c0   :  { %6378 = vlog2.f32 %v919_v37  ;;  %v808_v0 = vmax.f32 %v7373_v52, 0.0  ;;  %v932_v49 = vadd.f32 1.0, %v931_v28  ;;  %v925_v33 = vand.u32 2147483647, %v7508_v48 }
 0x2c1   :  { %6380 = vlog2.f32 %v946_v31  ;;  %v807_v46 = vmax.f32 %v7379_v55, 0.0  ;;  %v923_v2 = vadd.f32 1.0, %v922_v13  ;;  %v964_v9 = vadd.f32 1.0, %v7526_v12 }
 0x2c2   :  { %v7536_v60 = vpop.eup %6362  ;;  %6382 = vpow2.f32 %v911_v25  ;;  %vm7546_vm3 = vcmp.lt.f32.partialorder %v934_v11, 0.0004427343  ;;  %v952_v25 = vand.u32 2147483647, %v7510_v53  ;;  %v940_v28 = vmul.f32 -0.5, %v7516_v1 }
 0x2c3   :  { %v7540_v5 = vpop.eup %6364  ;;  %6384 = vlog2.f32 %v937_v50  ;;  %v7554_v56 = vmul.f32 1.442695, %v885_v26  ;;  %v950_v6 = vadd.f32 1.0, %v949_v32  ;;  %v955_v13 = vadd.f32 1.0, %v7532_v45 }
 0x2c4   :  { %v7544_v37 = vpop.eup %6366  ;;  %6386 = vpow2.f32 %v917_v39  ;;  %vm824_vm4 = vcmp.ne.f32.partialorder %v7373_v52, %v7373_v52  ;;  %v933_v39 = vmul.f32 %v7504_v44, %v932_v49  ;;  %vm7562_vm15 = vcmp.lt.f32.partialorder %v925_v33, 0.0004427343 }
 0x2c5   :  { %v7552_v31 = vpop.eup %6368  ;;  %6388 = vlog2.f32 %v964_v9  ;;  %v943_v26 = vand.u32 2147483647, %v7516_v1  ;;  %vm823_vm0 = vcmp.ne.f32.partialorder %v7379_v55, %v7379_v55  ;;  %v924_v32 = vmul.f32 %v7508_v48, %v923_v2 }
 0x2c6   :  { %v7557_v50 = vpop.eup %6370  ;;  %v809_v9 = vmax.f32 %v7393_v61, 0.0  ;;  %v967_v15 = vmul.f32 -0.5, %v7526_v12  ;;  %6390 = vlog2.f32 %v955_v13  ;;  %vm826_vm13 = vcmp.ne.f32.partialorder %v7388_v59, %v7388_v59 }
 0x2c7   :  { %v7568_v43 = vpop.eup %6372  ;;  %vm7579_vm14 = vcmp.lt.f32.partialorder %v952_v25, 0.0004427343  ;;  %v941_v33 = vadd.f32 1.0, %v940_v28  ;;  %v970_v3 = vand.u32 2147483647, %v7526_v12  ;;  %v982_v58 = vadd.f32 1.0, %v7536_v60 }
 0x2c8   :  { %v7575_v44 = vpop.eup %6374  ;;  %v951_v2 = vmul.f32 %v7510_v53, %v950_v6  ;;  %v958_v13 = vmul.f32 -0.5, %v7532_v45  ;;  %v973_v41 = vadd.f32 1.0, %v7540_v5  ;;  %vm7591_vm12 = vcmp.lt.f32.partialorder %v943_v26, 0.0004427343 }
 0x2c9   :  { %v6377_v48 = vpop.eup %6376  ;;  %v811_v28 = vmax.f32 %v7425_v36, 0.0  ;;  %6392 = vlog2.f32 %v982_v58  ;;  %v968_v53 = vadd.f32 1.0, %v967_v15  ;;  %v985_v14 = vmul.f32 -0.5, %v7536_v60 }
 0x2ca   :  { %v6379_v35 = vpop.eup %6378  ;;  %v930_v29 = vmul.f32 0.6931472, %v6377_v48  ;;  %6394 = vlog2.f32 %v973_v41  ;;  %v942_v26 = vmul.f32 %v7516_v1, %v941_v33  ;;  %vm828_vm9 = vcmp.ne.f32.partialorder %v7412_v10, %v7412_v10 }
 0x2cb   :  { %v6381_v24 = vpop.eup %6380  ;;  %v921_v6 = vmul.f32 0.6931472, %v6379_v35  ;;  %vm7604_vm10 = vcmp.lt.f32.partialorder %v970_v3, 0.0004427343  ;;  %v959_v15 = vadd.f32 1.0, %v958_v13  ;;  %v976_v3 = vmul.f32 -0.5, %v7540_v5 }
 0x2cc   :  { %v7597_v20 = vpop.eup %6382  ;;  %v936_v48 = vsel %vm7546_vm3, %v933_v39, %v930_v29  ;;  %v948_v16 = vmul.f32 0.6931472, %v6381_v24  ;;  %v961_v30 = vand.u32 2147483647, %v7532_v45  ;;  %vm827_vm3 = vcmp.ne.f32.partialorder %v7425_v36, %v7425_v36 }
 0x2cd   :  { %v6385_v35 = vpop.eup %6384  ;;  %v1064_v58 = vadd.f32 %v936_v48, %v808_v0  ;;  %v927_v41 = vsel %vm7562_vm15, %v924_v32, %v921_v6  ;;  %v969_v32 = vmul.f32 %v7526_v12, %v968_v53  ;;  %v986_v33 = vadd.f32 1.0, %v985_v14 }
 0x2ce   :  { %v7611_v38 = vpop.eup %6386  ;;  %v1063_v24 = vadd.f32 %v927_v41, %v807_v46  ;;  %v954_v29 = vsel %vm7579_vm14, %v951_v2, %v948_v16  ;;  %v939_v1 = vmul.f32 0.6931472, %v6385_v35  ;;  %v1000_v2 = vadd.f32 1.0, %v7544_v37 }
 0x2cf   :  { %v6389_v39 = vpop.eup %6388  ;;  %v1080_v0 = vsel %vm824_vm4, %v7373_v52, %v1064_v58  ;;  %v1066_v11 = vadd.f32 %v954_v29, %v810_v8  ;;  %v960_v12 = vmul.f32 %v7532_v45, %v959_v15  ;;  %v988_v6 = vand.u32 2147483647, %v7536_v60 }
 0x2d0   :  { %1113 = vrot.lane.b32.xlu1 %v1080_v0, %s7034_s21  ;;  %v1079_v16 = vsel %vm823_vm0, %v7379_v55, %v1063_v24  ;;  %v945_v46 = vsel %vm7591_vm12, %v942_v26, %v939_v1  ;;  %v966_v49 = vmul.f32 0.6931472, %v6389_v39  ;;  %v6391_v13 = vpop.eup %6390  ;;  %v977_v48 = vadd.f32 1.0, %v976_v3 }
 0x2d1   :  { %1111 = vrot.lane.b32.xlu0 %v1079_v16, %s7034_s21  ;;  %v1082_v14 = vsel %vm826_vm13, %v7388_v59, %v1066_v11  ;;  %v1065_v8 = vadd.f32 %v945_v46, %v809_v9  ;;  %v957_v53 = vmul.f32 0.6931472, %v6391_v13  ;;  %6396 = vlog2.f32 %v1000_v2 }
 0x2d2   :  { %v972_v25 = vsel %vm7604_vm10, %v969_v32, %v966_v49  ;;  %vm962_vm12 = vcmp.lt.f32.partialorder %v961_v30, 0.0004427343  ;;  %v979_v58 = vand.u32 2147483647, %v7540_v5  ;;  %v814_v41 = vmax.f32 %v7439_v51, 0.0 }
 0x2d3   :  { %v1081_v26 = vsel %vm825_vm11, %v7393_v61, %v1065_v8  ;;  %v1068_v35 = vadd.f32 %v972_v25, %v812_v47  ;;  %v6393_v9 = vpop.eup %6392  ;;  %v963_v45 = vsel %vm962_vm12, %v960_v12, %v957_v53  ;;  %v987_v21 = vmul.f32 %v7536_v60, %v986_v33 }
 0x2d4   :  { %1117 = vrot.lane.b32.xlu1 %v1082_v14, %s7034_s21  ;;  %v991_v15 = vadd.f32 1.0, %v7552_v31  ;;  %v6395_v24 = vpop.eup %6394  ;;  %v1067_v47 = vadd.f32 %v963_v45, %v811_v28  ;;  %v984_v29 = vmul.f32 0.6931472, %v6393_v9  ;;  %v1003_v1 = vmul.f32 -0.5, %v7544_v37 }
 0x2d5   :  { %1115 = vrot.lane.b32.xlu0 %v1081_v26, %s7034_s21  ;;  %v1084_v30 = vsel %vm828_vm9, %v7412_v10, %v1068_v35  ;;  %vm989_vm10 = vcmp.lt.f32.partialorder %v988_v6, 0.0004427343  ;;  %v975_v3 = vmul.f32 0.6931472, %v6395_v24  ;;  %v978_v39 = vmul.f32 %v7540_v5, %v977_v48 }
 0x2d6   :  { %6398 = vlog2.f32 %v991_v15  ;;  %v1083_v60 = vsel %vm827_vm3, %v7425_v36, %v1067_v47  ;;  %v990_v0 = vsel %vm989_vm10, %v987_v21, %v984_v29  ;;  %v813_v11 = vmax.f32 %v7448_v7, 0.0 }
 0x2d7   :  { %vm980_vm11 = vcmp.lt.f32.partialorder %v979_v58, 0.0004427343  ;;  %6400 = vpow2.f32 %v7554_v56  ;;  %v1070_v28 = vadd.f32 %v990_v0, %v814_v41  ;;  %v994_v33 = vmul.f32 -0.5, %v7552_v31 }
 0x2d8   :  { %1121 = vrot.lane.b32.xlu1 %v1084_v30, %s7034_s21  ;;  %v981_v32 = vsel %vm980_vm11, %v978_v39, %v975_v3  ;;  %vm830_vm9 = vcmp.ne.f32.partialorder %v7439_v51, %v7439_v51  ;;  %v1004_v16 = vadd.f32 1.0, %v1003_v1  ;;  %v1018_v46 = vadd.f32 1.0, %v7557_v50 }
 0x2d9   :  { %1119 = vrot.lane.b32.xlu0 %v1083_v60, %s7034_s21  ;;  %v1069_v5 = vadd.f32 %v981_v32, %v813_v11  ;;  %v1086_v49 = vsel %vm830_vm9, %v7439_v51, %v1070_v28  ;;  %vm829_vm13 = vcmp.ne.f32.partialorder %v7448_v7, %v7448_v7  ;;  %v1006_v56 = vand.u32 2147483647, %v7544_v37 }
 0x2da   :  { %v1009_v2 = vadd.f32 1.0, %v7568_v43  ;;  %6402 = vlog2.f32 %v1018_v46  ;;  %v995_v8 = vadd.f32 1.0, %v994_v33  ;;  %v1005_v6 = vmul.f32 %v7544_v37, %v1004_v16 }
 0x2db   :  { %v1085_v13 = vsel %vm829_vm13, %v7448_v7, %v1069_v5  ;;  %v6397_v14 = vpop.eup %6396  ;;  %v1021_v25 = vmul.f32 -0.5, %v7557_v50  ;;  %v1036_v53 = vadd.f32 1.0, %v7575_v44  ;;  %v816_v48 = vmax.f32 %v7454_v54, 0.0 }
 0x2dc   :  { %1125 = vrot.lane.b32.xlu1 %v1086_v49, %s7034_s21  ;;  %6404 = vlog2.f32 %v1009_v2  ;;  %v1002_v12 = vmul.f32 0.6931472, %v6397_v14  ;;  %vm1007_vm14 = vcmp.lt.f32.partialorder %v1006_v56, 0.0004427343  ;;  %v997_v26 = vand.u32 2147483647, %v7552_v31 }
 0x2dd   :  { %1123 = vrot.lane.b32.xlu0 %v1085_v13, %s7034_s21  ;;  %v1012_v58 = vmul.f32 -0.5, %v7568_v43  ;;  %6406 = vlog2.f32 %v1036_v53  ;;  %vm832_vm15 = vcmp.ne.f32.partialorder %v7454_v54, %v7454_v54  ;;  %v996_v37 = vmul.f32 %v7552_v31, %v995_v8 }
 0x2de   :  { %v1008_v35 = vsel %vm1007_vm14, %v1005_v6, %v1002_v12  ;;  %v1024_v41 = vand.u32 2147483647, %v7557_v50  ;;  %v1022_v15 = vadd.f32 1.0, %v1021_v25  ;;  %v1039_v24 = vmul.f32 -0.5, %v7575_v44 }
 0x2df   :  { %v1072_v45 = vadd.f32 %v1008_v35, %v816_v48  ;;  %v1027_v30 = vadd.f32 1.0, %v7597_v20  ;;  %v815_v1 = vmax.f32 %v7458_v63, 0.0  ;;  %vm831_vm0 = vcmp.ne.f32.partialorder %v7458_v63, %v7458_v63 }
 0x2e0   :  { %v6399_v9 = vpop.eup %6398  ;;  %vm998_vm4 = vcmp.lt.f32.partialorder %v997_v26, 0.0004427343  ;;  %v818_v3 = vmax.f32 %v7468_v34, 0.0  ;;  %v1013_v39 = vadd.f32 1.0, %v1012_v58  ;;  %vm834_vm3 = vcmp.ne.f32.partialorder %v7468_v34, %v7468_v34 }
 0x2e1   :  { %v993_v21 = vmul.f32 0.6931472, %v6399_v9  ;;  %v7688_v47 = vpop.eup %6400  ;;  %v1088_v29 = vsel %vm832_vm15, %v7454_v54, %v1072_v45  ;;  %6408 = vlog2.f32 %v1027_v30  ;;  %v1015_v0 = vand.u32 2147483647, %v7568_v43 }
 0x2e2   :  { %1129 = vrot.lane.b32.xlu1 %v1088_v29, %s7034_s21  ;;  %v1054_v11 = vadd.f32 1.0, %v7611_v38  ;;  %v1023_v32 = vmul.f32 %v7557_v50, %v1022_v15  ;;  %vm7701_vm12 = vcmp.lt.f32.partialorder %v1024_v41, 0.0004427343  ;;  %v1040_v5 = vadd.f32 1.0, %v1039_v24 }
 0x2e3   :  { %v999_v31 = vsel %vm998_vm4, %v996_v37, %v993_v21  ;;  %v1045_v16 = vadd.f32 1.0, %v7688_v47  ;;  %v1030_v2 = vmul.f32 -0.5, %v7597_v20  ;;  %v1014_v13 = vmul.f32 %v7568_v43, %v1013_v39 }
 0x2e4   :  { %v1071_v60 = vadd.f32 %v999_v31, %v815_v1  ;;  %v6403_v28 = vpop.eup %6402  ;;  %6410 = vlog2.f32 %v1054_v11  ;;  %v1042_v14 = vand.u32 2147483647, %v7575_v44  ;;  %v817_v12 = vmax.f32 %v7475_v42, 0.0 }
 0x2e5   :  { %v1020_v56 = vmul.f32 0.6931472, %v6403_v28  ;;  %6412 = vlog2.f32 %v1045_v16  ;;  %vm833_vm10 = vcmp.ne.f32.partialorder %v7475_v42, %v7475_v42  ;;  %vm1016_vm11 = vcmp.lt.f32.partialorder %v1015_v0, 0.0004427343 }
 0x2e6   :  { %v6405_v46 = vpop.eup %6404  ;;  %v1087_v49 = vsel %vm831_vm0, %v7458_v63, %v1071_v60  ;;  %v1041_v48 = vmul.f32 %v7575_v44, %v1040_v5  ;;  %v1057_v26 = vmul.f32 -0.5, %v7611_v38  ;;  %v1031_v58 = vadd.f32 1.0, %v1030_v2 }
 0x2e7   :  { %1127 = vrot.lane.b32.xlu0 %v1087_v49, %s7034_s21  ;;  %v1011_v50 = vmul.f32 0.6931472, %v6405_v46  ;;  %v1026_v8 = vsel %vm7701_vm12, %v1023_v32, %v1020_v56  ;;  %v6407_v6 = vpop.eup %6406  ;;  %v1048_v9 = vmul.f32 -0.5, %v7688_v47  ;;  %v820_v37 = vmax.f32 %v7484_v62, 0.0  ;;  %v7750_v56 = vld [vmem:[%s10233_s4] sm:$0xff] }
 0x2e8   :  { %v1074_v25 = vadd.f32 %v1026_v8, %v818_v3  ;;  %v1038_v35 = vmul.f32 0.6931472, %v6407_v6  ;;  %vm1043_vm9 = vcmp.lt.f32.partialorder %v1042_v14, 0.0004427343  ;;  %v1033_v41 = vand.u32 2147483647, %v7597_v20  ;;  %5793 = vmatprep.mubr.f32.mxu0 %v7750_v56 }
 0x2e9   :  { %v1017_v53 = vsel %vm1016_vm11, %v1014_v13, %v1011_v50  ;;  %vm836_vm13 = vcmp.ne.f32.partialorder %v7484_v62, %v7484_v62  ;;  %v1058_v30 = vadd.f32 1.0, %v1057_v26  ;;  %v1032_v1 = vmul.f32 %v7597_v20, %v1031_v58 }
 0x2ea   :  { %v1073_v43 = vadd.f32 %v1017_v53, %v817_v12  ;;  %v1090_v45 = vsel %vm834_vm3, %v7468_v34, %v1074_v25  ;;  %v1044_v21 = vsel %vm1043_vm9, %v1041_v48, %v1038_v35  ;;  %v1060_v31 = vand.u32 2147483647, %v7611_v38  ;;  %v7775_v53 = vpop.permute.xlu0 %1177 }
 0x2eb   :  { %1133 = vrot.lane.b32.xlu1 %v1090_v45, %s7034_s21  ;;  %v6409_v15 = vpop.eup %6408  ;;  %v1076_v24 = vadd.f32 %v1044_v21, %v820_v37  ;;  %v1049_v3 = vadd.f32 1.0, %v1048_v9  ;;  %v819_v60 = vmax.f32 %v7498_v57, 0.0  ;;  %vm1034_vm14 = vcmp.lt.f32.partialorder %v1033_v41, 0.0004427343 }
 0x2ec   :  { %v1089_v44 = vsel %vm833_vm10, %v7475_v42, %v1073_v43  ;;  %v1029_v29 = vmul.f32 0.6931472, %v6409_v15  ;;  %v1051_v0 = vand.u32 2147483647, %v7688_v47  ;;  %vm835_vm15 = vcmp.ne.f32.partialorder %v7498_v57, %v7498_v57 }
 0x2ed   :  { %1131 = vrot.lane.b32.xlu0 %v1089_v44, %s7034_s21  ;;  %v1092_v39 = vsel %vm836_vm13, %v7484_v62, %v1076_v24  ;;  %v1059_v5 = vmul.f32 %v7611_v38, %v1058_v30  ;;  %v822_v16 = vmax.f32 %v7502_v40, 0.0  ;;  %vm1061_vm0 = vcmp.lt.f32.partialorder %v1060_v31, 0.0004427343 }
 0x2ee   :  { %v6411_v11 = vpop.eup %6410  ;;  %v1035_v28 = vsel %vm1034_vm14, %v1032_v1, %v1029_v29  ;;  %v1050_v49 = vmul.f32 %v7688_v47, %v1049_v3  ;;  %v821_v13 = vmax.f32 %v7521_v4, 0.0  ;;  %vm1052_vm4 = vcmp.lt.f32.partialorder %v1051_v0, 0.0004427343  ;;  %v7779_v26 = vpop.permute.xlu0 %1187 }
 0x2ef   :  { %1137 = vrot.lane.b32.xlu1 %v1092_v39, %s7034_s21  ;;  %v6413_v32 = vpop.eup %6412  ;;  %v1075_v33 = vadd.f32 %v1035_v28, %v819_v60  ;;  %v1056_v20 = vmul.f32 0.6931472, %v6411_v11  ;;  %vm838_vm3 = vcmp.ne.f32.partialorder %v7502_v40, %v7502_v40  ;;  %v7759_v8 = vsub.s32 3, %v7316_v17  ;;  %v7773_v17 = vpop.permute.xlu1 %1182 }
 0x2f0   :  { %v1047_v46 = vmul.f32 0.6931472, %v6413_v32  ;;  %vm837_vm12 = vcmp.ne.f32.partialorder %v7521_v4, %v7521_v4  ;;  %v5328_v58 = vmul.f32 -1.442695, %v7373_v52  ;;  %v5330_v37 = vmul.f32 -1.442695, %v7388_v59 }
 0x2f1   :  { %v1091_v2 = vsel %vm835_vm15, %v7498_v57, %v1075_v33  ;;  %v1062_v50 = vsel %vm1061_vm0, %v1059_v5, %v1056_v20  ;;  %v7769_v25 = vrot.slane %v7328_v23, %v7759_v8  ;;  %v5327_v23 = vmul.f32 -1.442695, %v7379_v55 }
 0x2f2   :  { %1135 = vrot.lane.b32.xlu0 %v1091_v2, %s7034_s21  ;;  %v1078_v38 = vadd.f32 %v1062_v50, %v822_v16  ;;  %v1053_v14 = vsel %vm1052_vm4, %v1050_v49, %v1047_v46  ;;  %v7783_v35 = vpop.permute.xlu0 %1197  ;;  %6414 = vpow2.f32 %v5328_v58  ;;  %v5329_v41 = vmul.f32 -1.442695, %v7393_v61 }
 0x2f3   :  { %v1077_v47 = vadd.f32 %v1053_v14, %v821_v13  ;;  %v7777_v48 = vpop.permute.xlu1 %1192  ;;  %10362 = vst [vmem:[#allocation25_spill] sm:$0xff] %v7783_v35  ;;  %6416 = vpow2.f32 %v5327_v23  ;;  %v5332_v44 = vmul.f32 -1.442695, %v7412_v10  ;;  %v5331_v52 = vmul.f32 -1.442695, %v7425_v36 }
 0x2f4   :  { %v1094_v12 = vsel %vm838_vm3, %v7502_v40, %v1078_v38  ;;  %6418 = vpow2.f32 %v5330_v37  ;;  %v5334_v55 = vmul.f32 -1.442695, %v7439_v51  ;;  %v5333_v24 = vmul.f32 -1.442695, %v7448_v7 }
 0x2f5   :  { %1141 = vrot.lane.b32.xlu1 %v1094_v12, %s7034_s21  ;;  %v1093_v6 = vsel %vm837_vm12, %v7521_v4, %v1077_v47  ;;  %6420 = vpow2.f32 %v5329_v41  ;;  %v5336_v3 = vmul.f32 -1.442695, %v7454_v54  ;;  %v5335_v28 = vmul.f32 -1.442695, %v7458_v63 }
 0x2f6   :  { %1139 = vrot.lane.b32.xlu0 %v1093_v6, %s7034_s21  ;;  %v7789_v45 = vpop.permute.xlu0 %1207  ;;  %6422 = vpow2.f32 %v5332_v44  ;;  %v5338_v16 = vmul.f32 -1.442695, %v7468_v34  ;;  %v5337_v49 = vmul.f32 -1.442695, %v7475_v42  ;;  %v5340_v14 = vmul.f32 -1.442695, %v7484_v62 }
 0x2f7   :  { %v7781_v43 = vpop.permute.xlu1 %1202  ;;  %10364 = vst [vmem:[#allocation27_spill] sm:$0xff] %v7789_v45  ;;  %6424 = vpow2.f32 %v5331_v52  ;;  %v5339_v23 = vmul.f32 -1.442695, %v7498_v57 }
 0x2f8   :  { %10361 = vst [vmem:[#allocation24_spill] sm:$0xff] %v7781_v43  ;;  %6426 = vpow2.f32 %v5334_v55 }
 0x2f9   :  { %6428 = vpow2.f32 %v5333_v24 }
 0x2fa   :  { %1355 = vrot.lane.b32.xlu0 %v7769_v25, %s7034_s21  ;;  %v7797_v15 = vpop.permute.xlu0 %1217 }
 0x2fb   :  { %v7787_v9 = vpop.permute.xlu1 %1212  ;;  %10366 = vst [vmem:[#allocation29_spill] sm:$0xff] %v7797_v15 }
 0x2fc   :  { %10363 = vst [vmem:[#allocation26_spill] sm:$0xff] %v7787_v9  ;;  %v6415_v59 = vpop.eup %6414 }
 0x2fd   :  { %v6417_v30 = vpop.eup %6416  ;;  %v760_v10 = vadd.f32 1.0, %v6415_v59 }
 0x2fe   :  { %v7803_v61 = vpop.permute.xlu0 %1227  ;;  %v6419_v1 = vpop.eup %6418  ;;  %v759_v31 = vadd.f32 1.0, %v6417_v30 }
 0x2ff   :  { %v7794_v21 = vpop.permute.xlu1 %1222  ;;  %10368 = vst [vmem:[#allocation31_spill] sm:$0xff] %v7803_v61  ;;  %v6421_v36 = vpop.eup %6420  ;;  %6430 = vrcp.f32 %v760_v10  ;;  %v762_v51 = vadd.f32 1.0, %v6419_v1  ;;  %v5342_v10 = vmul.f32 -1.442695, %v7502_v40 }
 0x300   :  { %10365 = vst [vmem:[#allocation28_spill] sm:$0xff] %v7794_v21  ;;  %v6423_v60 = vpop.eup %6422  ;;  %6432 = vrcp.f32 %v759_v31  ;;  %v761_v0 = vadd.f32 1.0, %v6421_v36  ;;  %v5341_v36 = vmul.f32 -1.442695, %v7521_v4 }
 0x301   :  { %v6425_v11 = vpop.eup %6424  ;;  %6434 = vpow2.f32 %v5336_v3  ;;  %v764_v32 = vadd.f32 1.0, %v6423_v60 }
 0x302   :  { %v7808_v7 = vpop.permute.xlu0 %1237  ;;  %6436 = vrcp.f32 %v762_v51  ;;  %v6427_v33 = vpop.eup %6426  ;;  %v763_v20 = vadd.f32 1.0, %v6425_v11 }
 0x303   :  { %v7801_v29 = vpop.permute.xlu1 %1232  ;;  %10370 = vst [vmem:[#allocation33_spill] sm:$0xff] %v7808_v7  ;;  %6438 = vrcp.f32 %v761_v0  ;;  %v6429_v5 = vpop.eup %6428  ;;  %v766_v2 = vadd.f32 1.0, %v6427_v33 }
 0x304   :  { %10367 = vst [vmem:[#allocation30_spill] sm:$0xff] %v7801_v29  ;;  %6440 = vpow2.f32 %v5335_v28  ;;  %v765_v50 = vadd.f32 1.0, %v6429_v5 }
 0x305   :  { %6442 = vrcp.f32 %v764_v32 }
 0x306   :  { %v7814_v46 = vpop.permute.xlu0 %1247  ;;  %6444 = vrcp.f32 %v763_v20 }
 0x307   :  { %v7806_v39 = vpop.permute.xlu1 %1242  ;;  %10372 = vst [vmem:[#allocation35_spill] sm:$0xff] %v7814_v46  ;;  %6446 = vpow2.f32 %v5338_v16 }
 0x308   :  { %10369 = vst [vmem:[#allocation32_spill] sm:$0xff] %v7806_v39  ;;  %6448 = vpow2.f32 %v5337_v49 }
 0x309   :  { %v6431_v63 = vpop.eup %6430  ;;  %6450 = vrcp.f32 %v766_v2 }
 0x30a   :  { %v6433_v38 = vpop.eup %6432  ;;  %6452 = vrcp.f32 %v765_v50 }
 0x30b   :  { %v7811_v54 = vpop.permute.xlu1 %1252  ;;  %v6435_v6 = vpop.eup %6434  ;;  %6454 = vpow2.f32 %v5340_v14 }
 0x30c   :  { %10371 = vst [vmem:[#allocation34_spill] sm:$0xff] %v7811_v54  ;;  %v6437_v42 = vpop.eup %6436  ;;  %v768_v24 = vadd.f32 1.0, %v6435_v6  ;;  %6456 = vpow2.f32 %v5339_v23 }
 0x30d   :  { %v6439_v44 = vpop.eup %6438 }
 0x30e   :  { %v6441_v62 = vpop.eup %6440  ;;  %6458 = vrcp.f32 %v768_v24 }
 0x30f   :  { %v6443_v31 = vpop.eup %6442  ;;  %v767_v11 = vadd.f32 1.0, %v6441_v62  ;;  %6460 = vpow2.f32 %v5342_v10 }
 0x310   :  { %v6445_v51 = vpop.eup %6444  ;;  %6462 = vpow2.f32 %v5341_v36 }
 0x311   :  { %v6447_v28 = vpop.eup %6446  ;;  %6464 = vrcp.f32 %v767_v11 }
 0x312   :  { %v6449_v40 = vpop.eup %6448 }
 0x313   :  { %v6451_v5 = vpop.eup %6450 }
 0x314   :  { %v6453_v49 = vpop.eup %6452 }
 0x315   :  { %v6455_v14 = vpop.eup %6454 }
 0x342   :  { %v1114_v13 = vpop.permute.xlu1 %1113 }
 0x343   :  { %v1160_v47 = vmul.f32 %v6431_v63, %v1114_v13  ;;  %v1112_v12 = vpop.permute.xlu0 %1111 }
 0x344   :  { %v1159_v58 = vmul.f32 %v6433_v38, %v1112_v12  ;;  %v770_v38 = vadd.f32 1.0, %v6447_v28  ;;  %v769_v12 = vadd.f32 1.0, %v6449_v40 }
 0x345   :  { %v1256_v34 = vmul.f32 %v7773_v17, %v1160_v47 }
 0x346   :  { %v1255_v37 = vmul.f32 %v7775_v53, %v1159_v58  ;;  %v1118_v41 = vpop.permute.xlu1 %1117  ;;  %v6457_v58 = vpop.eup %6456  ;;  %6466 = vrcp.f32 %v770_v38 }
 0x347   :  { %v1162_v52 = vmul.f32 %v6437_v42, %v1118_v41  ;;  %v1116_v55 = vpop.permute.xlu0 %1115  ;;  %v772_v42 = vadd.f32 1.0, %v6455_v14  ;;  %v6459_v23 = vpop.eup %6458  ;;  %6468 = vrcp.f32 %v769_v12 }
 0x348   :  { %v1161_v59 = vmul.f32 %v6439_v44, %v1116_v55  ;;  %v6135_v30 = vpack.c.bf16 %v1256_v34, %v1255_v37  ;;  %v6461_v44 = vpop.eup %6460  ;;  %v771_v55 = vadd.f32 1.0, %v6457_v58 }
 0x349   :  { %v1258_v1 = vmul.f32 %v7777_v48, %v1162_v52  ;;  %v6463_v52 = vpop.eup %6462  ;;  %6470 = vrcp.f32 %v772_v42  ;;  %v774_v10 = vadd.f32 1.0, %v6461_v44  ;;  %v1402_v44 = vld [vmem:[%s10237_s8 + $0x80] sm:$0xff] }
 0x34a   :  { %v1257_v57 = vmul.f32 %v7779_v26, %v1161_v59  ;;  %6136 = vmatprep.subr.bf16.mxu0 %v6135_v30  ;;  %v1122_v3 = vpop.permute.xlu1 %1121  ;;  %v6465_v24 = vpop.eup %6464  ;;  %6472 = vrcp.f32 %v771_v55  ;;  %v1403_v55 = vld [vmem:[%s10237_s8 + $0x88] sm:$0xff] }
 0x34b   :  { %v1164_v60 = vmul.f32 %v6443_v31, %v1122_v3  ;;  %6138 = vmatpush3.bf16.msra.mxu0 %v6135_v30  ;;  %v1120_v0 = vpop.permute.xlu0 %1119  ;;  %v773_v31 = vadd.f32 1.0, %v6463_v52  ;;  %6474 = vrcp.f32 %v774_v10  ;;  %v1398_v10 = vld [vmem:[%s10237_s8 + $0x60] sm:$0xff] }
 0x34c   :  { %v1163_v32 = vmul.f32 %v6445_v51, %v1120_v0  ;;  %v6139_v33 = vpack.c.bf16 %v1258_v1, %v1257_v57 }
 0x34d   :  { %v1260_v20 = vmul.f32 %v7781_v43, %v1164_v60  ;;  %6476 = vrcp.f32 %v773_v31 }
 0x34e   :  { %v1259_v4 = vmul.f32 %v7783_v35, %v1163_v32  ;;  %6140 = vmatprep.subr.bf16.mxu0 %v6139_v33  ;;  %v1126_v16 = vpop.permute.xlu1 %1125 }
 0x34f   :  { %v1166_v2 = vmul.f32 %v6451_v5, %v1126_v16  ;;  %6142 = vmatpush3.bf16.msra.mxu0 %v6139_v33  ;;  %v1124_v50 = vpop.permute.xlu0 %1123 }
 0x350   :  { %v1165_v63 = vmul.f32 %v6453_v49, %v1124_v50  ;;  %v6143_v13 = vpack.c.bf16 %v1260_v20, %v1259_v4  ;;  %v6467_v36 = vpop.eup %6466 }
 0x351   :  { %v1262_v47 = vmul.f32 %v7787_v9, %v1166_v2  ;;  %v6469_v51 = vpop.eup %6468 }
 0x352   :  { %v1261_v6 = vmul.f32 %v7789_v45, %v1165_v63  ;;  %6144 = vmatprep.subr.bf16.mxu0 %v6143_v13 }
 0x353   :  { %6146 = vmatpush3.bf16.msra.mxu0 %v6143_v13  ;;  %v6471_v32 = vpop.eup %6470 }
 0x354   :  { %v6147_v34 = vpack.c.bf16 %v1262_v47, %v1261_v6  ;;  %v1130_v37 = vpop.permute.xlu1 %1129  ;;  %v6473_v4 = vpop.eup %6472 }
 0x355   :  { %v1168_v41 = vmul.f32 %v6459_v23, %v1130_v37  ;;  %v6475_v50 = vpop.eup %6474  ;;  %v160_v23 = vld [vmem:[%s10233_s4 + $0x8] sm:$0xff]  ;;  %v1400_v37 = vld [vmem:[%s10237_s8 + $0x70] sm:$0xff] }
 0x356   :  { %6148 = vmatprep.subr.bf16.mxu0 %v6147_v34 }
 0x357   :  { %6150 = vmatpush3.bf16.msra.mxu0 %v6147_v34  ;;  %v1264_v59 = vmul.f32 %v7794_v21, %v1168_v41  ;;  %v6477_v38 = vpop.eup %6476  ;;  %v1401_v41 = vld [vmem:[%s10237_s8 + $0x78] sm:$0xff] }
 0x358   :  { %v6175_v52 = vpack.c.bf16 %v1401_v41, %v1400_v37 }
 0x359   :  { %v1128_v62 = vpop.permute.xlu0 %1127 }
 0x35a   :  { %v1167_v30 = vmul.f32 %v6465_v24, %v1128_v62  ;;  %v1396_v24 = vld [vmem:[%s10237_s8 + $0x50] sm:$0xff]  ;;  %v1397_v62 = vld [vmem:[%s10237_s8 + $0x58] sm:$0xff]  ;;  %6176 = vmatprep.subr.bf16.mxu1 %v6175_v52 }
 0x35b   :  { %6178 = vmatpush3.bf16.msra.mxu1 %v6175_v52 }
 0x35c   :  { %v1263_v1 = vmul.f32 %v7797_v15, %v1167_v30  ;;  %v6167_v30 = vpack.c.bf16 %v1397_v62, %v1396_v24 }
 0x35d   :  { %v1134_v57 = vpop.permute.xlu1 %1133 }
 0x35e   :  { %v6151_v3 = vpack.c.bf16 %v1264_v59, %v1263_v1  ;;  %v1170_v60 = vmul.f32 %v6467_v36, %v1134_v57  ;;  %v6179_v59 = vpack.c.bf16 %v1403_v55, %v1402_v44  ;;  %v1399_v1 = vld [vmem:[%s10237_s8 + $0x68] sm:$0xff] }
 0x35f   :  { %v1132_v0 = vpop.permute.xlu0 %1131  ;;  %v6171_v31 = vpack.c.bf16 %v1399_v1, %v1398_v10 }
 0x360   :  { %v1169_v11 = vmul.f32 %v6469_v51, %v1132_v0  ;;  %6152 = vmatprep.subr.bf16.mxu0 %v6151_v3  ;;  %v1266_v28 = vmul.f32 %v7801_v29, %v1170_v60  ;;  %6180 = vmatprep.subr.bf16.mxu1 %v6179_v59 }
 0x361   :  { %6154 = vmatpush3.bf16.msra.mxu0 %v6151_v3  ;;  %v1138_v40 = vpop.permute.xlu1 %1137  ;;  %6182 = vmatpush3.bf16.msra.mxu1 %v6179_v59  ;;  %v6958_v59 = vld [vmem:[%s10230_s1] sm:$0xff] }
 0x362   :  { %v1265_v33 = vmul.f32 %v7803_v61, %v1169_v11  ;;  %v1172_v20 = vmul.f32 %v6471_v32, %v1138_v40 }
 0x364   :  { %v6155_v5 = vpack.c.bf16 %v1266_v28, %v1265_v33  ;;  %v1136_v16 = vpop.permute.xlu0 %1135  ;;  %v1268_v49 = vmul.f32 %v7806_v39, %v1172_v20 }
 0x365   :  { %v1171_v2 = vmul.f32 %v6473_v4, %v1136_v16 }
 0x366   :  { %6156 = vmatprep.subr.bf16.mxu0 %v6155_v5 }
 0x367   :  { %6158 = vmatpush3.bf16.msra.mxu0 %v6155_v5  ;;  %v1267_v63 = vmul.f32 %v7808_v7, %v1171_v2  ;;  %v1142_v13 = vpop.permute.xlu1 %1141 }
 0x368   :  { %v1174_v14 = vmul.f32 %v6475_v50, %v1142_v13  ;;  %v1140_v47 = vpop.permute.xlu0 %1139 }
 0x369   :  { %v1173_v12 = vmul.f32 %v6477_v38, %v1140_v47  ;;  %v6159_v6 = vpack.c.bf16 %v1268_v49, %v1267_v63 }
 0x36a   :  { %v1270_v58 = vmul.f32 %v7811_v54, %v1174_v14 }
 0x36b   :  { %v1269_v34 = vmul.f32 %v7814_v46, %v1173_v12  ;;  %6160 = vmatprep.subr.bf16.mxu0 %v6159_v6 }
 0x36c   :  { %6162 = vmatpush3.bf16.msra.mxu0 %v6159_v6  ;;  %v1356_v60 = vpop.permute.xlu0 %1355 }
 0x36d   :  { %v6163_v42 = vpack.c.bf16 %v1270_v58, %v1269_v34 }
 0x36f   :  { %6164 = vmatprep.subr.bf16.mxu0 %v6163_v42 }
 0x370   :  { %6166 = vmatpush3.bf16.msra.mxu0 %v6163_v42 }
 0x371   :  { %6168 = vmatprep.subr.bf16.mxu0 %v6167_v30 }
 0x373   :  { %5794 = vmatmul.mubr.f32.vlgmr.msra.gmra.mrb[4].mxu0 %v160_v23 }
 0x374   :  { %6170 = vmatpush3.bf16.msra.mxu0 %v6167_v30 }
 0x375   :  { %6172 = vmatprep.subr.bf16.mxu0 %v6171_v31 }
 0x378   :  { %6174 = vmatpush3.bf16.msra.mxu0 %v6171_v31 }
 0x446   :  { %v5795_v36 = vpop.f32.mrb[4].mxu0 }
 0x447   :  { %v1351_v57 = vmul.f32 %v5795_v36, %v7769_v25  ;;  %v1337_v3 = vpop.f32.mrb[5].mxu0 }
 0x448   :  { %v1350_v51 = vmul.f32 %v7769_v25, %v1337_v3  ;;  %v1404_v3 = vld [vmem:[%s10237_s8 + $0x90] sm:$0xff] }
 0x449   :  { %v1353_v0 = vadd.f32 %v1351_v57, %v7162_v19 }
 0x44a   :  { %v1352_v11 = vadd.f32 %v1350_v51, %v7160_v18  ;;  %v1405_v51 = vld [vmem:[%s10237_s8 + $0x98] sm:$0xff] }
 0x44b   :  { %v1359_v28 = vadd.f32 %v1356_v60, %v1353_v0  ;;  %v6960_v0 = vld [vmem:[%s10230_s1 + $0x10] sm:$0xff] }
 0x44c   :  { %v1358_v32 = vadd.f32 %v1356_v60, %v1352_v11  ;;  %v6191_v60 = vpack.c.bf16 %v1405_v51, %v1404_v3  ;;  %v6961_v11 = vld [vmem:[%s10230_s1 + $0x18] sm:$0xff] }
 0x44d   :  { %v1367_v33 = vand.u32 2147483647, %v1359_v28  ;;  %v1361_v34 = vmax.f32 %v1359_v28, 0.0  ;;  %vm1363_vm13 = vcmp.ne.f32.partialorder %v1359_v28, %v1359_v28 }
 0x44e   :  { %v1366_v40 = vand.u32 2147483647, %v1358_v32  ;;  %v1360_v37 = vmax.f32 %v1358_v32, 0.0  ;;  %vm1362_vm9 = vcmp.ne.f32.partialorder %v1358_v32, %v1358_v32 }
 0x44f   :  { %v1369_v20 = vsub.f32 0.0, %v1367_v33  ;;  %v6964_v33 = vld [vmem:[%s10230_s1 + $0x30] sm:$0xff] }
 0x450   :  { %v1368_v5 = vsub.f32 0.0, %v1366_v40  ;;  %v6965_v40 = vld [vmem:[%s10230_s1 + $0x38] sm:$0xff] }
 0x451   :  { %v1372_v4 = vmul.f32 1.442695, %v1369_v20  ;;  %v6966_v20 = vld [vmem:[%s10230_s1 + $0x40] sm:$0xff] }
 0x452   :  { %v1370_v16 = vmul.f32 1.442695, %v1368_v5  ;;  %v6967_v5 = vld [vmem:[%s10230_s1 + $0x48] sm:$0xff] }
 0x453   :  { %6478 = vpow2.f32 %v1372_v4  ;;  %v6968_v4 = vld [vmem:[%s10230_s1 + $0x50] sm:$0xff] }
 0x454   :  { %6480 = vpow2.f32 %v1370_v16  ;;  %v6969_v16 = vld [vmem:[%s10230_s1 + $0x58] sm:$0xff] }
 0x45d   :  { %v6479_v49 = vpop.eup %6478 }
 0x45e   :  { %v6481_v2 = vpop.eup %6480  ;;  %v1383_v50 = vadd.f32 1.0, %v6479_v49  ;;  %v1386_v25 = vmul.f32 -0.5, %v6479_v49  ;;  %v1389_v38 = vand.u32 2147483647, %v6479_v49 }
 0x45f   :  { %v1374_v63 = vadd.f32 1.0, %v6481_v2  ;;  %v1377_v19 = vmul.f32 -0.5, %v6481_v2  ;;  %v1380_v14 = vand.u32 2147483647, %v6481_v2 }
 0x460   :  { %6482 = vlog2.f32 %v1383_v50  ;;  %v1387_v13 = vadd.f32 1.0, %v1386_v25  ;;  %vm1390_vm10 = vcmp.lt.f32.partialorder %v1389_v38, 0.0004427343  ;;  %v6972_v50 = vld [vmem:[%s10230_s1 + $0x70] sm:$0xff]  ;;  %v7954_v25 = vld [vmem:[%s10238_s9 + $0x8] sm:$0xff] }
 0x461   :  { %6484 = vlog2.f32 %v1374_v63  ;;  %v1378_v18 = vadd.f32 1.0, %v1377_v19  ;;  %vm1381_vm11 = vcmp.lt.f32.partialorder %v1380_v14, 0.0004427343  ;;  %v6973_v63 = vld [vmem:[%s10230_s1 + $0x78] sm:$0xff] }
 0x462   :  { %v1388_v58 = vmul.f32 %v6479_v49, %v1387_v13  ;;  %v6970_v49 = vld [vmem:[%s10230_s1 + $0x60] sm:$0xff]  ;;  %v7958_v13 = vrot.slane %v7954_v25, %v7323_v22 }
 0x463   :  { %v1379_v23 = vmul.f32 %v6481_v2, %v1378_v18  ;;  %v6971_v2 = vld [vmem:[%s10230_s1 + $0x68] sm:$0xff] }
 0x46a   :  { %v6483_v47 = vpop.eup %6482 }
 0x46b   :  { %v6485_v12 = vpop.eup %6484  ;;  %v1385_v6 = vmul.f32 0.6931472, %v6483_v47  ;;  %v7963_v47 = vrot.slane %v7954_v25, %v7337_v27 }
 0x46c   :  { %v1376_v42 = vmul.f32 0.6931472, %v6485_v12 }
 0x46d   :  { %v1391_v41 = vsel %vm1390_vm10, %v1388_v58, %v1385_v6  ;;  %v10375_v58 = vld [vmem:[#allocation13_spill] sm:$0xff] }
 0x46e   :  { %v1382_v44 = vsel %vm1381_vm11, %v1379_v23, %v1376_v42  ;;  %v1393_v52 = vadd.f32 %v1391_v41, %v1361_v34  ;;  %v7968_v34 = vrot.slane %v7954_v25, %v10375_v58  ;;  %v10398_v58 = vld [vmem:[#allocation21_spill] sm:$0xff] }
 0x46f   :  { %v1392_v55 = vadd.f32 %v1382_v44, %v1360_v37 }
 0x470   :  { %v7874_v62 = vsel %vm1363_vm13, %v1359_v28, %v1393_v52  ;;  %v6962_v28 = vld [vmem:[%s10230_s1 + $0x20] sm:$0xff]  ;;  %vm10399_vm13 = vcmp.eq.s32.totalorder %v10398_v58, 1 }
 0x471   :  { %v7868_v24 = vsel %vm1362_vm9, %v1358_v32, %v1392_v55  ;;  %10374 = vst [vmem:[#allocation37_spill] sm:$0xff] %v7874_v62  ;;  %v6963_v32 = vld [vmem:[%s10230_s1 + $0x28] sm:$0xff] }
 0x472   :  { %10373 = vst [vmem:[#allocation36_spill] sm:$0xff] %v7868_v24  ;;  %5804 = vmatprep.mubr.msk.f32.mxu0 %vm204_vm1, %v7868_v24  ;;  %5815 = vmatprep.mubr.msk.f32.mxu1 %vm204_vm1, %v7868_v24 }
 0x473   :  { %5805 = vmatmul.mubr.msk.f32.vlgmr.msra.gmra.mrb[6].mxu0 %vm204_vm1, %v7874_v62  ;;  %5816 = vmatmul.mubr.msk.f32.vlgmr.msra.gmra.mrb[18].mxu1 %vm204_vm1, %v7874_v62 }
 0x474   :  { %5830 = vmatprep.mubr.msk.f32.mxu0 %vm361_vm2, %v6958_v59  ;;  %5886 = vmatprep.mubr.f32.mxu1 %v7750_v56  ;;  %v6959_v56 = vld [vmem:[%s10230_s1 + $0x8] sm:$0xff] }
 0x546   :  { %v5806_v30 = vpop.f32.mrb[6].mxu0  ;;  %v5817_v10 = vpop.f32.mrb[18].mxu1 }
 0x547   :  { %v1479_v1 = vpop.f32.mrb[7].mxu0  ;;  %v1554_v31 = vpop.f32.mrb[19].mxu1 }
 0x548   :  { %v6183_v36 = vpack.c.bf16 %v5806_v30, %v1479_v1  ;;  %v6187_v57 = vpack.c.bf16 %v5817_v10, %v1554_v31 }
 0x54a   :  { %6184 = vmatprep.subr.bf16.mxu0 %v6183_v36 }
 0x54b   :  { %6186 = vmatpush3.bf16.msra.mxu0 %v6183_v36 }
 0x54c   :  { %6188 = vmatprep.subr.bf16.mxu0 %v6187_v57 }
 0x54f   :  { %6190 = vmatpush3.bf16.msra.mxu0 %v6187_v57 }
 0x550   :  { %6192 = vmatprep.subr.bf16.mxu0 %v6191_v60 }
 0x553   :  { %6194 = vmatpush3.bf16.msra.mxu0 %v6191_v60 }
 0x556   :  { %5831 = vmatmul.mubr.msk.f32.vlgmr.msra.gmra.mrb[8].mxu0 %vm361_vm2, %v6959_v56 }
 0x557   :  { %5833 = vmatprep.mubr.msk.f32.mxu0 %vm361_vm2, %v6960_v0 }
 0x55a   :  { %5834 = vmatmul.mubr.msk.f32.gmra.mrb[10].mxu0 %vm361_vm2, %v6961_v11 }
 0x55b   :  { %5836 = vmatprep.mubr.msk.f32.mxu0 %vm361_vm2, %v6962_v28  ;;  %v10386_v28 = vld [vmem:[#allocation15_spill] sm:$0xff] }
 0x55c   :  { %vm10387_vm4 = vcmp.eq.s32.totalorder %v10386_v28, 1  ;;  %v10396_v28 = vld [vmem:[#allocation20_spill] sm:$0xff] }
 0x55d   :  { %vm10397_vm9 = vcmp.eq.s32.totalorder %v10396_v28, 1 }
 0x55e   :  { %5837 = vmatmul.mubr.msk.f32.gmra.mrb[12].mxu0 %vm361_vm2, %v6963_v32 }
 0x55f   :  { %5839 = vmatprep.mubr.msk.f32.mxu0 %vm361_vm2, %v6964_v33 }
 0x562   :  { %5840 = vmatmul.mubr.msk.f32.gmra.mrb[14].mxu0 %vm361_vm2, %v6965_v40 }
 0x563   :  { %5842 = vmatprep.mubr.msk.f32.mxu0 %vm361_vm2, %v6966_v20 }
 0x566   :  { %5843 = vmatmul.mubr.msk.f32.gmra.mrb[16].mxu0 %vm361_vm2, %v6967_v5 }
 0x567   :  { %5845 = vmatprep.mubr.msk.f32.mxu0 %vm361_vm2, %v6968_v4 }
 0x56a   :  { %5846 = vmatmul.mubr.msk.f32.gmra.mrb[18].mxu0 %vm361_vm2, %v6969_v16 }
 0x56b   :  { %5848 = vmatprep.mubr.msk.f32.mxu0 %vm361_vm2, %v6970_v49 }
 0x56e   :  { %5849 = vmatmul.mubr.msk.f32.gmra.mrb[20].mxu0 %vm361_vm2, %v6971_v2 }
 0x56f   :  { %5851 = vmatprep.mubr.msk.f32.mxu0 %vm361_vm2, %v6972_v50 }
 0x572   :  { %5852 = vmatmul.mubr.msk.f32.gmra.mrb[22].mxu0 %vm361_vm2, %v6973_v63 }
 0x629   :  { %v5832_v19 = vpop.f32.mrb[8].mxu0 }
 0x62a   :  { %v1629_v18 = vpop.f32.mrb[9].mxu0  ;;  %v1713_v14 = vmul.f32 %v5832_v19, %v7958_v13  ;;  %v1753_v55 = vadd.f32 %v5832_v19, %v7968_v34 }
 0x62b   :  { %v1712_v6 = vmul.f32 %v7958_v13, %v1629_v18  ;;  %v1752_v30 = vadd.f32 %v7968_v34, %v1629_v18 }
 0x62c   :  { %v1733_v41 = vadd.f32 %v7963_v47, %v1713_v14 }
 0x62d   :  { %v5835_v38 = vpop.f32.mrb[10].mxu0  ;;  %v1732_v52 = vadd.f32 %v7963_v47, %v1712_v6 }
 0x62e   :  { %v1639_v12 = vpop.f32.mrb[11].mxu0  ;;  %v1715_v42 = vmul.f32 %v5835_v38, %v7958_v13  ;;  %v7981_v57 = vsel %vm680_vm5, %v1733_v41, %v1753_v55  ;;  %v1755_v3 = vadd.f32 %v5835_v38, %v7968_v34 }
 0x62f   :  { %v1714_v23 = vmul.f32 %v7958_v13, %v1639_v12  ;;  %v7986_v56 = vsel %vm679_vm6, %v1732_v52, %v1752_v30  ;;  %v1754_v0 = vadd.f32 %v7968_v34, %v1639_v12  ;;  %v1929_v33 = vand.u32 2147483647, %v7981_v57  ;;  %v10380_v12 = vld [vmem:[#allocation10_spill] sm:$0xff] }
 0x630   :  { %v1735_v59 = vadd.f32 %v7963_v47, %v1715_v42  ;;  %v1928_v16 = vand.u32 2147483647, %v7986_v56  ;;  %vm10381_vm14 = vcmp.eq.s32.totalorder %v10380_v12, 1 }
 0x631   :  { %v5838_v37 = vpop.f32.mrb[12].mxu0  ;;  %v1734_v10 = vadd.f32 %v7963_v47, %v1714_v23  ;;  %v1945_v14 = vsub.f32 0.0, %v1929_v33 }
 0x632   :  { %v1649_v44 = vpop.f32.mrb[13].mxu0  ;;  %v1717_v1 = vmul.f32 %v5838_v37, %v7958_v13  ;;  %v7992_v32 = vsel %vm682_vm7, %v1735_v59, %v1755_v3  ;;  %v1757_v63 = vadd.f32 %v5838_v37, %v7968_v34  ;;  %v1944_v52 = vsub.f32 0.0, %v1928_v16 }
 0x633   :  { %v1716_v11 = vmul.f32 %v7958_v13, %v1649_v44  ;;  %v7997_v20 = vsel %vm681_vm8, %v1734_v10, %v1754_v0  ;;  %v1931_v50 = vand.u32 2147483647, %v7992_v32  ;;  %v1756_v42 = vadd.f32 %v7968_v34, %v1649_v44  ;;  %v10382_v10 = vld [vmem:[#allocation12_spill] sm:$0xff] }
 0x634   :  { %v1737_v5 = vadd.f32 %v7963_v47, %v1717_v1  ;;  %v1930_v18 = vand.u32 2147483647, %v7997_v20  ;;  %vm10383_vm15 = vcmp.eq.s32.totalorder %v10382_v10, 1  ;;  %v1962_v33 = vmul.f32 1.442695, %v1945_v14 }
 0x635   :  { %v5841_v31 = vpop.f32.mrb[14].mxu0  ;;  %v1736_v19 = vadd.f32 %v7963_v47, %v1716_v11  ;;  %v1947_v30 = vsub.f32 0.0, %v1931_v50  ;;  %v1960_v50 = vmul.f32 1.442695, %v1944_v52  ;;  %v1883_v22 = vmax.f32 %v7992_v32, 0.0 }
 0x636   :  { %v1659_v51 = vpop.f32.mrb[15].mxu0  ;;  %v1719_v49 = vmul.f32 %v5841_v31, %v7958_v13  ;;  %v8009_v6 = vsel %vm10381_vm14, %v1737_v5, %v1757_v63  ;;  %v1946_v3 = vsub.f32 0.0, %v1930_v18  ;;  %v1759_v11 = vadd.f32 %v5841_v31, %v7968_v34 }
 0x637   :  { %v1718_v38 = vmul.f32 %v7958_v13, %v1659_v51  ;;  %v8017_v1 = vsel %vm10383_vm15, %v1736_v19, %v1756_v42  ;;  %v1933_v0 = vand.u32 2147483647, %v8009_v6  ;;  %v10384_v19 = vld [vmem:[#allocation14_spill] sm:$0xff]  ;;  %v1758_v42 = vadd.f32 %v7968_v34, %v1659_v51  ;;  %v10390_v51 = vld [vmem:[#allocation17_spill] sm:$0xff] }
 0x638   :  { %v1739_v55 = vadd.f32 %v7963_v47, %v1719_v49  ;;  %v1932_v10 = vand.u32 2147483647, %v8017_v1  ;;  %vm10385_vm0 = vcmp.eq.s32.totalorder %v10384_v19, 1  ;;  %v1966_v12 = vmul.f32 1.442695, %v1947_v30 }
 0x639   :  { %v5844_v4 = vpop.f32.mrb[16].mxu0  ;;  %v1738_v44 = vadd.f32 %v7963_v47, %v1718_v38  ;;  %v1964_v40 = vmul.f32 1.442695, %v1946_v3  ;;  %v1949_v52 = vsub.f32 0.0, %v1933_v0  ;;  %vm10391_vm12 = vcmp.eq.s32.totalorder %v10390_v51, 1 }
 0x63a   :  { %v1669_v2 = vpop.f32.mrb[17].mxu0  ;;  %v1721_v23 = vmul.f32 %v5844_v4, %v7958_v13  ;;  %v8028_v18 = vsel %vm10385_vm0, %v1739_v55, %v1759_v11  ;;  %v1761_v38 = vadd.f32 %v5844_v4, %v7968_v34  ;;  %v10388_v55 = vld [vmem:[#allocation16_spill] sm:$0xff]  ;;  %6486 = vpow2.f32 %v1962_v33 }
 0x63b   :  { %v1720_v37 = vmul.f32 %v7958_v13, %v1669_v2  ;;  %v1760_v14 = vadd.f32 %v7968_v34, %v1669_v2  ;;  %v8037_v60 = vsel %vm10387_vm4, %v1738_v44, %v1758_v42  ;;  %vm10389_vm3 = vcmp.eq.s32.totalorder %v10388_v55, 1 }
 0x63c   :  { %v1741_v5 = vadd.f32 %v7963_v47, %v1721_v23  ;;  %v1948_v30 = vsub.f32 0.0, %v1932_v10  ;;  %v1935_v3 = vand.u32 2147483647, %v8028_v18  ;;  %6488 = vpow2.f32 %v1960_v50  ;;  %v10394_v10 = vld [vmem:[#allocation19_spill] sm:$0xff] }
 0x63d   :  { %v5847_v41 = vpop.f32.mrb[18].mxu0  ;;  %v1740_v16 = vadd.f32 %v7963_v47, %v1720_v37  ;;  %v1934_v44 = vand.u32 2147483647, %v8037_v60  ;;  %6490 = vpow2.f32 %v1966_v12  ;;  %vm10395_vm11 = vcmp.eq.s32.totalorder %v10394_v10, 1 }
 0x63e   :  { %v1679_v59 = vpop.f32.mrb[19].mxu0  ;;  %v1723_v49 = vmul.f32 %v5847_v41, %v7958_v13  ;;  %v8041_v11 = vsel %vm10389_vm3, %v1741_v5, %v1761_v38  ;;  %v1763_v2 = vadd.f32 %v5847_v41, %v7968_v34  ;;  %v10392_v5 = vld [vmem:[#allocation18_spill] sm:$0xff]  ;;  %6492 = vpow2.f32 %v1964_v40 }
 0x63f   :  { %v1722_v37 = vmul.f32 %v7958_v13, %v1679_v59  ;;  %v8045_v4 = vsel %vm10391_vm12, %v1740_v16, %v1760_v14  ;;  %v1762_v0 = vadd.f32 %v7968_v34, %v1679_v59  ;;  %vm10393_vm10 = vcmp.eq.s32.totalorder %v10392_v5, 1 }
 0x640   :  { %v1743_v23 = vadd.f32 %v7963_v47, %v1723_v49  ;;  %v1937_v41 = vand.u32 2147483647, %v8041_v11  ;;  %v1936_v33 = vand.u32 2147483647, %v8045_v4  ;;  %v1970_v59 = vmul.f32 1.442695, %v1949_v52 }
 0x641   :  { %v5850_v63 = vpop.f32.mrb[20].mxu0  ;;  %v1742_v49 = vadd.f32 %v7963_v47, %v1722_v37  ;;  %v1950_v51 = vsub.f32 0.0, %v1934_v44  ;;  %vm1897_vm4 = vcmp.ne.f32.partialorder %v7981_v57, %v7981_v57  ;;  %vm1896_vm12 = vcmp.ne.f32.partialorder %v7986_v56, %v7986_v56 }
 0x642   :  { %v1689_v31 = vpop.f32.mrb[21].mxu0  ;;  %v8054_v42 = vsel %vm10393_vm10, %v1743_v23, %v1763_v2  ;;  %v1725_v16 = vmul.f32 %v5850_v63, %v7958_v13  ;;  %v1765_v37 = vadd.f32 %v5850_v63, %v7968_v34  ;;  %v1968_v23 = vmul.f32 1.442695, %v1948_v30 }
 0x643   :  { %v8061_v14 = vsel %vm10395_vm11, %v1742_v49, %v1762_v0  ;;  %v1951_v2 = vsub.f32 0.0, %v1935_v3  ;;  %v1939_v5 = vand.u32 2147483647, %v8054_v42  ;;  %v1724_v12 = vmul.f32 %v7958_v13, %v1689_v31 }
 0x644   :  { %v1745_v50 = vadd.f32 %v7963_v47, %v1725_v16  ;;  %v1938_v55 = vand.u32 2147483647, %v8061_v14  ;;  %v1953_v52 = vsub.f32 0.0, %v1937_v41  ;;  %v1952_v49 = vsub.f32 0.0, %v1936_v33  ;;  %v10400_v33 = vld [vmem:[#allocation22_spill] sm:$0xff] }
 0x645   :  { %v5853_v19 = vpop.f32.mrb[22].mxu0  ;;  %v1764_v63 = vadd.f32 %v7968_v34, %v1689_v31  ;;  %v1744_v30 = vadd.f32 %v7963_v47, %v1724_v12  ;;  %6494 = vpow2.f32 %v1970_v59  ;;  %v1974_v28 = vmul.f32 1.442695, %v1951_v2  ;;  %v8087_v12 = vpop.eup %6486 }
 0x646   :  { %v1699_v38 = vpop.f32.mrb[23].mxu0  ;;  %v8070_v10 = vsel %vm10397_vm9, %v1745_v50, %v1765_v37  ;;  %v1727_v40 = vmul.f32 %v5853_v19, %v7958_v13  ;;  %v1767_v44 = vadd.f32 %v5853_v19, %v7968_v34  ;;  %v1955_v50 = vsub.f32 0.0, %v1939_v5  ;;  %v8091_v59 = vpop.eup %6488 }
 0x647   :  { %v1941_v0 = vand.u32 2147483647, %v8070_v10  ;;  %v1726_v16 = vmul.f32 %v7958_v13, %v1699_v38  ;;  %v1972_v37 = vmul.f32 1.442695, %v1950_v51  ;;  %v1954_v36 = vsub.f32 0.0, %v1938_v55  ;;  %v8093_v51 = vpop.eup %6490 }
 0x648   :  { %v1747_v3 = vadd.f32 %v7963_v47, %v1727_v40  ;;  %v8081_v41 = vsel %vm10399_vm13, %v1744_v30, %v1764_v63  ;;  %vm10401_vm14 = vcmp.eq.s32.totalorder %v10400_v33, 1  ;;  %v1978_v40 = vmul.f32 1.442695, %v1953_v52  ;;  %v8097_v30 = vpop.eup %6492 }
 0x649   :  { %v1957_v27 = vsub.f32 0.0, %v1941_v0  ;;  %v1940_v19 = vand.u32 2147483647, %v8081_v41  ;;  %v1746_v13 = vadd.f32 %v7963_v47, %v1726_v16  ;;  %6496 = vpow2.f32 %v1968_v23  ;;  %v10402_v47 = vld [vmem:[#allocation23_spill] sm:$0xff] }
 0x64a   :  { %v8085_v31 = vsel %vm10401_vm14, %v1747_v3, %v1767_v44  ;;  %v1976_v55 = vmul.f32 1.442695, %v1952_v49  ;;  %6498 = vpow2.f32 %v1974_v28  ;;  %v1982_v5 = vmul.f32 1.442695, %v1955_v50 }
 0x64b   :  { %v1943_v2 = vand.u32 2147483647, %v8085_v31  ;;  %v1766_v63 = vadd.f32 %v7968_v34, %v1699_v38  ;;  %6500 = vpow2.f32 %v1972_v37  ;;  %v1980_v52 = vmul.f32 1.442695, %v1954_v36 }
 0x64c   :  { %6502 = vpow2.f32 %v1978_v40  ;;  %v1986_v0 = vmul.f32 1.442695, %v1957_v27  ;;  %v1956_v3 = vsub.f32 0.0, %v1940_v19  ;;  %vm10403_vm15 = vcmp.eq.s32.totalorder %v10402_v47, 1 }
 0x64d   :  { %v8101_v44 = vsel %vm10403_vm15, %v1746_v13, %v1766_v63  ;;  %6504 = vpow2.f32 %v1976_v55  ;;  %v2001_v23 = vadd.f32 1.0, %v8087_v12  ;;  %v1959_v28 = vsub.f32 0.0, %v1943_v2 }
 0x64e   :  { %6506 = vpow2.f32 %v1982_v5  ;;  %v1992_v49 = vadd.f32 1.0, %v8091_v59  ;;  %v1942_v34 = vand.u32 2147483647, %v8101_v44  ;;  %v1984_v36 = vmul.f32 1.442695, %v1956_v3 }
 0x64f   :  { %6508 = vpow2.f32 %v1980_v52  ;;  %v8106_v38 = vpop.eup %6494  ;;  %v2004_v27 = vmul.f32 -0.5, %v8087_v12  ;;  %v2019_v16 = vadd.f32 1.0, %v8093_v51  ;;  %v1995_v50 = vmul.f32 -0.5, %v8091_v59 }
 0x650   :  { %6510 = vpow2.f32 %v1986_v0  ;;  %v1990_v37 = vmul.f32 1.442695, %v1959_v28  ;;  %v2007_v40 = vand.u32 2147483647, %v8087_v12  ;;  %v1958_v13 = vsub.f32 0.0, %v1942_v34 }
 0x651   :  { %6512 = vlog2.f32 %v2001_v23  ;;  %v2022_v55 = vmul.f32 -0.5, %v8093_v51  ;;  %v2010_v5 = vadd.f32 1.0, %v8097_v30  ;;  %v1881_v63 = vmax.f32 %v7981_v57, 0.0 }
 0x652   :  { %6514 = vlog2.f32 %v1992_v49  ;;  %v2005_v52 = vadd.f32 1.0, %v2004_v27  ;;  %v1998_v0 = vand.u32 2147483647, %v8091_v59  ;;  %v1880_v23 = vmax.f32 %v7986_v56, 0.0 }
 0x653   :  { %v8112_v19 = vpop.eup %6496  ;;  %6516 = vlog2.f32 %v2019_v16  ;;  %v1996_v28 = vadd.f32 1.0, %v1995_v50  ;;  %v2037_v49 = vadd.f32 1.0, %v8106_v38  ;;  %vm8126_vm0 = vcmp.lt.f32.partialorder %v2007_v40, 0.0004427343 }
 0x654   :  { %v8116_v2 = vpop.eup %6498  ;;  %6518 = vpow2.f32 %v1984_v36  ;;  %v2025_v36 = vand.u32 2147483647, %v8093_v51  ;;  %v2013_v27 = vmul.f32 -0.5, %v8097_v30  ;;  %v8134_v33 = vmul.f32 1.442695, %v1958_v13 }
 0x655   :  { %v8120_v3 = vpop.eup %6500  ;;  %6520 = vlog2.f32 %v2010_v5  ;;  %v2023_v58 = vadd.f32 1.0, %v2022_v55  ;;  %v2028_v50 = vadd.f32 1.0, %v8112_v19  ;;  %vm8142_vm3 = vcmp.lt.f32.partialorder %v1998_v0, 0.0004427343 }
 0x656   :  { %v8124_v34 = vpop.eup %6502  ;;  %6522 = vpow2.f32 %v1990_v37  ;;  %v2006_v37 = vmul.f32 %v8087_v12, %v2005_v52  ;;  %v2016_v13 = vand.u32 2147483647, %v8097_v30  ;;  %v1997_v55 = vmul.f32 %v8091_v59, %v1996_v28 }
 0x657   :  { %v8132_v47 = vpop.eup %6504  ;;  %6524 = vlog2.f32 %v2037_v49  ;;  %v1882_v49 = vmax.f32 %v7997_v20, 0.0  ;;  %v2040_v62 = vmul.f32 -0.5, %v8106_v38  ;;  %vm1899_vm10 = vcmp.ne.f32.partialorder %v7992_v32, %v7992_v32 }
 0x658   :  { %v8137_v5 = vpop.eup %6506  ;;  %6526 = vlog2.f32 %v2028_v50  ;;  %vm8159_vm11 = vcmp.lt.f32.partialorder %v2025_v36, 0.0004427343  ;;  %v2014_v0 = vadd.f32 1.0, %v2013_v27  ;;  %v2043_v46 = vand.u32 2147483647, %v8106_v38 }
 0x659   :  { %v8148_v24 = vpop.eup %6508  ;;  %v2055_v54 = vadd.f32 1.0, %v8116_v2  ;;  %v2024_v28 = vmul.f32 %v8093_v51, %v2023_v58  ;;  %v1885_v7 = vmax.f32 %v8009_v6, 0.0  ;;  %v2031_v50 = vmul.f32 -0.5, %v8112_v19 }
 0x65a   :  { %v8155_v12 = vpop.eup %6510  ;;  %v2046_v39 = vadd.f32 1.0, %v8120_v3  ;;  %vm1898_vm9 = vcmp.ne.f32.partialorder %v7997_v20, %v7997_v20  ;;  %vm8171_vm13 = vcmp.lt.f32.partialorder %v2016_v13, 0.0004427343  ;;  %v1884_v27 = vmax.f32 %v8017_v1, 0.0 }
 0x65b   :  { %v6513_v59 = vpop.eup %6512  ;;  %6528 = vlog2.f32 %v2055_v54  ;;  %v2041_v51 = vadd.f32 1.0, %v2040_v62  ;;  %v2058_v21 = vmul.f32 -0.5, %v8116_v2  ;;  %v2015_v13 = vmul.f32 %v8097_v30, %v2014_v0 }
 0x65c   :  { %v6515_v61 = vpop.eup %6514  ;;  %v2003_v29 = vmul.f32 0.6931472, %v6513_v59  ;;  %6530 = vlog2.f32 %v2046_v39  ;;  %vm1901_vm14 = vcmp.ne.f32.partialorder %v8009_v6, %v8009_v6  ;;  %vm8184_vm15 = vcmp.lt.f32.partialorder %v2043_v46, 0.0004427343 }
 0x65d   :  { %v6517_v15 = vpop.eup %6516  ;;  %v1994_v58 = vmul.f32 0.6931472, %v6515_v61  ;;  %v2032_v62 = vadd.f32 1.0, %v2031_v50  ;;  %v2034_v43 = vand.u32 2147483647, %v8112_v19  ;;  %v2049_v46 = vmul.f32 -0.5, %v8120_v3 }
 0x65e   :  { %v8177_v45 = vpop.eup %6518  ;;  %v2009_v59 = vsel %vm8126_vm0, %v2006_v37, %v2003_v29  ;;  %v2021_v9 = vmul.f32 0.6931472, %v6517_v15  ;;  %vm1900_vm0 = vcmp.ne.f32.partialorder %v8017_v1, %v8017_v1  ;;  %v2059_v0 = vadd.f32 1.0, %v2058_v21 }
 0x65f   :  { %v6521_v61 = vpop.eup %6520  ;;  %v2137_v54 = vadd.f32 %v2009_v59, %v1881_v63  ;;  %v2000_v39 = vsel %vm8142_vm3, %v1997_v55, %v1994_v58  ;;  %v2042_v55 = vmul.f32 %v8106_v38, %v2041_v51  ;;  %v2033_v38 = vmul.f32 %v8112_v19, %v2032_v62 }
 0x660   :  { %v8191_v16 = vpop.eup %6522  ;;  %v2136_v15 = vadd.f32 %v2000_v39, %v1880_v23  ;;  %v2027_v29 = vsel %vm8159_vm11, %v2024_v28, %v2021_v9  ;;  %v2012_v30 = vmul.f32 0.6931472, %v6521_v61  ;;  %v2073_v28 = vadd.f32 1.0, %v8124_v34 }
 0x661   :  { %v6525_v37 = vpop.eup %6524  ;;  %v2153_v63 = vsel %vm1897_vm4, %v7981_v57, %v2137_v54  ;;  %v2139_v40 = vadd.f32 %v2027_v29, %v1883_v22  ;;  %v2061_v58 = vand.u32 2147483647, %v8116_v2  ;;  %v2050_v59 = vadd.f32 1.0, %v2049_v46 }
 0x662   :  { %2186 = vrot.lane.b32.xlu0 %v2153_v63, %s7034_s21  ;;  %v2152_v9 = vsel %vm1896_vm12, %v7986_v56, %v2136_v15  ;;  %v2018_v23 = vsel %vm8171_vm13, %v2015_v13, %v2012_v30  ;;  %v2039_v52 = vmul.f32 0.6931472, %v6525_v37  ;;  %v6527_v50 = vpop.eup %6526  ;;  %6532 = vlog2.f32 %v2073_v28 }
 0x663   :  { %2184 = vrot.lane.b32.xlu1 %v2152_v9, %s7034_s21  ;;  %v2155_v22 = vsel %vm1899_vm10, %v7992_v32, %v2139_v40  ;;  %v2138_v21 = vadd.f32 %v2018_v23, %v1882_v49  ;;  %v2030_v51 = vmul.f32 0.6931472, %v6527_v50  ;;  %vm2035_vm4 = vcmp.lt.f32.partialorder %v2034_v43, 0.0004427343 }
 0x664   :  { %v2045_v36 = vsel %vm8184_vm15, %v2042_v55, %v2039_v52  ;;  %v2052_v54 = vand.u32 2147483647, %v8120_v3  ;;  %v1887_v39 = vmax.f32 %v8028_v18, 0.0  ;;  %v2060_v35 = vmul.f32 %v8116_v2, %v2059_v0 }
 0x665   :  { %v2154_v13 = vsel %vm1898_vm9, %v7997_v20, %v2138_v21  ;;  %v2141_v61 = vadd.f32 %v2045_v36, %v1885_v7  ;;  %v6529_v49 = vpop.eup %6528  ;;  %v2036_v19 = vsel %vm2035_vm4, %v2033_v38, %v2030_v51  ;;  %v2064_v62 = vadd.f32 1.0, %v8132_v47 }
 0x666   :  { %2190 = vrot.lane.b32.xlu0 %v2155_v22, %s7034_s21  ;;  %v6531_v15 = vpop.eup %6530  ;;  %v2140_v7 = vadd.f32 %v2036_v19, %v1884_v27  ;;  %v2057_v29 = vmul.f32 0.6931472, %v6529_v49  ;;  %v2076_v30 = vmul.f32 -0.5, %v8124_v34  ;;  %vm2062_vm3 = vcmp.lt.f32.partialorder %v2061_v58, 0.0004427343 }
 0x667   :  { %2188 = vrot.lane.b32.xlu1 %v2154_v13, %s7034_s21  ;;  %v2157_v43 = vsel %vm1901_vm14, %v8009_v6, %v2141_v61  ;;  %v2048_v46 = vmul.f32 0.6931472, %v6531_v15  ;;  %v2051_v37 = vmul.f32 %v8120_v3, %v2050_v59  ;;  %6534 = vlog2.f32 %v2064_v62 }
 0x668   :  { %v2156_v2 = vsel %vm1900_vm0, %v8017_v1, %v2140_v7  ;;  %v2063_v63 = vsel %vm2062_vm3, %v2060_v35, %v2057_v29  ;;  %v1886_v40 = vmax.f32 %v8037_v60, 0.0  ;;  %vm2053_vm12 = vcmp.lt.f32.partialorder %v2052_v54, 0.0004427343 }
 0x669   :  { %6536 = vpow2.f32 %v8134_v33  ;;  %v2143_v27 = vadd.f32 %v2063_v63, %v1887_v39  ;;  %v2054_v55 = vsel %vm2053_vm12, %v2051_v37, %v2048_v46  ;;  %v2067_v0 = vmul.f32 -0.5, %v8132_v47 }
 0x66a   :  { %2194 = vrot.lane.b32.xlu0 %v2157_v43, %s7034_s21  ;;  %vm1903_vm10 = vcmp.ne.f32.partialorder %v8028_v18, %v8028_v18  ;;  %v2142_v3 = vadd.f32 %v2054_v55, %v1886_v40  ;;  %v2077_v9 = vadd.f32 1.0, %v2076_v30  ;;  %v2091_v23 = vadd.f32 1.0, %v8137_v5 }
 0x66b   :  { %2192 = vrot.lane.b32.xlu1 %v2156_v2, %s7034_s21  ;;  %v2159_v52 = vsel %vm1903_vm10, %v8028_v18, %v2143_v27  ;;  %vm1902_vm11 = vcmp.ne.f32.partialorder %v8037_v60, %v8037_v60  ;;  %v2079_v33 = vand.u32 2147483647, %v8124_v34  ;;  %v2082_v28 = vadd.f32 1.0, %v8148_v24 }
 0x66c   :  { %v2158_v50 = vsel %vm1902_vm11, %v8037_v60, %v2142_v3  ;;  %6538 = vlog2.f32 %v2091_v23  ;;  %v6533_v22 = vpop.eup %6532  ;;  %v2068_v21 = vadd.f32 1.0, %v2067_v0  ;;  %v2078_v58 = vmul.f32 %v8124_v34, %v2077_v9 }
 0x66d   :  { %6540 = vlog2.f32 %v2082_v28  ;;  %v2075_v38 = vmul.f32 0.6931472, %v6533_v22  ;;  %v2094_v36 = vmul.f32 -0.5, %v8137_v5  ;;  %v2109_v51 = vadd.f32 1.0, %v8155_v12 }
 0x66e   :  { %2198 = vrot.lane.b32.xlu0 %v2159_v52, %s7034_s21  ;;  %v1889_v59 = vmax.f32 %v8041_v11, 0.0  ;;  %vm2080_vm9 = vcmp.lt.f32.partialorder %v2079_v33, 0.0004427343  ;;  %v2070_v13 = vand.u32 2147483647, %v8132_v47  ;;  %v2085_v54 = vmul.f32 -0.5, %v8148_v24 }
 0x66f   :  { %2196 = vrot.lane.b32.xlu1 %v2158_v50, %s7034_s21  ;;  %v2081_v61 = vsel %vm2080_vm9, %v2078_v58, %v2075_v38  ;;  %6542 = vlog2.f32 %v2109_v51  ;;  %vm1905_vm13 = vcmp.ne.f32.partialorder %v8041_v11, %v8041_v11  ;;  %v2069_v34 = vmul.f32 %v8132_v47, %v2068_v21 }
 0x670   :  { %v2145_v19 = vadd.f32 %v2081_v61, %v1889_v59  ;;  %v2097_v39 = vand.u32 2147483647, %v8137_v5  ;;  %v2095_v62 = vadd.f32 1.0, %v2094_v36  ;;  %v2112_v15 = vmul.f32 -0.5, %v8155_v12 }
 0x671   :  { %v6535_v49 = vpop.eup %6534  ;;  %v2100_v43 = vadd.f32 1.0, %v8177_v45  ;;  %v1888_v30 = vmax.f32 %v8045_v4, 0.0  ;;  %vm1904_vm14 = vcmp.ne.f32.partialorder %v8045_v4, %v8045_v4  ;;  %vm2071_vm15 = vcmp.lt.f32.partialorder %v2070_v13, 0.0004427343 }
 0x672   :  { %v2066_v35 = vmul.f32 0.6931472, %v6535_v49  ;;  %v2161_v29 = vsel %vm1905_vm13, %v8041_v11, %v2145_v19  ;;  %v1891_v46 = vmax.f32 %v8054_v42, 0.0  ;;  %v2086_v37 = vadd.f32 1.0, %v2085_v54 }
 0x673   :  { %v8268_v7 = vpop.eup %6536  ;;  %2202 = vrot.lane.b32.xlu0 %v2161_v29, %s7034_s21  ;;  %6544 = vlog2.f32 %v2100_v43  ;;  %vm1907_vm0 = vcmp.ne.f32.partialorder %v8054_v42, %v8054_v42  ;;  %v2088_v63 = vand.u32 2147483647, %v8148_v24  ;;  %v2127_v40 = vadd.f32 1.0, %v8191_v16 }
 0x674   :  { %v2072_v47 = vsel %vm2071_vm15, %v2069_v34, %v2066_v35  ;;  %v2096_v55 = vmul.f32 %v8137_v5, %v2095_v62  ;;  %vm8281_vm4 = vcmp.lt.f32.partialorder %v2097_v39, 0.0004427343  ;;  %v2113_v3 = vadd.f32 1.0, %v2112_v15 }
 0x675   :  { %v2144_v2 = vadd.f32 %v2072_v47, %v1888_v30  ;;  %v2118_v9 = vadd.f32 1.0, %v8268_v7  ;;  %v2103_v28 = vmul.f32 -0.5, %v8177_v45  ;;  %6546 = vlog2.f32 %v2127_v40 }
 0x676   :  { %v6539_v27 = vpop.eup %6538  ;;  %v2087_v50 = vmul.f32 %v8148_v24, %v2086_v37  ;;  %v2115_v22 = vand.u32 2147483647, %v8155_v12  ;;  %v1890_v38 = vmax.f32 %v8061_v14, 0.0  ;;  %vm1906_vm3 = vcmp.ne.f32.partialorder %v8061_v14, %v8061_v14 }
 0x677   :  { %v6541_v23 = vpop.eup %6540  ;;  %v2160_v52 = vsel %vm1904_vm14, %v8045_v4, %v2144_v2  ;;  %v2093_v33 = vmul.f32 0.6931472, %v6539_v27  ;;  %6548 = vlog2.f32 %v2118_v9  ;;  %vm2089_vm12 = vcmp.lt.f32.partialorder %v2088_v63, 0.0004427343 }
 0x678   :  { %2200 = vrot.lane.b32.xlu1 %v2160_v52, %s7034_s21  ;;  %v2084_v5 = vmul.f32 0.6931472, %v6541_v23  ;;  %v2114_v59 = vmul.f32 %v8155_v12, %v2113_v3  ;;  %v2130_v13 = vmul.f32 -0.5, %v8191_v16  ;;  %v2104_v54 = vadd.f32 1.0, %v2103_v28 }
 0x679   :  { %v2099_v21 = vsel %vm8281_vm4, %v2096_v55, %v2093_v33  ;;  %v6543_v58 = vpop.eup %6542  ;;  %v2121_v49 = vmul.f32 -0.5, %v8268_v7  ;;  %v1893_v34 = vmax.f32 %v8070_v10, 0.0  ;;  %vm2116_vm10 = vcmp.lt.f32.partialorder %v2115_v22, 0.0004427343 }
 0x67a   :  { %v2147_v36 = vadd.f32 %v2099_v21, %v1891_v46  ;;  %v2090_v51 = vsel %vm2089_vm12, %v2087_v50, %v2084_v5  ;;  %v2111_v61 = vmul.f32 0.6931472, %v6543_v58  ;;  %v2106_v39 = vand.u32 2147483647, %v8177_v45 }
 0x67b   :  { %v2146_v24 = vadd.f32 %v2090_v51, %v1890_v38  ;;  %vm1909_vm11 = vcmp.ne.f32.partialorder %v8070_v10, %v8070_v10  ;;  %v2131_v43 = vadd.f32 1.0, %v2130_v13  ;;  %v2105_v30 = vmul.f32 %v8177_v45, %v2104_v54 }
 0x67c   :  { %v2163_v19 = vsel %vm1907_vm0, %v8054_v42, %v2147_v36  ;;  %v2117_v35 = vsel %vm2116_vm10, %v2114_v59, %v2111_v61  ;;  %v2133_v47 = vand.u32 2147483647, %v8191_v16  ;;  %v2122_v46 = vadd.f32 1.0, %v2121_v49 }
 0x67d   :  { %2206 = vrot.lane.b32.xlu0 %v2163_v19, %s7034_s21  ;;  %v2162_v12 = vsel %vm1906_vm3, %v8061_v14, %v2146_v24  ;;  %v6545_v62 = vpop.eup %6544  ;;  %v2149_v15 = vadd.f32 %v2117_v35, %v1893_v34  ;;  %v1892_v2 = vmax.f32 %v8081_v41, 0.0  ;;  %vm2107_vm9 = vcmp.lt.f32.partialorder %v2106_v39, 0.0004427343 }
 0x67e   :  { %2204 = vrot.lane.b32.xlu1 %v2162_v12, %s7034_s21  ;;  %v2102_v29 = vmul.f32 0.6931472, %v6545_v62  ;;  %v2124_v63 = vand.u32 2147483647, %v8268_v7  ;;  %vm1908_vm13 = vcmp.ne.f32.partialorder %v8081_v41, %v8081_v41  ;;  %v2132_v3 = vmul.f32 %v8191_v16, %v2131_v43 }
 0x67f   :  { %v2165_v37 = vsel %vm1909_vm11, %v8070_v10, %v2149_v15  ;;  %v6547_v40 = vpop.eup %6546  ;;  %v1895_v9 = vmax.f32 %v8085_v31, 0.0  ;;  %vm2134_vm14 = vcmp.lt.f32.partialorder %v2133_v47, 0.0004427343  ;;  %v2123_v52 = vmul.f32 %v8268_v7, %v2122_v46 }
 0x680   :  { %v2108_v27 = vsel %vm2107_vm9, %v2105_v30, %v2102_v29  ;;  %v2129_v45 = vmul.f32 0.6931472, %v6547_v40  ;;  %v1894_v5 = vmax.f32 %v8101_v44, 0.0  ;;  %vm2125_vm15 = vcmp.lt.f32.partialorder %v2124_v63, 0.0004427343 }
 0x681   :  { %2210 = vrot.lane.b32.xlu0 %v2165_v37, %s7034_s21  ;;  %v6549_v55 = vpop.eup %6548  ;;  %v2148_v0 = vadd.f32 %v2108_v27, %v1892_v2  ;;  %vm1911_vm0 = vcmp.ne.f32.partialorder %v8085_v31, %v8085_v31  ;;  %vm1910_vm4 = vcmp.ne.f32.partialorder %v8101_v44, %v8101_v44  ;;  %v8340_v38 = vrot.slane %v7954_v25, %v7759_v8 }
 0x682   :  { %v2120_v23 = vmul.f32 0.6931472, %v6549_v55  ;;  %v2135_v28 = vsel %vm2134_vm14, %v2132_v3, %v2129_v45  ;;  %v5364_v58 = vmul.f32 -1.442695, %v7981_v57  ;;  %v5363_v36 = vmul.f32 -1.442695, %v7986_v56 }
 0x683   :  { %v2164_v33 = vsel %vm1908_vm13, %v8081_v41, %v2148_v0  ;;  %v2151_v50 = vadd.f32 %v2135_v28, %v1895_v9  ;;  %v5366_v51 = vmul.f32 -1.442695, %v7992_v32  ;;  %v5365_v59 = vmul.f32 -1.442695, %v7997_v20 }
 0x684   :  { %2208 = vrot.lane.b32.xlu1 %v2164_v33, %s7034_s21  ;;  %v2126_v22 = vsel %vm2125_vm15, %v2123_v52, %v2120_v23  ;;  %6550 = vpow2.f32 %v5364_v58  ;;  %v5368_v13 = vmul.f32 -1.442695, %v8009_v6  ;;  %v5367_v25 = vmul.f32 -1.442695, %v8017_v1 }
 0x685   :  { %v2150_v16 = vadd.f32 %v2126_v22, %v1894_v5  ;;  %v2167_v21 = vsel %vm1911_vm0, %v8085_v31, %v2151_v50  ;;  %6552 = vpow2.f32 %v5363_v36  ;;  %v5370_v24 = vmul.f32 -1.442695, %v8028_v18 }
 0x686   :  { %2214 = vrot.lane.b32.xlu0 %v2167_v21, %s7034_s21  ;;  %6554 = vpow2.f32 %v5366_v51  ;;  %v5369_v57 = vmul.f32 -1.442695, %v8037_v60  ;;  %v5372_v19 = vmul.f32 -1.442695, %v8041_v11  ;;  %v5371_v18 = vmul.f32 -1.442695, %v8045_v4 }
 0x687   :  { %v2166_v7 = vsel %vm1910_vm4, %v8101_v44, %v2150_v16  ;;  %6556 = vpow2.f32 %v5365_v59  ;;  %v5374_v15 = vmul.f32 -1.442695, %v8054_v42  ;;  %v5373_v11 = vmul.f32 -1.442695, %v8061_v14 }
 0x688   :  { %2212 = vrot.lane.b32.xlu1 %v2166_v7, %s7034_s21  ;;  %6558 = vpow2.f32 %v5368_v13  ;;  %v5376_v4 = vmul.f32 -1.442695, %v8070_v10  ;;  %v5375_v27 = vmul.f32 -1.442695, %v8081_v41  ;;  %v5378_v28 = vmul.f32 -1.442695, %v8085_v31 }
 0x689   :  { %6560 = vpow2.f32 %v5367_v25  ;;  %v5377_v22 = vmul.f32 -1.442695, %v8101_v44  ;;  %v10416_v25 = vld [vmem:[#allocation24_spill] sm:$0xff]  ;;  %v10417_v44 = vld [vmem:[#allocation25_spill] sm:$0xff] }
 0x68a   :  { %6562 = vpow2.f32 %v5370_v24 }
 0x68b   :  { %6564 = vpow2.f32 %v5369_v57 }
 0x68c   :  { %2348 = vrot.lane.b32.xlu1 %v8340_v38, %s7034_s21 }
 0x68e   :  { %v6551_v61 = vpop.eup %6550 }
 0x68f   :  { %v6553_v56 = vpop.eup %6552  ;;  %v1833_v32 = vadd.f32 1.0, %v6551_v61 }
 0x690   :  { %v6555_v54 = vpop.eup %6554  ;;  %v1832_v49 = vadd.f32 1.0, %v6553_v56 }
 0x691   :  { %v6557_v20 = vpop.eup %6556  ;;  %6566 = vrcp.f32 %v1833_v32  ;;  %v1835_v6 = vadd.f32 1.0, %v6555_v54 }
 0x692   :  { %v6559_v34 = vpop.eup %6558  ;;  %6568 = vrcp.f32 %v1832_v49  ;;  %v1834_v1 = vadd.f32 1.0, %v6557_v20 }
 0x693   :  { %v6561_v39 = vpop.eup %6560  ;;  %6570 = vpow2.f32 %v5372_v19  ;;  %v1837_v60 = vadd.f32 1.0, %v6559_v34 }
 0x694   :  { %6572 = vrcp.f32 %v1835_v6  ;;  %v6563_v12 = vpop.eup %6562  ;;  %v1836_v35 = vadd.f32 1.0, %v6561_v39 }
 0x695   :  { %6574 = vrcp.f32 %v1834_v1  ;;  %v6565_v62 = vpop.eup %6564  ;;  %v1839_v43 = vadd.f32 1.0, %v6563_v12  ;;  %v10418_v1 = vld [vmem:[#allocation26_spill] sm:$0xff] }
 0x696   :  { %6576 = vpow2.f32 %v5371_v18  ;;  %v1838_v29 = vadd.f32 1.0, %v6565_v62 }
 0x697   :  { %6578 = vrcp.f32 %v1837_v60  ;;  %v10419_v60 = vld [vmem:[#allocation27_spill] sm:$0xff] }
 0x698   :  { %6580 = vrcp.f32 %v1836_v35 }
 0x699   :  { %6582 = vpow2.f32 %v5374_v15 }
 0x69a   :  { %6584 = vpow2.f32 %v5373_v11 }
 0x69b   :  { %v6567_v30 = vpop.eup %6566  ;;  %6586 = vrcp.f32 %v1839_v43 }
 0x69c   :  { %v6569_v46 = vpop.eup %6568  ;;  %6588 = vrcp.f32 %v1838_v29 }
 0x69d   :  { %v6571_v63 = vpop.eup %6570  ;;  %6590 = vpow2.f32 %v5376_v4 }
 0x69e   :  { %v6573_v14 = vpop.eup %6572  ;;  %v1841_v23 = vadd.f32 1.0, %v6571_v63  ;;  %6592 = vpow2.f32 %v5375_v27 }
 0x69f   :  { %v6575_v45 = vpop.eup %6574 }
 0x6a0   :  { %v6577_v10 = vpop.eup %6576  ;;  %6594 = vrcp.f32 %v1841_v23 }
 0x6a1   :  { %v6579_v50 = vpop.eup %6578  ;;  %v1840_v36 = vadd.f32 1.0, %v6577_v10  ;;  %6596 = vpow2.f32 %v5378_v28 }
 0x6a2   :  { %v6581_v21 = vpop.eup %6580  ;;  %6598 = vpow2.f32 %v5377_v22 }
 0x6a3   :  { %v6583_v51 = vpop.eup %6582  ;;  %6600 = vrcp.f32 %v1840_v36  ;;  %v10424_v36 = vld [vmem:[#allocation32_spill] sm:$0xff] }
 0x6a4   :  { %v6585_v31 = vpop.eup %6584  ;;  %v1843_v6 = vadd.f32 1.0, %v6583_v51 }
 0x6a5   :  { %v6587_v57 = vpop.eup %6586  ;;  %v1842_v18 = vadd.f32 1.0, %v6585_v31  ;;  %v10425_v31 = vld [vmem:[#allocation33_spill] sm:$0xff] }
 0x6a6   :  { %v6589_v32 = vpop.eup %6588  ;;  %6602 = vrcp.f32 %v1843_v6  ;;  %v10427_v6 = vld [vmem:[#allocation35_spill] sm:$0xff] }
 0x6a7   :  { %v6591_v34 = vpop.eup %6590  ;;  %6604 = vrcp.f32 %v1842_v18  ;;  %v6974_v18 = vld [vmem:[%s10233_s4 + $0x8] sm:$0xff] }
 0x6a8   :  { %v6593_v35 = vpop.eup %6592  ;;  %v1845_v15 = vadd.f32 1.0, %v6591_v34 }
 0x6aa   :  { %v6595_v11 = vpop.eup %6594  ;;  %6606 = vrcp.f32 %v1845_v15 }
 0x6d4   :  { %v2187_v47 = vpop.permute.xlu0 %2186 }
 0x6d5   :  { %v2233_v37 = vmul.f32 %v6567_v30, %v2187_v47  ;;  %v2185_v2 = vpop.permute.xlu1 %2184  ;;  %v6597_v30 = vpop.eup %6596 }
 0x6d6   :  { %v2232_v40 = vmul.f32 %v6569_v46, %v2185_v2  ;;  %v6599_v47 = vpop.eup %6598  ;;  %v1844_v46 = vadd.f32 1.0, %v6593_v35  ;;  %v10420_v2 = vld [vmem:[#allocation28_spill] sm:$0xff] }
 0x6d7   :  { %v2249_v42 = vmul.f32 %v2233_v37, %v7773_v17  ;;  %v6601_v4 = vpop.eup %6600  ;;  %v2394_v35 = vld [vmem:[%s10237_s8 + $0xc8] sm:$0xff] }
 0x6d8   :  { %v2248_v55 = vmul.f32 %v2232_v40, %v7775_v53  ;;  %v2191_v0 = vpop.permute.xlu0 %2190  ;;  %6608 = vrcp.f32 %v1844_v46  ;;  %v2391_v46 = vld [vmem:[%s10237_s8 + $0xb0] sm:$0xff] }
 0x6d9   :  { %v2235_v3 = vmul.f32 %v6573_v14, %v2191_v0  ;;  %v2189_v9 = vpop.permute.xlu1 %2188  ;;  %v10421_v14 = vld [vmem:[#allocation29_spill] sm:$0xff]  ;;  %v6603_v0 = vpop.eup %6602 }
 0x6da   :  { %v2234_v52 = vmul.f32 %v6575_v45, %v2189_v9  ;;  %v6195_v33 = vpack.c.bf16 %v2249_v42, %v2248_v55  ;;  %v1847_v42 = vadd.f32 1.0, %v6597_v30  ;;  %v1846_v55 = vadd.f32 1.0, %v6599_v47  ;;  %v6605_v9 = vpop.eup %6604 }
 0x6db   :  { %v2251_v5 = vmul.f32 %v2235_v3, %v7777_v48 }
 0x6dc   :  { %v2250_v41 = vmul.f32 %v2234_v52, %v7779_v26  ;;  %6196 = vmatprep.subr.bf16.mxu1 %v6195_v33  ;;  %v2195_v16 = vpop.permute.xlu0 %2194  ;;  %6610 = vrcp.f32 %v1847_v42 }
 0x6dd   :  { %v2237_v7 = vmul.f32 %v6579_v50, %v2195_v16  ;;  %6198 = vmatpush3.bf16.msra.mxu1 %v6195_v33  ;;  %v2193_v58 = vpop.permute.xlu1 %2192  ;;  %6612 = vrcp.f32 %v1846_v55  ;;  %v10422_v33 = vld [vmem:[#allocation30_spill] sm:$0xff]  ;;  %v10423_v50 = vld [vmem:[#allocation31_spill] sm:$0xff] }
 0x6de   :  { %v2236_v59 = vmul.f32 %v6581_v21, %v2193_v58  ;;  %v6199_v13 = vpack.c.bf16 %v2251_v5, %v2250_v41  ;;  %v6607_v5 = vpop.eup %6606 }
 0x6df   :  { %v2253_v24 = vmul.f32 %v2237_v7, %v10416_v25 }
 0x6e0   :  { %v2252_v61 = vmul.f32 %v2236_v59, %v10417_v44  ;;  %6200 = vmatprep.subr.bf16.mxu1 %v6199_v13  ;;  %v2199_v56 = vpop.permute.xlu0 %2198 }
 0x6e1   :  { %v2239_v54 = vmul.f32 %v6587_v57, %v2199_v56  ;;  %6202 = vmatpush3.bf16.msra.mxu1 %v6199_v13  ;;  %v2197_v49 = vpop.permute.xlu1 %2196 }
 0x6e2   :  { %v2238_v20 = vmul.f32 %v6589_v32, %v2197_v49  ;;  %v6203_v19 = vpack.c.bf16 %v2253_v24, %v2252_v61  ;;  %v6609_v7 = vpop.eup %6608 }
 0x6e3   :  { %v2255_v39 = vmul.f32 %v2239_v54, %v10418_v1 }
 0x6e4   :  { %v2254_v12 = vmul.f32 %v2238_v20, %v10419_v60  ;;  %6204 = vmatprep.subr.bf16.mxu1 %v6203_v19  ;;  %v10426_v20 = vld [vmem:[#allocation34_spill] sm:$0xff] }
 0x6e5   :  { %6206 = vmatpush3.bf16.msra.mxu1 %v6203_v19  ;;  %v2203_v43 = vpop.permute.xlu0 %2202 }
 0x6e6   :  { %v6207_v62 = vpack.c.bf16 %v2255_v39, %v2254_v12  ;;  %v2241_v29 = vmul.f32 %v6595_v11, %v2203_v43  ;;  %v6611_v13 = vpop.eup %6610  ;;  %v2393_v12 = vld [vmem:[%s10237_s8 + $0xc0] sm:$0xff]  ;;  %v2396_v11 = vld [vmem:[%s10237_s8 + $0xd8] sm:$0xff] }
 0x6e7   :  { %v6613_v61 = vpop.eup %6612  ;;  %v6235_v15 = vpack.c.bf16 %v2394_v35, %v2393_v12  ;;  %v2389_v43 = vld [vmem:[%s10237_s8 + $0xa0] sm:$0xff] }
 0x6e8   :  { %6208 = vmatprep.subr.bf16.mxu1 %v6207_v62  ;;  %v2257_v63 = vmul.f32 %v2241_v29, %v10420_v2  ;;  %v2390_v29 = vld [vmem:[%s10237_s8 + $0xa8] sm:$0xff] }
 0x6e9   :  { %6210 = vmatpush3.bf16.msra.mxu1 %v6207_v62  ;;  %v2395_v62 = vld [vmem:[%s10237_s8 + $0xd0] sm:$0xff]  ;;  %v6227_v47 = vpack.c.bf16 %v2390_v29, %v2389_v43  ;;  %6236 = vmatprep.subr.bf16.mxu0 %v6235_v15  ;;  %v6975_v29 = vld [vmem:[%s10230_s1] sm:$0xff] }
 0x6ea   :  { %v2201_v37 = vpop.permute.xlu1 %2200  ;;  %v6239_v30 = vpack.c.bf16 %v2396_v11, %v2395_v62  ;;  %6238 = vmatpush3.bf16.msra.mxu0 %v6235_v15 }
 0x6eb   :  { %v2240_v40 = vmul.f32 %v6601_v4, %v2201_v37  ;;  %v2392_v4 = vld [vmem:[%s10237_s8 + $0xb8] sm:$0xff] }
 0x6ec   :  { %v6231_v37 = vpack.c.bf16 %v2392_v4, %v2391_v46  ;;  %6240 = vmatprep.subr.bf16.mxu0 %v6239_v30 }
 0x6ed   :  { %v2256_v27 = vmul.f32 %v2240_v40, %v10421_v14 }
 0x6ee   :  { %6242 = vmatpush3.bf16.msra.mxu0 %v6239_v30  ;;  %v6976_v30 = vld [vmem:[%s10233_s4] sm:$0xff] }
 0x6ef   :  { %v2207_v45 = vpop.permute.xlu0 %2206  ;;  %v6211_v3 = vpack.c.bf16 %v2257_v63, %v2256_v27 }
 0x6f0   :  { %v2243_v23 = vmul.f32 %v6603_v0, %v2207_v45  ;;  %v2205_v10 = vpop.permute.xlu1 %2204  ;;  %v10428_v0 = vld [vmem:[#allocation37_spill] sm:$0xff] }
 0x6f1   :  { %v2242_v52 = vmul.f32 %v6605_v9, %v2205_v10  ;;  %6212 = vmatprep.subr.bf16.mxu1 %v6211_v3 }
 0x6f2   :  { %v2259_v28 = vmul.f32 %v2243_v23, %v10422_v33  ;;  %6214 = vmatpush3.bf16.msra.mxu1 %v6211_v3  ;;  %v10429_v3 = vld [vmem:[#allocation36_spill] sm:$0xff] }
 0x6f3   :  { %v2258_v22 = vmul.f32 %v2242_v52, %v10423_v50  ;;  %v2211_v41 = vpop.permute.xlu0 %2210 }
 0x6f4   :  { %v2245_v16 = vmul.f32 %v6607_v5, %v2211_v41 }
 0x6f5   :  { %v6215_v21 = vpack.c.bf16 %v2259_v28, %v2258_v22 }
 0x6f6   :  { %v2209_v58 = vpop.permute.xlu1 %2208  ;;  %v2261_v51 = vmul.f32 %v2245_v16, %v10424_v36 }
 0x6f7   :  { %6216 = vmatprep.subr.bf16.mxu1 %v6215_v21  ;;  %v2244_v59 = vmul.f32 %v6609_v7, %v2209_v58 }
 0x6f8   :  { %6218 = vmatpush3.bf16.msra.mxu1 %v6215_v21  ;;  %v2215_v57 = vpop.permute.xlu0 %2214 }
 0x6f9   :  { %v2260_v24 = vmul.f32 %v2244_v59, %v10425_v31  ;;  %v2247_v56 = vmul.f32 %v6611_v13, %v2215_v57 }
 0x6fa   :  { %v2213_v32 = vpop.permute.xlu1 %2212 }
 0x6fb   :  { %v2246_v54 = vmul.f32 %v6613_v61, %v2213_v32  ;;  %v6219_v49 = vpack.c.bf16 %v2261_v51, %v2260_v24  ;;  %v2263_v19 = vmul.f32 %v2247_v56, %v10426_v20 }
 0x6fd   :  { %v2262_v34 = vmul.f32 %v2246_v54, %v10427_v6  ;;  %6220 = vmatprep.subr.bf16.mxu1 %v6219_v49 }
 0x6fe   :  { %6222 = vmatpush3.bf16.msra.mxu1 %v6219_v49  ;;  %v2349_v55 = vpop.permute.xlu1 %2348 }
 0x6ff   :  { %v6223_v39 = vpack.c.bf16 %v2263_v19, %v2262_v34 }
 0x701   :  { %6224 = vmatprep.subr.bf16.mxu1 %v6223_v39 }
 0x702   :  { %6226 = vmatpush3.bf16.msra.mxu1 %v6223_v39 }
 0x703   :  { %6228 = vmatprep.subr.bf16.mxu1 %v6227_v47 }
 0x705   :  { %5887 = vmatmul.mubr.f32.vlgmr.msra.gmra.mrb[20].mxu1 %v6974_v18 }
 0x706   :  { %6230 = vmatpush3.bf16.msra.mxu1 %v6227_v47 }
 0x707   :  { %6232 = vmatprep.subr.bf16.mxu1 %v6231_v37 }
 0x70a   :  { %6234 = vmatpush3.bf16.msra.mxu1 %v6231_v37 }
 0x7d8   :  { %v5888_v63 = vpop.f32.mrb[20].mxu1 }
 0x7d9   :  { %v2344_v40 = vmul.f32 %v5888_v63, %v8340_v38  ;;  %v2330_v42 = vpop.f32.mrb[21].mxu1 }
 0x7da   :  { %v2343_v27 = vmul.f32 %v8340_v38, %v2330_v42  ;;  %v2397_v42 = vld [vmem:[%s10237_s8 + $0xe0] sm:$0xff] }
 0x7db   :  { %v2346_v45 = vadd.f32 %v2344_v40, %v10428_v0  ;;  %v6977_v0 = vld [vmem:[%s10230_s1 + $0x8] sm:$0xff] }
 0x7dc   :  { %v2345_v9 = vadd.f32 %v2343_v27, %v10429_v3  ;;  %v2398_v27 = vld [vmem:[%s10237_s8 + $0xe8] sm:$0xff]  ;;  %v6979_v3 = vld [vmem:[%s10230_s1 + $0x18] sm:$0xff] }
 0x7dd   :  { %v2352_v23 = vadd.f32 %v2349_v55, %v2346_v45  ;;  %v6978_v45 = vld [vmem:[%s10230_s1 + $0x10] sm:$0xff] }
 0x7de   :  { %v2351_v10 = vadd.f32 %v2349_v55, %v2345_v9  ;;  %v6251_v55 = vpack.c.bf16 %v2398_v27, %v2397_v42  ;;  %v6980_v9 = vld [vmem:[%s10230_s1 + $0x20] sm:$0xff] }
 0x7df   :  { %v2360_v52 = vand.u32 2147483647, %v2352_v23  ;;  %v2354_v19 = vmax.f32 %v2352_v23, 0.0  ;;  %vm2356_vm11 = vcmp.ne.f32.partialorder %v2352_v23, %v2352_v23 }
 0x7e0   :  { %v2359_v28 = vand.u32 2147483647, %v2351_v10  ;;  %v2353_v18 = vmax.f32 %v2351_v10, 0.0  ;;  %vm2355_vm10 = vcmp.ne.f32.partialorder %v2351_v10, %v2351_v10 }
 0x7e1   :  { %v2362_v5 = vsub.f32 0.0, %v2360_v52  ;;  %v6983_v52 = vld [vmem:[%s10230_s1 + $0x38] sm:$0xff] }
 0x7e2   :  { %v2361_v22 = vsub.f32 0.0, %v2359_v28  ;;  %v6984_v28 = vld [vmem:[%s10230_s1 + $0x40] sm:$0xff] }
 0x7e3   :  { %v2365_v41 = vmul.f32 1.442695, %v2362_v5  ;;  %v6985_v5 = vld [vmem:[%s10230_s1 + $0x48] sm:$0xff] }
 0x7e4   :  { %v2363_v16 = vmul.f32 1.442695, %v2361_v22  ;;  %v6986_v22 = vld [vmem:[%s10230_s1 + $0x50] sm:$0xff] }
 0x7e5   :  { %6614 = vpow2.f32 %v2365_v41  ;;  %v6987_v41 = vld [vmem:[%s10230_s1 + $0x58] sm:$0xff] }
 0x7e6   :  { %6616 = vpow2.f32 %v2363_v16  ;;  %v6988_v16 = vld [vmem:[%s10230_s1 + $0x60] sm:$0xff] }
 0x7ef   :  { %v6615_v21 = vpop.eup %6614 }
 0x7f0   :  { %v6617_v7 = vpop.eup %6616  ;;  %v2376_v58 = vadd.f32 1.0, %v6615_v21  ;;  %v2379_v38 = vmul.f32 -0.5, %v6615_v21  ;;  %v2382_v57 = vand.u32 2147483647, %v6615_v21 }
 0x7f1   :  { %v2367_v51 = vadd.f32 1.0, %v6617_v7  ;;  %v2370_v59 = vmul.f32 -0.5, %v6617_v7  ;;  %v2373_v61 = vand.u32 2147483647, %v6617_v7 }
 0x7f2   :  { %6618 = vlog2.f32 %v2376_v58  ;;  %v2380_v13 = vadd.f32 1.0, %v2379_v38  ;;  %vm2383_vm3 = vcmp.lt.f32.partialorder %v2382_v57, 0.0004427343  ;;  %v6991_v58 = vld [vmem:[%s10230_s1 + $0x78] sm:$0xff] }
 0x7f3   :  { %6620 = vlog2.f32 %v2367_v51  ;;  %v2371_v24 = vadd.f32 1.0, %v2370_v59  ;;  %vm2374_vm12 = vcmp.lt.f32.partialorder %v2373_v61, 0.0004427343  ;;  %v8495_v51 = vld [vmem:[%s10238_s9 + $0x10] sm:$0xff] }
 0x7f4   :  { %v2381_v49 = vmul.f32 %v6615_v21, %v2380_v13  ;;  %v6989_v21 = vld [vmem:[%s10230_s1 + $0x68] sm:$0xff]  ;;  %v10432_v59 = vld [vmem:[#allocation9_spill] sm:$0xff] }
 0x7f5   :  { %v2372_v39 = vmul.f32 %v6617_v7, %v2371_v24  ;;  %v6990_v7 = vld [vmem:[%s10230_s1 + $0x70] sm:$0xff]  ;;  %v8499_v13 = vrot.slane %v8495_v51, %v10432_v59 }
 0x7fc   :  { %v6619_v56 = vpop.eup %6618 }
 0x7fd   :  { %v6621_v32 = vpop.eup %6620  ;;  %v2378_v54 = vmul.f32 0.6931472, %v6619_v56  ;;  %v10433_v56 = vld [vmem:[#allocation11_spill] sm:$0xff] }
 0x7fe   :  { %v2369_v34 = vmul.f32 0.6931472, %v6621_v32  ;;  %v8504_v32 = vrot.slane %v8495_v51, %v10433_v56  ;;  %v10457_v56 = vld [vmem:[#allocation21_spill] sm:$0xff] }
 0x7ff   :  { %v2384_v12 = vsel %vm2383_vm3, %v2381_v49, %v2378_v54  ;;  %vm10458_vm0 = vcmp.eq.s32.totalorder %v10457_v56, 1 }
 0x800   :  { %v2375_v35 = vsel %vm2374_vm12, %v2372_v39, %v2369_v34  ;;  %v2386_v62 = vadd.f32 %v2384_v12, %v2354_v19  ;;  %v10434_v19 = vld [vmem:[#allocation13_spill] sm:$0xff] }
 0x801   :  { %v2385_v15 = vadd.f32 %v2375_v35, %v2353_v18  ;;  %v8509_v34 = vrot.slane %v8495_v51, %v10434_v19 }
 0x802   :  { %v8413_v43 = vsel %vm2356_vm11, %v2352_v23, %v2386_v62  ;;  %v6981_v23 = vld [vmem:[%s10230_s1 + $0x28] sm:$0xff] }
 0x803   :  { %v8407_v11 = vsel %vm2355_vm10, %v2351_v10, %v2385_v15  ;;  %10431 = vst [vmem:[#allocation36_spill] sm:$0xff] %v8413_v43  ;;  %v6982_v10 = vld [vmem:[%s10230_s1 + $0x30] sm:$0xff] }
 0x804   :  { %10430 = vst [vmem:[#allocation37_spill] sm:$0xff] %v8407_v11  ;;  %5897 = vmatprep.mubr.msk.f32.mxu1 %vm204_vm1, %v8407_v11  ;;  %5908 = vmatprep.mubr.msk.f32.mxu0 %vm204_vm1, %v8407_v11 }
 0x805   :  { %5898 = vmatmul.mubr.msk.f32.vlgmr.msra.gmra.mrb[22].mxu1 %vm204_vm1, %v8413_v43  ;;  %5909 = vmatmul.mubr.msk.f32.vlgmr.msra.gmra.mrb[24].mxu0 %vm204_vm1, %v8413_v43 }
 0x806   :  { %5923 = vmatprep.mubr.msk.f32.mxu1 %vm361_vm2, %v6975_v29  ;;  %5979 = vmatprep.mubr.f32.mxu0 %v6976_v30 }
 0x8d8   :  { %v5899_v47 = vpop.f32.mrb[22].mxu1  ;;  %v5910_v46 = vpop.f32.mrb[24].mxu0 }
 0x8d9   :  { %v2472_v4 = vpop.f32.mrb[23].mxu1  ;;  %v2547_v37 = vpop.f32.mrb[25].mxu0 }
 0x8da   :  { %v6243_v63 = vpack.c.bf16 %v5899_v47, %v2472_v4  ;;  %v6247_v40 = vpack.c.bf16 %v5910_v46, %v2547_v37 }
 0x8dc   :  { %6244 = vmatprep.subr.bf16.mxu1 %v6243_v63 }
 0x8dd   :  { %6246 = vmatpush3.bf16.msra.mxu1 %v6243_v63 }
 0x8de   :  { %6248 = vmatprep.subr.bf16.mxu1 %v6247_v40 }
 0x8e1   :  { %6250 = vmatpush3.bf16.msra.mxu1 %v6247_v40 }
 0x8e2   :  { %6252 = vmatprep.subr.bf16.mxu1 %v6251_v55 }
 0x8e5   :  { %6254 = vmatpush3.bf16.msra.mxu1 %v6251_v55 }
 0x8e8   :  { %5924 = vmatmul.mubr.msk.f32.vlgmr.msra.gmra.mrb[24].mxu1 %vm361_vm2, %v6977_v0 }
 0x8e9   :  { %5926 = vmatprep.mubr.msk.f32.mxu1 %vm361_vm2, %v6978_v45 }
 0x8ec   :  { %5927 = vmatmul.mubr.msk.f32.gmra.mrb[26].mxu1 %vm361_vm2, %v6979_v3 }
 0x8ed   :  { %5929 = vmatprep.mubr.msk.f32.mxu1 %vm361_vm2, %v6980_v9 }
 0x8f0   :  { %5930 = vmatmul.mubr.msk.f32.gmra.mrb[28].mxu1 %vm361_vm2, %v6981_v23 }
 0x8f1   :  { %5932 = vmatprep.mubr.msk.f32.mxu1 %vm361_vm2, %v6982_v10 }
 0x8f4   :  { %5933 = vmatmul.mubr.msk.f32.gmra.mrb[30].mxu1 %vm361_vm2, %v6983_v52 }
 0x8f5   :  { %5935 = vmatprep.mubr.msk.f32.mxu1 %vm361_vm2, %v6984_v28 }
 0x8f8   :  { %5936 = vmatmul.mubr.msk.f32.gmra.mrb[32].mxu1 %vm361_vm2, %v6985_v5 }
 0x8f9   :  { %5938 = vmatprep.mubr.msk.f32.mxu1 %vm361_vm2, %v6986_v22 }
 0x8fc   :  { %5939 = vmatmul.mubr.msk.f32.gmra.mrb[34].mxu1 %vm361_vm2, %v6987_v41 }
 0x8fd   :  { %5941 = vmatprep.mubr.msk.f32.mxu1 %vm361_vm2, %v6988_v16 }
 0x900   :  { %5942 = vmatmul.mubr.msk.f32.gmra.mrb[36].mxu1 %vm361_vm2, %v6989_v21 }
 0x901   :  { %5944 = vmatprep.mubr.msk.f32.mxu1 %vm361_vm2, %v6990_v7 }
 0x904   :  { %5945 = vmatmul.mubr.msk.f32.gmra.mrb[38].mxu1 %vm361_vm2, %v6991_v58 }
 0x9bb   :  { %v5925_v38 = vpop.f32.mrb[24].mxu1 }
 0x9bc   :  { %v2622_v24 = vpop.f32.mrb[25].mxu1  ;;  %v2706_v61 = vmul.f32 %v5925_v38, %v8499_v13  ;;  %v2746_v29 = vadd.f32 %v5925_v38, %v8509_v34 }
 0x9bd   :  { %v2705_v49 = vmul.f32 %v8499_v13, %v2622_v24  ;;  %v2745_v47 = vadd.f32 %v8509_v34, %v2622_v24 }
 0x9be   :  { %v2726_v35 = vadd.f32 %v8504_v32, %v2706_v61 }
 0x9bf   :  { %v5928_v57 = vpop.f32.mrb[26].mxu1  ;;  %v2725_v15 = vadd.f32 %v8504_v32, %v2705_v49 }
 0x9c0   :  { %v2632_v54 = vpop.f32.mrb[27].mxu1  ;;  %v2708_v39 = vmul.f32 %v5928_v57, %v8499_v13  ;;  %v8522_v40 = vsel %vm680_vm5, %v2726_v35, %v2746_v29  ;;  %v2748_v42 = vadd.f32 %v5928_v57, %v8509_v34 }
 0x9c1   :  { %v2707_v18 = vmul.f32 %v8499_v13, %v2632_v54  ;;  %v8527_v0 = vsel %vm679_vm6, %v2725_v15, %v2745_v47  ;;  %v2747_v45 = vadd.f32 %v8509_v34, %v2632_v54  ;;  %v2922_v10 = vand.u32 2147483647, %v8522_v40  ;;  %v10439_v54 = vld [vmem:[#allocation10_spill] sm:$0xff] }
 0x9c2   :  { %v2728_v30 = vadd.f32 %v8504_v32, %v2708_v39  ;;  %v2921_v41 = vand.u32 2147483647, %v8527_v0  ;;  %vm10440_vm2 = vcmp.eq.s32.totalorder %v10439_v54, 1  ;;  %vm2890_vm10 = vcmp.ne.f32.partialorder %v8522_v40, %v8522_v40 }
 0x9c3   :  { %v5931_v12 = vpop.f32.mrb[28].mxu1  ;;  %v2727_v46 = vadd.f32 %v8504_v32, %v2707_v18  ;;  %v2938_v61 = vsub.f32 0.0, %v2922_v10 }
 0x9c4   :  { %v2642_v62 = vpop.f32.mrb[29].mxu1  ;;  %v2710_v4 = vmul.f32 %v5931_v12, %v8499_v13  ;;  %v8533_v23 = vsel %vm682_vm7, %v2728_v30, %v2748_v42  ;;  %v2750_v58 = vadd.f32 %v5931_v12, %v8509_v34  ;;  %v2937_v15 = vsub.f32 0.0, %v2921_v41 }
 0x9c5   :  { %v2709_v3 = vmul.f32 %v8499_v13, %v2642_v62  ;;  %v8538_v28 = vsel %vm681_vm8, %v2727_v46, %v2747_v45  ;;  %v2924_v7 = vand.u32 2147483647, %v8533_v23  ;;  %v2749_v39 = vadd.f32 %v8509_v34, %v2642_v62  ;;  %v10441_v46 = vld [vmem:[#allocation12_spill] sm:$0xff] }
 0x9c6   :  { %v2730_v5 = vadd.f32 %v8504_v32, %v2710_v4  ;;  %v2923_v24 = vand.u32 2147483647, %v8538_v28  ;;  %vm10442_vm5 = vcmp.eq.s32.totalorder %v10441_v46, 1  ;;  %v2955_v45 = vmul.f32 1.442695, %v2938_v61 }
 0x9c7   :  { %v5934_v37 = vpop.f32.mrb[30].mxu1  ;;  %v2729_v38 = vadd.f32 %v8504_v32, %v2709_v3  ;;  %v2940_v47 = vsub.f32 0.0, %v2924_v7  ;;  %v2876_v19 = vmax.f32 %v8533_v23, 0.0 }
 0x9c8   :  { %v2652_v27 = vpop.f32.mrb[31].mxu1  ;;  %v2712_v16 = vmul.f32 %v5934_v37, %v8499_v13  ;;  %v8550_v49 = vsel %vm10440_vm2, %v2730_v5, %v2750_v58  ;;  %v2939_v63 = vsub.f32 0.0, %v2923_v24  ;;  %v2752_v55 = vadd.f32 %v5934_v37, %v8509_v34 }
 0x9c9   :  { %v2711_v57 = vmul.f32 %v8499_v13, %v2652_v27  ;;  %v8558_v4 = vsel %vm10442_vm5, %v2729_v38, %v2749_v39  ;;  %v2926_v42 = vand.u32 2147483647, %v8550_v49  ;;  %v2953_v5 = vmul.f32 1.442695, %v2937_v15  ;;  %v10445_v15 = vld [vmem:[#allocation15_spill] sm:$0xff] }
 0x9ca   :  { %v2732_v29 = vadd.f32 %v8504_v32, %v2712_v16  ;;  %v2925_v41 = vand.u32 2147483647, %v8558_v4  ;;  %v10443_v16 = vld [vmem:[#allocation14_spill] sm:$0xff]  ;;  %v2751_v58 = vadd.f32 %v8509_v34, %v2652_v27  ;;  %v2959_v54 = vmul.f32 1.442695, %v2940_v47  ;;  %v10449_v27 = vld [vmem:[#allocation17_spill] sm:$0xff] }
 0x9cb   :  { %v5937_v22 = vpop.f32.mrb[32].mxu1  ;;  %v2731_v62 = vadd.f32 %v8504_v32, %v2711_v57  ;;  %vm10444_vm6 = vcmp.eq.s32.totalorder %v10443_v16, 1  ;;  %v2957_v39 = vmul.f32 1.442695, %v2939_v63  ;;  %vm10446_vm7 = vcmp.eq.s32.totalorder %v10445_v15, 1 }
 0x9cc   :  { %v2662_v21 = vpop.f32.mrb[33].mxu1  ;;  %v2714_v18 = vmul.f32 %v5937_v22, %v8499_v13  ;;  %v8569_v7 = vsel %vm10444_vm6, %v2732_v29, %v2752_v55  ;;  %v2754_v38 = vadd.f32 %v5937_v22, %v8509_v34  ;;  %v10447_v29 = vld [vmem:[#allocation16_spill] sm:$0xff]  ;;  %vm10450_vm9 = vcmp.eq.s32.totalorder %v10449_v27, 1 }
 0x9cd   :  { %v2713_v12 = vmul.f32 %v8499_v13, %v2662_v21  ;;  %v2753_v24 = vadd.f32 %v8509_v34, %v2662_v21  ;;  %vm10448_vm8 = vcmp.eq.s32.totalorder %v10447_v29, 1  ;;  %6622 = vpow2.f32 %v2955_v45 }
 0x9ce   :  { %v2734_v3 = vadd.f32 %v8504_v32, %v2714_v18  ;;  %v2942_v18 = vsub.f32 0.0, %v2926_v42  ;;  %v2941_v47 = vsub.f32 0.0, %v2925_v41  ;;  %v2928_v63 = vand.u32 2147483647, %v8569_v7  ;;  %v10453_v41 = vld [vmem:[#allocation19_spill] sm:$0xff] }
 0x9cf   :  { %v5940_v35 = vpop.f32.mrb[34].mxu1  ;;  %v2733_v9 = vadd.f32 %v8504_v32, %v2713_v12  ;;  %v8578_v12 = vsel %vm10446_vm7, %v2731_v62, %v2751_v58  ;;  %6624 = vpow2.f32 %v2953_v5  ;;  %vm10454_vm14 = vcmp.eq.s32.totalorder %v10453_v41, 1 }
 0x9d0   :  { %v2672_v30 = vpop.f32.mrb[35].mxu1  ;;  %v2716_v10 = vmul.f32 %v5940_v35, %v8499_v13  ;;  %v8582_v46 = vsel %vm10448_vm8, %v2734_v3, %v2754_v38  ;;  %v2756_v21 = vadd.f32 %v5940_v35, %v8509_v34  ;;  %v2927_v62 = vand.u32 2147483647, %v8578_v12  ;;  %v10451_v3 = vld [vmem:[#allocation18_spill] sm:$0xff] }
 0x9d1   :  { %v2715_v61 = vmul.f32 %v8499_v13, %v2672_v30  ;;  %v8586_v22 = vsel %vm10450_vm9, %v2733_v9, %v2753_v24  ;;  %v2755_v42 = vadd.f32 %v8509_v34, %v2672_v30  ;;  %vm10452_vm13 = vcmp.eq.s32.totalorder %v10451_v3, 1 }
 0x9d2   :  { %v2736_v57 = vadd.f32 %v8504_v32, %v2716_v10  ;;  %6626 = vpow2.f32 %v2959_v54  ;;  %v2930_v35 = vand.u32 2147483647, %v8582_v46  ;;  %v2929_v45 = vand.u32 2147483647, %v8586_v22 }
 0x9d3   :  { %v5943_v52 = vpop.f32.mrb[36].mxu1  ;;  %v2735_v55 = vadd.f32 %v8504_v32, %v2715_v61  ;;  %6628 = vpow2.f32 %v2957_v39  ;;  %v2963_v30 = vmul.f32 1.442695, %v2942_v18  ;;  %v2944_v61 = vsub.f32 0.0, %v2928_v63 }
 0x9d4   :  { %v2682_v37 = vpop.f32.mrb[37].mxu1  ;;  %v8595_v16 = vsel %vm10452_vm13, %v2736_v57, %v2756_v21  ;;  %v2718_v9 = vmul.f32 %v5943_v52, %v8499_v13  ;;  %v2758_v24 = vadd.f32 %v5943_v52, %v8509_v34  ;;  %v2961_v57 = vmul.f32 1.442695, %v2941_v47  ;;  %v10455_v21 = vld [vmem:[#allocation20_spill] sm:$0xff] }
 0x9d5   :  { %v8602_v38 = vsel %vm10454_vm14, %v2735_v55, %v2755_v42  ;;  %v2932_v15 = vand.u32 2147483647, %v8595_v16  ;;  %v2717_v54 = vmul.f32 %v8499_v13, %v2682_v37  ;;  %v2943_v29 = vsub.f32 0.0, %v2927_v62 }
 0x9d6   :  { %v2738_v5 = vadd.f32 %v8504_v32, %v2718_v9  ;;  %v2931_v27 = vand.u32 2147483647, %v8602_v38  ;;  %vm10456_vm15 = vcmp.eq.s32.totalorder %v10455_v21, 1  ;;  %v2946_v18 = vsub.f32 0.0, %v2930_v35 }
 0x9d7   :  { %v5946_v10 = vpop.f32.mrb[38].mxu1  ;;  %v2945_v55 = vsub.f32 0.0, %v2929_v45  ;;  %v2757_v52 = vadd.f32 %v8509_v34, %v2682_v37  ;;  %v2737_v47 = vadd.f32 %v8504_v32, %v2717_v54  ;;  %6630 = vpow2.f32 %v2963_v30  ;;  %v10459_v45 = vld [vmem:[#allocation22_spill] sm:$0xff]  ;;  %v8628_v54 = vpop.eup %6622 }
 0x9d8   :  { %v2692_v58 = vpop.f32.mrb[39].mxu1  ;;  %v8611_v3 = vsel %vm10456_vm15, %v2738_v5, %v2758_v24  ;;  %v2720_v39 = vmul.f32 %v5946_v10, %v8499_v13  ;;  %v2760_v62 = vadd.f32 %v5946_v10, %v8509_v34  ;;  %v2967_v41 = vmul.f32 1.442695, %v2944_v61 }
 0x9d9   :  { %v2934_v42 = vand.u32 2147483647, %v8611_v3  ;;  %v2719_v9 = vmul.f32 %v8499_v13, %v2692_v58  ;;  %v2948_v5 = vsub.f32 0.0, %v2932_v15  ;;  %v2965_v24 = vmul.f32 1.442695, %v2943_v29  ;;  %v8632_v30 = vpop.eup %6624 }
 0x9da   :  { %v2740_v63 = vadd.f32 %v8504_v32, %v2720_v39  ;;  %v2947_v21 = vsub.f32 0.0, %v2931_v27  ;;  %v8622_v35 = vsel %vm10458_vm0, %v2737_v47, %v2757_v52  ;;  %vm10460_vm4 = vcmp.eq.s32.totalorder %v10459_v45, 1 }
 0x9db   :  { %v2971_v39 = vmul.f32 1.442695, %v2946_v18  ;;  %v2950_v59 = vsub.f32 0.0, %v2934_v42  ;;  %v2933_v10 = vand.u32 2147483647, %v8622_v35  ;;  %v2739_v13 = vadd.f32 %v8504_v32, %v2719_v9  ;;  %v10461_v32 = vld [vmem:[#allocation23_spill] sm:$0xff] }
 0x9dc   :  { %v8626_v37 = vsel %vm10460_vm4, %v2740_v63, %v2760_v62  ;;  %6632 = vpow2.f32 %v2961_v57  ;;  %v2969_v61 = vmul.f32 1.442695, %v2945_v55  ;;  %v8634_v15 = vpop.eup %6626  ;;  %v2975_v56 = vmul.f32 1.442695, %v2948_v5 }
 0x9dd   :  { %6634 = vpow2.f32 %v2967_v41  ;;  %v2936_v29 = vand.u32 2147483647, %v8626_v37  ;;  %v2759_v27 = vadd.f32 %v8509_v34, %v2692_v58  ;;  %v8638_v52 = vpop.eup %6628  ;;  %v2973_v18 = vmul.f32 1.442695, %v2947_v21 }
 0x9de   :  { %6636 = vpow2.f32 %v2965_v24  ;;  %v2979_v42 = vmul.f32 1.442695, %v2950_v59  ;;  %v2949_v47 = vsub.f32 0.0, %v2933_v10  ;;  %vm10462_vm3 = vcmp.eq.s32.totalorder %v10461_v32, 1 }
 0x9df   :  { %6638 = vpow2.f32 %v2971_v39  ;;  %v8642_v63 = vsel %vm10462_vm3, %v2739_v13, %v2759_v27  ;;  %v2994_v57 = vadd.f32 1.0, %v8628_v54  ;;  %v2952_v55 = vsub.f32 0.0, %v2936_v29 }
 0x9e0   :  { %6640 = vpow2.f32 %v2969_v61  ;;  %v2985_v62 = vadd.f32 1.0, %v8632_v30  ;;  %v2935_v34 = vand.u32 2147483647, %v8642_v63  ;;  %v2977_v9 = vmul.f32 1.442695, %v2949_v47 }
 0x9e1   :  { %6642 = vpow2.f32 %v2975_v56  ;;  %v8647_v58 = vpop.eup %6630  ;;  %v2997_v59 = vmul.f32 -0.5, %v8628_v54  ;;  %v3012_v41 = vadd.f32 1.0, %v8634_v15  ;;  %v2988_v5 = vmul.f32 -0.5, %v8632_v30 }
 0x9e2   :  { %6644 = vpow2.f32 %v2973_v18  ;;  %v2983_v24 = vmul.f32 1.442695, %v2952_v55  ;;  %v3000_v21 = vand.u32 2147483647, %v8628_v54  ;;  %v2951_v39 = vsub.f32 0.0, %v2935_v34 }
 0x9e3   :  { %6646 = vpow2.f32 %v2979_v42  ;;  %v3015_v10 = vmul.f32 -0.5, %v8634_v15  ;;  %v3003_v13 = vadd.f32 1.0, %v8638_v52  ;;  %v2874_v56 = vmax.f32 %v8522_v40, 0.0 }
 0x9e4   :  { %6648 = vlog2.f32 %v2994_v57  ;;  %v2998_v29 = vadd.f32 1.0, %v2997_v59  ;;  %v2991_v27 = vand.u32 2147483647, %v8632_v30  ;;  %v2873_v42 = vmax.f32 %v8527_v0, 0.0 }
 0x9e5   :  { %6650 = vlog2.f32 %v2985_v62  ;;  %v2989_v47 = vadd.f32 1.0, %v2988_v5  ;;  %v3030_v32 = vadd.f32 1.0, %v8647_v58  ;;  %vm8667_vm12 = vcmp.lt.f32.partialorder %v3000_v21, 0.0004427343 }
 0x9e6   :  { %v8653_v45 = vpop.eup %6632  ;;  %6652 = vlog2.f32 %v3012_v41  ;;  %v3018_v62 = vand.u32 2147483647, %v8634_v15  ;;  %v3006_v34 = vmul.f32 -0.5, %v8638_v52  ;;  %v8675_v59 = vmul.f32 1.442695, %v2951_v39 }
 0x9e7   :  { %v8657_v61 = vpop.eup %6634  ;;  %6654 = vpow2.f32 %v2977_v9  ;;  %v3016_v41 = vadd.f32 1.0, %v3015_v10  ;;  %v3021_v5 = vadd.f32 1.0, %v8653_v45  ;;  %vm8683_vm11 = vcmp.lt.f32.partialorder %v2991_v27, 0.0004427343 }
 0x9e8   :  { %v8661_v18 = vpop.eup %6636  ;;  %6656 = vlog2.f32 %v3003_v13  ;;  %v3009_v39 = vand.u32 2147483647, %v8638_v52  ;;  %vm2889_vm2 = vcmp.ne.f32.partialorder %v8527_v0, %v8527_v0  ;;  %v2990_v10 = vmul.f32 %v8632_v30, %v2989_v47 }
 0x9e9   :  { %v8665_v57 = vpop.eup %6638  ;;  %6658 = vpow2.f32 %v2983_v24  ;;  %v2999_v24 = vmul.f32 %v8628_v54, %v2998_v29  ;;  %v3033_v43 = vmul.f32 -0.5, %v8647_v58  ;;  %vm2892_vm5 = vcmp.ne.f32.partialorder %v8533_v23, %v8533_v23 }
 0x9ea   :  { %v8673_v9 = vpop.eup %6640  ;;  %6660 = vlog2.f32 %v3030_v32  ;;  %v2875_v32 = vmax.f32 %v8538_v28, 0.0  ;;  %vm8700_vm6 = vcmp.lt.f32.partialorder %v3018_v62, 0.0004427343  ;;  %v3007_v27 = vadd.f32 1.0, %v3006_v34 }
 0x9eb   :  { %v8678_v13 = vpop.eup %6642  ;;  %6662 = vlog2.f32 %v3021_v5  ;;  %v3036_v6 = vand.u32 2147483647, %v8647_v58  ;;  %v3048_v20 = vadd.f32 1.0, %v8657_v61  ;;  %v3017_v47 = vmul.f32 %v8634_v15, %v3016_v41 }
 0x9ec   :  { %v8689_v11 = vpop.eup %6644  ;;  %v2878_v31 = vmax.f32 %v8550_v49, 0.0  ;;  %v3024_v5 = vmul.f32 -0.5, %v8653_v45  ;;  %v3039_v36 = vadd.f32 1.0, %v8661_v18  ;;  %vm2891_vm7 = vcmp.ne.f32.partialorder %v8538_v28, %v8538_v28 }
 0x9ed   :  { %v8696_v54 = vpop.eup %6646  ;;  %vm8712_vm8 = vcmp.lt.f32.partialorder %v3009_v39, 0.0004427343  ;;  %v2877_v34 = vmax.f32 %v8558_v4, 0.0  ;;  %6664 = vlog2.f32 %v3048_v20  ;;  %v3034_v41 = vadd.f32 1.0, %v3033_v43 }
 0x9ee   :  { %v6649_v30 = vpop.eup %6648  ;;  %v3051_v2 = vmul.f32 -0.5, %v8657_v61  ;;  %6666 = vlog2.f32 %v3039_v36  ;;  %v3008_v39 = vmul.f32 %v8638_v52, %v3007_v27  ;;  %vm2894_vm9 = vcmp.ne.f32.partialorder %v8550_v49, %v8550_v49 }
 0x9ef   :  { %v6651_v50 = vpop.eup %6650  ;;  %v2996_v33 = vmul.f32 0.6931472, %v6649_v30  ;;  %vm8725_vm13 = vcmp.lt.f32.partialorder %v3036_v6, 0.0004427343  ;;  %v3025_v43 = vadd.f32 1.0, %v3024_v5  ;;  %vm2893_vm14 = vcmp.ne.f32.partialorder %v8558_v4, %v8558_v4 }
 0x9f0   :  { %v6653_v14 = vpop.eup %6652  ;;  %v2987_v15 = vmul.f32 0.6931472, %v6651_v50  ;;  %v3027_v25 = vand.u32 2147483647, %v8653_v45  ;;  %v3042_v6 = vmul.f32 -0.5, %v8661_v18  ;;  %v3052_v27 = vadd.f32 1.0, %v3051_v2 }
 0x9f1   :  { %v8718_v60 = vpop.eup %6654  ;;  %v3002_v30 = vsel %vm8667_vm12, %v2999_v24, %v2996_v33  ;;  %v3014_v1 = vmul.f32 0.6931472, %v6653_v14  ;;  %vm2896_vm3 = vcmp.ne.f32.partialorder %v8569_v7, %v8569_v7  ;;  %vm2895_vm12 = vcmp.ne.f32.partialorder %v8578_v12, %v8578_v12 }
 0x9f2   :  { %v6657_v50 = vpop.eup %6656  ;;  %v3130_v20 = vadd.f32 %v3002_v30, %v2874_v56  ;;  %v2993_v36 = vsel %vm8683_vm11, %v2990_v10, %v2987_v15  ;;  %v3035_v10 = vmul.f32 %v8647_v58, %v3034_v41  ;;  %v3026_v58 = vmul.f32 %v8653_v45, %v3025_v43 }
 0x9f3   :  { %v8732_v55 = vpop.eup %6658  ;;  %v3129_v14 = vadd.f32 %v2993_v36, %v2873_v42  ;;  %v3020_v33 = vsel %vm8700_vm6, %v3017_v47, %v3014_v1  ;;  %v3005_v52 = vmul.f32 0.6931472, %v6657_v50  ;;  %v3066_v47 = vadd.f32 1.0, %v8665_v57 }
 0x9f4   :  { %v6661_v24 = vpop.eup %6660  ;;  %v3146_v56 = vsel %vm2890_vm10, %v8522_v40, %v3130_v20  ;;  %v3132_v21 = vadd.f32 %v3020_v33, %v2876_v19  ;;  %v3054_v15 = vand.u32 2147483647, %v8657_v61  ;;  %v3043_v30 = vadd.f32 1.0, %v3042_v6 }
 0x9f5   :  { %3179 = vrot.lane.b32.xlu1 %v3146_v56, %s7034_s21  ;;  %v3145_v1 = vsel %vm2889_vm2, %v8527_v0, %v3129_v14  ;;  %v3011_v42 = vsel %vm8712_vm8, %v3008_v39, %v3005_v52  ;;  %v3032_v29 = vmul.f32 0.6931472, %v6661_v24  ;;  %v6663_v5 = vpop.eup %6662  ;;  %6668 = vlog2.f32 %v3066_v47 }
 0x9f6   :  { %3177 = vrot.lane.b32.xlu0 %v3145_v1, %s7034_s21  ;;  %v3148_v2 = vsel %vm2892_vm5, %v8533_v23, %v3132_v21  ;;  %v3131_v19 = vadd.f32 %v3011_v42, %v2875_v32  ;;  %v3023_v41 = vmul.f32 0.6931472, %v6663_v5  ;;  %vm3028_vm15 = vcmp.lt.f32.partialorder %v3027_v25, 0.0004427343 }
 0x9f7   :  { %v3038_v62 = vsel %vm8725_vm13, %v3035_v10, %v3032_v29  ;;  %v3045_v20 = vand.u32 2147483647, %v8661_v18  ;;  %v6665_v32 = vpop.eup %6664  ;;  %v2880_v36 = vmax.f32 %v8569_v7, 0.0  ;;  %v3053_v44 = vmul.f32 %v8657_v61, %v3052_v27 }
 0x9f8   :  { %v3147_v39 = vsel %vm2891_vm7, %v8538_v28, %v3131_v19  ;;  %v3134_v50 = vadd.f32 %v3038_v62, %v2878_v31  ;;  %v3029_v45 = vsel %vm3028_vm15, %v3026_v58, %v3023_v41  ;;  %v3057_v43 = vadd.f32 1.0, %v8673_v9  ;;  %v6667_v14 = vpop.eup %6666 }
 0x9f9   :  { %3183 = vrot.lane.b32.xlu1 %v3148_v2, %s7034_s21  ;;  %v3133_v31 = vadd.f32 %v3029_v45, %v2877_v34  ;;  %v3050_v33 = vmul.f32 0.6931472, %v6665_v32  ;;  %v3069_v52 = vmul.f32 -0.5, %v8665_v57  ;;  %vm3055_vm0 = vcmp.lt.f32.partialorder %v3054_v15, 0.0004427343 }
 0x9fa   :  { %3181 = vrot.lane.b32.xlu0 %v3147_v39, %s7034_s21  ;;  %v3150_v25 = vsel %vm2894_vm9, %v8550_v49, %v3134_v50  ;;  %v3041_v6 = vmul.f32 0.6931472, %v6667_v14  ;;  %v3044_v24 = vmul.f32 %v8661_v18, %v3043_v30  ;;  %6670 = vlog2.f32 %v3057_v43 }
 0x9fb   :  { %v3149_v61 = vsel %vm2893_vm14, %v8558_v4, %v3133_v31  ;;  %v3056_v56 = vsel %vm3055_vm0, %v3053_v44, %v3050_v33  ;;  %v2879_v21 = vmax.f32 %v8578_v12, 0.0  ;;  %vm3046_vm4 = vcmp.lt.f32.partialorder %v3045_v20, 0.0004427343 }
 0x9fc   :  { %6672 = vpow2.f32 %v8675_v59  ;;  %v3136_v34 = vadd.f32 %v3056_v56, %v2880_v36  ;;  %v3047_v10 = vsel %vm3046_vm4, %v3044_v24, %v3041_v6  ;;  %v3060_v27 = vmul.f32 -0.5, %v8673_v9 }
 0x9fd   :  { %3187 = vrot.lane.b32.xlu1 %v3150_v25, %s7034_s21  ;;  %v3135_v18 = vadd.f32 %v3047_v10, %v2879_v21  ;;  %v3070_v1 = vadd.f32 1.0, %v3069_v52  ;;  %v3084_v42 = vadd.f32 1.0, %v8678_v13  ;;  %v3072_v59 = vand.u32 2147483647, %v8665_v57 }
 0x9fe   :  { %3185 = vrot.lane.b32.xlu0 %v3149_v61, %s7034_s21  ;;  %v3152_v29 = vsel %vm2896_vm3, %v8569_v7, %v3136_v34  ;;  %v3075_v47 = vadd.f32 1.0, %v8689_v11  ;;  %v3061_v19 = vadd.f32 1.0, %v3060_v27  ;;  %v3087_v62 = vmul.f32 -0.5, %v8678_v13 }
 0x9ff   :  { %v3151_v5 = vsel %vm2895_vm12, %v8578_v12, %v3135_v18  ;;  %6674 = vlog2.f32 %v3084_v42  ;;  %v6669_v2 = vpop.eup %6668  ;;  %v3071_v15 = vmul.f32 %v8665_v57, %v3070_v1  ;;  %v3102_v41 = vadd.f32 1.0, %v8696_v54 }
 0xa00   :  { %6676 = vlog2.f32 %v3075_v47  ;;  %v3068_v58 = vmul.f32 0.6931472, %v6669_v2  ;;  %v2882_v30 = vmax.f32 %v8582_v46, 0.0  ;;  %vm3073_vm10 = vcmp.lt.f32.partialorder %v3072_v59, 0.0004427343 }
 0xa01   :  { %3191 = vrot.lane.b32.xlu1 %v3152_v29, %s7034_s21  ;;  %v3063_v39 = vand.u32 2147483647, %v8673_v9  ;;  %v3078_v20 = vmul.f32 -0.5, %v8689_v11  ;;  %6678 = vlog2.f32 %v3102_v41  ;;  %vm2898_vm11 = vcmp.ne.f32.partialorder %v8582_v46, %v8582_v46 }
 0xa02   :  { %3189 = vrot.lane.b32.xlu0 %v3151_v5, %s7034_s21  ;;  %v3074_v50 = vsel %vm3073_vm10, %v3071_v15, %v3068_v58  ;;  %v3062_v57 = vmul.f32 %v8673_v9, %v3061_v19  ;;  %v3090_v36 = vand.u32 2147483647, %v8678_v13  ;;  %v3088_v43 = vadd.f32 1.0, %v3087_v62 }
 0xa03   :  { %v3138_v45 = vadd.f32 %v3074_v50, %v2882_v30  ;;  %v3105_v14 = vmul.f32 -0.5, %v8696_v54  ;;  %v3093_v25 = vadd.f32 1.0, %v8718_v60  ;;  %v2881_v52 = vmax.f32 %v8586_v22, 0.0 }
 0xa04   :  { %v6671_v32 = vpop.eup %6670  ;;  %vm2897_vm2 = vcmp.ne.f32.partialorder %v8586_v22, %v8586_v22  ;;  %vm3064_vm5 = vcmp.lt.f32.partialorder %v3063_v39, 0.0004427343  ;;  %v2884_v6 = vmax.f32 %v8595_v16, 0.0  ;;  %v3079_v24 = vadd.f32 1.0, %v3078_v20 }
 0xa05   :  { %v3059_v44 = vmul.f32 0.6931472, %v6671_v32  ;;  %v3154_v33 = vsel %vm2898_vm11, %v8582_v46, %v3138_v45  ;;  %6680 = vlog2.f32 %v3093_v25  ;;  %vm2900_vm6 = vcmp.ne.f32.partialorder %v8595_v16, %v8595_v16 }
 0xa06   :  { %v8809_v31 = vpop.eup %6672  ;;  %3195 = vrot.lane.b32.xlu1 %v3154_v33, %s7034_s21  ;;  %v3081_v56 = vand.u32 2147483647, %v8689_v11  ;;  %v3120_v21 = vadd.f32 1.0, %v8732_v55  ;;  %v3089_v10 = vmul.f32 %v8678_v13, %v3088_v43  ;;  %vm8822_vm7 = vcmp.lt.f32.partialorder %v3090_v36, 0.0004427343 }
 0xa07   :  { %v3065_v9 = vsel %vm3064_vm5, %v3062_v57, %v3059_v44  ;;  %v3106_v18 = vadd.f32 1.0, %v3105_v14  ;;  %v3111_v1 = vadd.f32 1.0, %v8809_v31  ;;  %v3096_v47 = vmul.f32 -0.5, %v8718_v60 }
 0xa08   :  { %v3137_v61 = vadd.f32 %v3065_v9, %v2881_v52  ;;  %6682 = vlog2.f32 %v3120_v21  ;;  %v3080_v5 = vmul.f32 %v8689_v11, %v3079_v24  ;;  %v3108_v2 = vand.u32 2147483647, %v8696_v54 }
 0xa09   :  { %v6675_v34 = vpop.eup %6674  ;;  %6684 = vlog2.f32 %v3111_v1  ;;  %v2883_v58 = vmax.f32 %v8602_v38, 0.0  ;;  %vm2899_vm8 = vcmp.ne.f32.partialorder %v8602_v38, %v8602_v38  ;;  %vm3082_vm9 = vcmp.lt.f32.partialorder %v3081_v56, 0.0004427343 }
 0xa0a   :  { %v6677_v42 = vpop.eup %6676  ;;  %v3153_v29 = vsel %vm2897_vm2, %v8586_v22, %v3137_v61  ;;  %v3086_v59 = vmul.f32 0.6931472, %v6675_v34  ;;  %v3107_v30 = vmul.f32 %v8696_v54, %v3106_v18  ;;  %v3123_v39 = vmul.f32 -0.5, %v8732_v55 }
 0xa0b   :  { %3193 = vrot.lane.b32.xlu0 %v3153_v29, %s7034_s21  ;;  %v3077_v13 = vmul.f32 0.6931472, %v6677_v42  ;;  %v6679_v15 = vpop.eup %6678  ;;  %v3097_v20 = vadd.f32 1.0, %v3096_v47  ;;  %v3114_v32 = vmul.f32 -0.5, %v8809_v31  ;;  %v2886_v57 = vmax.f32 %v8611_v3, 0.0 }
 0xa0c   :  { %v3092_v19 = vsel %vm8822_vm7, %v3089_v10, %v3086_v59  ;;  %v3104_v50 = vmul.f32 0.6931472, %v6679_v15  ;;  %vm3109_vm13 = vcmp.lt.f32.partialorder %v3108_v2, 0.0004427343  ;;  %v3099_v36 = vand.u32 2147483647, %v8718_v60 }
 0xa0d   :  { %v3140_v62 = vadd.f32 %v3092_v19, %v2884_v6  ;;  %v3083_v41 = vsel %vm3082_vm9, %v3080_v5, %v3077_v13  ;;  %vm2902_vm14 = vcmp.ne.f32.partialorder %v8611_v3, %v8611_v3  ;;  %v3124_v25 = vadd.f32 1.0, %v3123_v39 }
 0xa0e   :  { %v3139_v11 = vadd.f32 %v3083_v41, %v2883_v58  ;;  %v3110_v44 = vsel %vm3109_vm13, %v3107_v30, %v3104_v50  ;;  %v3098_v52 = vmul.f32 %v8718_v60, %v3097_v20  ;;  %v3126_v9 = vand.u32 2147483647, %v8732_v55 }
 0xa0f   :  { %v3156_v45 = vsel %vm2900_vm6, %v8595_v16, %v3140_v62  ;;  %v6681_v43 = vpop.eup %6680  ;;  %v3142_v14 = vadd.f32 %v3110_v44, %v2886_v57  ;;  %v3115_v6 = vadd.f32 1.0, %v3114_v32  ;;  %v2885_v61 = vmax.f32 %v8622_v35, 0.0 }
 0xa10   :  { %3199 = vrot.lane.b32.xlu1 %v3156_v45, %s7034_s21  ;;  %v3155_v54 = vsel %vm2899_vm8, %v8602_v38, %v3139_v11  ;;  %v3095_v33 = vmul.f32 0.6931472, %v6681_v43  ;;  %vm3100_vm15 = vcmp.lt.f32.partialorder %v3099_v36, 0.0004427343  ;;  %v3117_v56 = vand.u32 2147483647, %v8809_v31 }
 0xa11   :  { %3197 = vrot.lane.b32.xlu0 %v3155_v54, %s7034_s21  ;;  %v3158_v24 = vsel %vm2902_vm14, %v8611_v3, %v3142_v14  ;;  %vm2901_vm0 = vcmp.ne.f32.partialorder %v8622_v35, %v8622_v35  ;;  %v3125_v18 = vmul.f32 %v8732_v55, %v3124_v25  ;;  %v2888_v1 = vmax.f32 %v8626_v37, 0.0 }
 0xa12   :  { %v6683_v21 = vpop.eup %6682  ;;  %v3101_v34 = vsel %vm3100_vm15, %v3098_v52, %v3095_v33  ;;  %vm3127_vm4 = vcmp.lt.f32.partialorder %v3126_v9, 0.0004427343  ;;  %v3116_v29 = vmul.f32 %v8809_v31, %v3115_v6  ;;  %v2887_v13 = vmax.f32 %v8642_v63, 0.0 }
 0xa13   :  { %v6685_v10 = vpop.eup %6684  ;;  %v3141_v27 = vadd.f32 %v3101_v34, %v2885_v61  ;;  %v3122_v60 = vmul.f32 0.6931472, %v6683_v21  ;;  %vm3118_vm3 = vcmp.lt.f32.partialorder %v3117_v56, 0.0004427343  ;;  %vm2904_vm12 = vcmp.ne.f32.partialorder %v8626_v37, %v8626_v37 }
 0xa14   :  { %3203 = vrot.lane.b32.xlu1 %v3158_v24, %s7034_s21  ;;  %v3113_v42 = vmul.f32 0.6931472, %v6685_v10  ;;  %vm2903_vm10 = vcmp.ne.f32.partialorder %v8642_v63, %v8642_v63  ;;  %v8881_v58 = vrot.slane %v8495_v51, %v7759_v8  ;;  %v5400_v15 = vmul.f32 -1.442695, %v8522_v40 }
 0xa15   :  { %v3157_v59 = vsel %vm2901_vm0, %v8622_v35, %v3141_v27  ;;  %v3128_v47 = vsel %vm3127_vm4, %v3125_v18, %v3122_v60  ;;  %v5399_v62 = vmul.f32 -1.442695, %v8527_v0  ;;  %v5402_v41 = vmul.f32 -1.442695, %v8533_v23 }
 0xa16   :  { %3201 = vrot.lane.b32.xlu0 %v3157_v59, %s7034_s21  ;;  %v3144_v5 = vadd.f32 %v3128_v47, %v2888_v1  ;;  %v3119_v2 = vsel %vm3118_vm3, %v3116_v29, %v3113_v42  ;;  %6686 = vpow2.f32 %v5400_v15  ;;  %v5401_v30 = vmul.f32 -1.442695, %v8538_v28 }
 0xa17   :  { %v3143_v55 = vadd.f32 %v3119_v2, %v2887_v13  ;;  %6688 = vpow2.f32 %v5399_v62  ;;  %v5404_v39 = vmul.f32 -1.442695, %v8550_v49  ;;  %v5403_v8 = vmul.f32 -1.442695, %v8558_v4 }
 0xa18   :  { %v3160_v19 = vsel %vm2904_vm12, %v8626_v37, %v3144_v5  ;;  %6690 = vpow2.f32 %v5402_v41  ;;  %v5406_v51 = vmul.f32 -1.442695, %v8569_v7  ;;  %v5405_v40 = vmul.f32 -1.442695, %v8578_v12 }
 0xa19   :  { %3207 = vrot.lane.b32.xlu1 %v3160_v19, %s7034_s21  ;;  %v3159_v31 = vsel %vm2903_vm10, %v8642_v63, %v3143_v55  ;;  %6692 = vpow2.f32 %v5401_v30  ;;  %v5408_v32 = vmul.f32 -1.442695, %v8582_v46  ;;  %v5407_v7 = vmul.f32 -1.442695, %v8586_v22 }
 0xa1a   :  { %3205 = vrot.lane.b32.xlu0 %v3159_v31, %s7034_s21  ;;  %6694 = vpow2.f32 %v5404_v39  ;;  %v5410_v43 = vmul.f32 -1.442695, %v8595_v16  ;;  %v5409_v46 = vmul.f32 -1.442695, %v8602_v38  ;;  %v5412_v22 = vmul.f32 -1.442695, %v8611_v3 }
 0xa1b   :  { %6696 = vpow2.f32 %v5403_v8  ;;  %v5411_v21 = vmul.f32 -1.442695, %v8622_v35  ;;  %v5414_v59 = vmul.f32 -1.442695, %v8626_v37  ;;  %v5413_v13 = vmul.f32 -1.442695, %v8642_v63 }
 0xa1c   :  { %6698 = vpow2.f32 %v5406_v51  ;;  %v10476_v63 = vld [vmem:[#allocation25_spill] sm:$0xff]  ;;  %vm3421_vm11 = vcmask 130048   ;;  %vm7036_vm15 = vmmov 0  }
 0xa1d   :  { %6700 = vpow2.f32 %v5405_v40 }
 0xa1e   :  { %3341 = vrot.lane.b32.xlu0 %v8881_v58, %s7034_s21 }
 0xa20   :  { %v6687_v11 = vpop.eup %6686 }
 0xa21   :  { %v6689_v0 = vpop.eup %6688  ;;  %v2826_v23 = vadd.f32 1.0, %v6687_v11 }
 0xa22   :  { %v6691_v50 = vpop.eup %6690  ;;  %v2825_v20 = vadd.f32 1.0, %v6689_v0 }
 0xa23   :  { %v6693_v28 = vpop.eup %6692  ;;  %6702 = vrcp.f32 %v2826_v23  ;;  %v2828_v49 = vadd.f32 1.0, %v6691_v50 }
 0xa24   :  { %v6695_v45 = vpop.eup %6694  ;;  %6704 = vrcp.f32 %v2825_v20  ;;  %v2827_v4 = vadd.f32 1.0, %v6693_v28  ;;  %v10477_v20 = vld [vmem:[#allocation26_spill] sm:$0xff] }
 0xa25   :  { %v6697_v57 = vpop.eup %6696  ;;  %6706 = vpow2.f32 %v5408_v32  ;;  %v2830_v12 = vadd.f32 1.0, %v6695_v45 }
 0xa26   :  { %6708 = vrcp.f32 %v2828_v49  ;;  %v6699_v36 = vpop.eup %6698  ;;  %v2829_v54 = vadd.f32 1.0, %v6697_v57  ;;  %v10478_v49 = vld [vmem:[#allocation27_spill] sm:$0xff] }
 0xa27   :  { %6710 = vrcp.f32 %v2827_v4  ;;  %v6701_v44 = vpop.eup %6700  ;;  %v2832_v14 = vadd.f32 1.0, %v6699_v36 }
 0xa28   :  { %6712 = vpow2.f32 %v5407_v7  ;;  %v2831_v25 = vadd.f32 1.0, %v6701_v44 }
 0xa29   :  { %6714 = vrcp.f32 %v2830_v12 }
 0xa2a   :  { %6716 = vrcp.f32 %v2829_v54 }
 0xa2b   :  { %6718 = vpow2.f32 %v5410_v43 }
 0xa2c   :  { %6720 = vpow2.f32 %v5409_v46 }
 0xa2d   :  { %v6703_v33 = vpop.eup %6702  ;;  %6722 = vrcp.f32 %v2832_v14 }
 0xa2e   :  { %v6705_v9 = vpop.eup %6704  ;;  %6724 = vrcp.f32 %v2831_v25 }
 0xa2f   :  { %v6707_v61 = vpop.eup %6706  ;;  %6726 = vpow2.f32 %v5412_v22 }
 0xa30   :  { %v6709_v38 = vpop.eup %6708  ;;  %v2834_v1 = vadd.f32 1.0, %v6707_v61  ;;  %6728 = vpow2.f32 %v5411_v21 }
 0xa31   :  { %v6711_v27 = vpop.eup %6710 }
 0xa32   :  { %v6713_v3 = vpop.eup %6712  ;;  %6730 = vrcp.f32 %v2834_v1 }
 0xa33   :  { %v2833_v19 = vadd.f32 1.0, %v6713_v3  ;;  %6732 = vpow2.f32 %v5414_v59  ;;  %v10482_v3 = vld [vmem:[#allocation31_spill] sm:$0xff] }
 0xa34   :  { %6734 = vpow2.f32 %v5413_v13 }
 0xa35   :  { %6736 = vrcp.f32 %v2833_v19 }
 0xa67   :  { %v3180_v52 = vpop.permute.xlu1 %3179 }
 0xa68   :  { %v3226_v6 = vmul.f32 %v6703_v33, %v3180_v52  ;;  %v3178_v24 = vpop.permute.xlu0 %3177  ;;  %v10479_v33 = vld [vmem:[#allocation28_spill] sm:$0xff] }
 0xa69   :  { %v3225_v56 = vmul.f32 %v6705_v9, %v3178_v24 }
 0xa6a   :  { %v3242_v16 = vmul.f32 %v3226_v6, %v7773_v17  ;;  %v6715_v17 = vpop.eup %6714  ;;  %v10480_v6 = vld [vmem:[#allocation29_spill] sm:$0xff] }
 0xa6b   :  { %v3241_v34 = vmul.f32 %v3225_v56, %v7775_v53  ;;  %v3184_v10 = vpop.permute.xlu1 %3183  ;;  %v6717_v5 = vpop.eup %6716 }
 0xa6c   :  { %v3228_v60 = vmul.f32 %v6709_v38, %v3184_v10  ;;  %v3182_v18 = vpop.permute.xlu0 %3181  ;;  %v6719_v31 = vpop.eup %6718 }
 0xa6d   :  { %v3227_v42 = vmul.f32 %v6711_v27, %v3182_v18  ;;  %v6255_v29 = vpack.c.bf16 %v3242_v16, %v3241_v34  ;;  %v6721_v37 = vpop.eup %6720  ;;  %v2836_v23 = vadd.f32 1.0, %v6719_v31 }
 0xa6e   :  { %v3244_v47 = vmul.f32 %v3228_v60, %v7777_v48  ;;  %v10475_v48 = vld [vmem:[#allocation24_spill] sm:$0xff]  ;;  %v6723_v30 = vpop.eup %6722  ;;  %v2835_v32 = vadd.f32 1.0, %v6721_v37  ;;  %v10481_v60 = vld [vmem:[#allocation30_spill] sm:$0xff] }
 0xa6f   :  { %v3243_v35 = vmul.f32 %v3227_v42, %v7779_v26  ;;  %6256 = vmatprep.subr.bf16.mxu0 %v6255_v29  ;;  %v3188_v53 = vpop.permute.xlu1 %3187  ;;  %v6725_v8 = vpop.eup %6724  ;;  %6738 = vrcp.f32 %v2836_v23 }
 0xa70   :  { %v3230_v2 = vmul.f32 %v6715_v17, %v3188_v53  ;;  %6258 = vmatpush3.bf16.msra.mxu0 %v6255_v29  ;;  %v3186_v55 = vpop.permute.xlu0 %3185  ;;  %v6727_v50 = vpop.eup %6726  ;;  %6740 = vrcp.f32 %v2835_v32 }
 0xa71   :  { %v3229_v15 = vmul.f32 %v6717_v5, %v3186_v55  ;;  %v6259_v62 = vpack.c.bf16 %v3244_v47, %v3243_v35  ;;  %v6729_v4 = vpop.eup %6728  ;;  %v2838_v7 = vadd.f32 1.0, %v6727_v50  ;;  %v10483_v35 = vld [vmem:[#allocation32_spill] sm:$0xff]  ;;  %v10484_v55 = vld [vmem:[#allocation33_spill] sm:$0xff] }
 0xa72   :  { %v3246_v41 = vmul.f32 %v3230_v2, %v10475_v48  ;;  %v6731_v12 = vpop.eup %6730  ;;  %v2837_v46 = vadd.f32 1.0, %v6729_v4 }
 0xa73   :  { %v3245_v39 = vmul.f32 %v3229_v15, %v10476_v63  ;;  %6260 = vmatprep.subr.bf16.mxu0 %v6259_v62  ;;  %v3192_v26 = vpop.permute.xlu1 %3191  ;;  %v6733_v44 = vpop.eup %6732  ;;  %6742 = vrcp.f32 %v2838_v7 }
 0xa74   :  { %v3232_v51 = vmul.f32 %v6723_v30, %v3192_v26  ;;  %6262 = vmatpush3.bf16.msra.mxu0 %v6259_v62  ;;  %v3190_v40 = vpop.permute.xlu0 %3189  ;;  %v6735_v43 = vpop.eup %6734  ;;  %v2840_v22 = vadd.f32 1.0, %v6733_v44  ;;  %6744 = vrcp.f32 %v2837_v46  ;;  %v10485_v30 = vld [vmem:[#allocation34_spill] sm:$0xff] }
 0xa75   :  { %v3231_v11 = vmul.f32 %v6725_v8, %v3190_v40  ;;  %v6263_v0 = vpack.c.bf16 %v3246_v41, %v3245_v39  ;;  %v6737_v14 = vpop.eup %6736  ;;  %v2839_v61 = vadd.f32 1.0, %v6735_v43  ;;  %v10486_v39 = vld [vmem:[#allocation35_spill] sm:$0xff] }
 0xa76   :  { %v3248_v28 = vmul.f32 %v3232_v51, %v10477_v20  ;;  %6746 = vrcp.f32 %v2840_v22  ;;  %v6992_v51 = vld [vmem:[%s10233_s4 + $0x8] sm:$0xff]  ;;  %v3405_v40 = vld [vmem:[%s10231_s2] sm:$0xff] }
 0xa77   :  { %v3247_v45 = vmul.f32 %v3231_v11, %v10478_v49  ;;  %6264 = vmatprep.subr.bf16.mxu0 %v6263_v0  ;;  %6748 = vrcp.f32 %v2839_v61  ;;  %v3386_v11 = vld [vmem:[%s10239_s10 + $0x20] sm:$0xff] }
 0xa78   :  { %6266 = vmatpush3.bf16.msra.mxu0 %v6263_v0  ;;  %v3196_v36 = vpop.permute.xlu1 %3195  ;;  %v3387_v0 = vld [vmem:[%s10239_s10 + $0x28] sm:$0xff] }
 0xa79   :  { %v6267_v57 = vpack.c.bf16 %v3248_v28, %v3247_v45  ;;  %v3234_v54 = vmul.f32 %v6731_v12, %v3196_v36  ;;  %v6739_v56 = vpop.eup %6738  ;;  %v8930_v23 = vpack.c.bf16 %v3387_v0, %v3386_v11  ;;  %v10487_v45 = vld [vmem:[#allocation36_spill] sm:$0xff]  ;;  %v3412_v0 = vld [vmem:[%s10231_s2 + $0x38] sm:$0xff] }
 0xa7a   :  { %v6741_v21 = vpop.eup %6740 }
 0xa7b   :  { %6268 = vmatprep.subr.bf16.mxu0 %v6267_v57  ;;  %v3250_v52 = vmul.f32 %v3234_v54, %v10479_v33  ;;  %6324 = vmatprep.subr.bf16.mxu1 %v8930_v23  ;;  %v8941_v33 = vld [vmem:[%s10232_s3] sm:$0xff] }
 0xa7c   :  { %6270 = vmatpush3.bf16.msra.mxu0 %v6267_v57  ;;  %6325 = vmatpush3.bf16.msra.mxu1 %v8930_v23  ;;  %v10488_v57 = vld [vmem:[#allocation37_spill] sm:$0xff]  ;;  %vm3919_vm13 = vcmp.ne.f32.partialorder %v8941_v33, %v8941_v33 }
 0xa7d   :  { %v3194_v25 = vpop.permute.xlu0 %3193  ;;  %v6743_v1 = vpop.eup %6742 }
 0xa7e   :  { %v3233_v9 = vmul.f32 %v6737_v14, %v3194_v25  ;;  %v6745_v17 = vpop.eup %6744 }
 0xa80   :  { %v3249_v24 = vmul.f32 %v3233_v9, %v10480_v6  ;;  %v6747_v2 = vpop.eup %6746  ;;  %v3951_v9 = vand.u32 2147483647, %v8941_v33 }
 0xa81   :  { %v6749_v15 = vpop.eup %6748 }
 0xa82   :  { %v3200_v16 = vpop.permute.xlu1 %3199  ;;  %v6271_v38 = vpack.c.bf16 %v3250_v52, %v3249_v24 }
 0xa83   :  { %v3236_v34 = vmul.f32 %v6739_v56, %v3200_v16  ;;  %v3198_v10 = vpop.permute.xlu0 %3197  ;;  %v3967_v56 = vsub.f32 0.0, %v3951_v9 }
 0xa84   :  { %v3235_v27 = vmul.f32 %v6741_v21, %v3198_v10  ;;  %6272 = vmatprep.subr.bf16.mxu0 %v6271_v38 }
 0xa85   :  { %v3252_v18 = vmul.f32 %v3236_v34, %v10481_v60  ;;  %6274 = vmatpush3.bf16.msra.mxu0 %v6271_v38  ;;  %v3983_v34 = vmul.f32 1.442695, %v3967_v56 }
 0xa86   :  { %v3251_v42 = vmul.f32 %v3235_v27, %v10482_v3  ;;  %v3204_v29 = vpop.permute.xlu1 %3203 }
 0xa87   :  { %v3238_v59 = vmul.f32 %v6743_v1, %v3204_v29 }
 0xa88   :  { %v6275_v47 = vpack.c.bf16 %v3252_v18, %v3251_v42  ;;  %v3202_v13 = vpop.permute.xlu0 %3201 }
 0xa89   :  { %v3254_v53 = vmul.f32 %v3238_v59, %v10483_v35  ;;  %v3237_v5 = vmul.f32 %v6745_v17, %v3202_v13 }
 0xa8a   :  { %6276 = vmatprep.subr.bf16.mxu0 %v6275_v47 }
 0xa8b   :  { %6278 = vmatpush3.bf16.msra.mxu0 %v6275_v47  ;;  %v3253_v19 = vmul.f32 %v3237_v5, %v10484_v55  ;;  %v3208_v31 = vpop.permute.xlu1 %3207 }
 0xa8c   :  { %v3240_v62 = vmul.f32 %v6747_v2, %v3208_v31  ;;  %v3206_v37 = vpop.permute.xlu0 %3205 }
 0xa8d   :  { %v3239_v48 = vmul.f32 %v6749_v15, %v3206_v37  ;;  %v6279_v41 = vpack.c.bf16 %v3254_v53, %v3253_v19 }
 0xa8e   :  { %v3256_v63 = vmul.f32 %v3240_v62, %v10485_v30 }
 0xa8f   :  { %v3255_v26 = vmul.f32 %v3239_v48, %v10486_v39  ;;  %6280 = vmatprep.subr.bf16.mxu0 %v6279_v41  ;;  %v3406_v48 = vld [vmem:[%s10231_s2 + $0x8] sm:$0xff] }
 0xa90   :  { %6282 = vmatpush3.bf16.msra.mxu0 %v6279_v41  ;;  %v3342_v49 = vpop.permute.xlu0 %3341  ;;  %v3407_v41 = vld [vmem:[%s10231_s2 + $0x10] sm:$0xff] }
 0xa91   :  { %v6283_v8 = vpack.c.bf16 %v3256_v63, %v3255_v26  ;;  %v3408_v63 = vld [vmem:[%s10231_s2 + $0x18] sm:$0xff]  ;;  %v3409_v26 = vld [vmem:[%s10231_s2 + $0x20] sm:$0xff] }
 0xa93   :  { %6284 = vmatprep.subr.bf16.mxu0 %v6283_v8 }
 0xa94   :  { %6286 = vmatpush3.bf16.msra.mxu0 %v6283_v8  ;;  %v10325_v8 = vmov 0.0|0.0  }
 0xa97   :  { %5980 = vmatmul.mubr.f32.vlgmr.msra.gmra.mrb[26].mxu0 %v6992_v51  ;;  %v3410_v51 = vld [vmem:[%s10231_s2 + $0x28] sm:$0xff] }
 0xa98   :  { %5986 = vmatprep.mubr.msk.f32.mxu0 %vm3421_vm11, %v3405_v40  ;;  %v3411_v40 = vld [vmem:[%s10231_s2 + $0x30] sm:$0xff] }
 0xb6a   :  { %v5981_v50 = vpop.f32.mrb[26].mxu0 }
 0xb6b   :  { %v3337_v20 = vmul.f32 %v5981_v50, %v8881_v58  ;;  %v3323_v28 = vpop.f32.mrb[27].mxu0 }
 0xb6c   :  { %v3336_v32 = vmul.f32 %v8881_v58, %v3323_v28  ;;  %v8946_v58 = vld [vmem:[%s10232_s3 + $0x8] sm:$0xff] }
 0xb6d   :  { %v3339_v4 = vadd.f32 %v3337_v20, %v10487_v45  ;;  %v3952_v61 = vand.u32 2147483647, %v8946_v58  ;;  %v3415_v45 = vld [vmem:[%s10231_s2 + $0x50] sm:$0xff]  ;;  %v3904_v9 = vmax.f32 %v8946_v58, 0.0  ;;  %vm3920_vm14 = vcmp.ne.f32.partialorder %v8946_v58, %v8946_v58 }
 0xb6e   :  { %v3338_v7 = vadd.f32 %v3336_v32, %v10488_v57 }
 0xb6f   :  { %v3345_v12 = vadd.f32 %v3342_v49, %v3339_v4  ;;  %v3968_v38 = vsub.f32 0.0, %v3952_v61  ;;  %v3420_v61 = vld [vmem:[%s10231_s2 + $0x78] sm:$0xff] }
 0xb70   :  { %v3344_v36 = vadd.f32 %v3342_v49, %v3338_v7  ;;  %v3414_v49 = vld [vmem:[%s10231_s2 + $0x48] sm:$0xff] }
 0xb71   :  { %v3353_v54 = vand.u32 2147483647, %v3345_v12  ;;  %v3985_v27 = vmul.f32 1.442695, %v3968_v38  ;;  %v3347_v47 = vmax.f32 %v3345_v12, 0.0  ;;  %vm3349_vm6 = vcmp.ne.f32.partialorder %v3345_v12, %v3345_v12 }
 0xb72   :  { %v3352_v44 = vand.u32 2147483647, %v3344_v36  ;;  %v3346_v35 = vmax.f32 %v3344_v36, 0.0  ;;  %vm3348_vm7 = vcmp.ne.f32.partialorder %v3344_v36, %v3344_v36 }
 0xb73   :  { %v3355_v43 = vsub.f32 0.0, %v3353_v54  ;;  %v3416_v54 = vld [vmem:[%s10231_s2 + $0x58] sm:$0xff] }
 0xb74   :  { %v3354_v46 = vsub.f32 0.0, %v3352_v44  ;;  %v3417_v44 = vld [vmem:[%s10231_s2 + $0x60] sm:$0xff] }
 0xb75   :  { %v3358_v14 = vmul.f32 1.442695, %v3355_v43  ;;  %v3903_v43 = vmax.f32 %v8941_v33, 0.0 }
 0xb76   :  { %v3356_v25 = vmul.f32 1.442695, %v3354_v46 }
 0xb77   :  { %6750 = vpow2.f32 %v3358_v14 }
 0xb78   :  { %6752 = vpow2.f32 %v3356_v25 }
 0xb81   :  { %v6751_v52 = vpop.eup %6750 }
 0xb82   :  { %v6753_v22 = vpop.eup %6752  ;;  %v3369_v6 = vadd.f32 1.0, %v6751_v52  ;;  %v3372_v16 = vmul.f32 -0.5, %v6751_v52  ;;  %v3375_v18 = vand.u32 2147483647, %v6751_v52 }
 0xb83   :  { %v3360_v24 = vadd.f32 1.0, %v6753_v22  ;;  %v3363_v21 = vmul.f32 -0.5, %v6753_v22  ;;  %v3366_v1 = vand.u32 2147483647, %v6753_v22 }
 0xb84   :  { %6754 = vlog2.f32 %v3369_v6  ;;  %v3373_v10 = vadd.f32 1.0, %v3372_v16  ;;  %vm3376_vm2 = vcmp.lt.f32.partialorder %v3375_v18, 0.0004427343 }
 0xb85   :  { %6756 = vlog2.f32 %v3360_v24  ;;  %v3364_v60 = vadd.f32 1.0, %v3363_v21  ;;  %vm3367_vm5 = vcmp.lt.f32.partialorder %v3366_v1, 0.0004427343  ;;  %v10327_v21 = vmov 0.0   ;;  %v9052_v1 = vld [vmem:[%s10232_s3 + $0x20] sm:$0xff] }
 0xb86   :  { %6758 = vpow2.f32 %v3983_v34  ;;  %v3374_v59 = vmul.f32 %v6751_v52, %v3373_v10  ;;  %v3418_v52 = vld [vmem:[%s10231_s2 + $0x68] sm:$0xff]  ;;  %v9046_v10 = vld [vmem:[%s10232_s3 + $0x18] sm:$0xff] }
 0xb87   :  { %6760 = vpow2.f32 %v3985_v27  ;;  %v3365_v13 = vmul.f32 %v6753_v22, %v3364_v60  ;;  %v3419_v22 = vld [vmem:[%s10231_s2 + $0x70] sm:$0xff]  ;;  %v3954_v27 = vand.u32 2147483647, %v9046_v10  ;;  %vm3922_vm12 = vcmp.ne.f32.partialorder %v9046_v10, %v9046_v10 }
 0xb89   :  { %v3970_v18 = vsub.f32 0.0, %v3954_v27 }
 0xb8e   :  { %v6755_v3 = vpop.eup %6754 }
 0xb8f   :  { %v6757_v42 = vpop.eup %6756  ;;  %v3371_v29 = vmul.f32 0.6931472, %v6755_v3 }
 0xb90   :  { %v3362_v17 = vmul.f32 0.6931472, %v6757_v42  ;;  %v6759_v62 = vpop.eup %6758  ;;  %v3955_v42 = vand.u32 2147483647, %v9052_v1 }
 0xb91   :  { %v3377_v53 = vsel %vm3376_vm2, %v3374_v59, %v3371_v29  ;;  %v6761_v37 = vpop.eup %6760  ;;  %v4015_v30 = vadd.f32 1.0, %v6759_v62  ;;  %v4018_v11 = vmul.f32 -0.5, %v6759_v62  ;;  %v4021_v32 = vand.u32 2147483647, %v6759_v62  ;;  %v9058_v29 = vld [vmem:[%s10232_s3 + $0x28] sm:$0xff] }
 0xb92   :  { %v3368_v5 = vsel %vm3367_vm5, %v3365_v13, %v3362_v17  ;;  %v3379_v2 = vadd.f32 %v3377_v53, %v3347_v47  ;;  %v4024_v39 = vadd.f32 1.0, %v6761_v37  ;;  %v4027_v50 = vmul.f32 -0.5, %v6761_v37 }
 0xb93   :  { %v3378_v55 = vadd.f32 %v3368_v5, %v3346_v35  ;;  %6762 = vlog2.f32 %v4015_v30  ;;  %v4019_v20 = vadd.f32 1.0, %v4018_v11  ;;  %vm4022_vm8 = vcmp.lt.f32.partialorder %v4021_v32, 0.0004427343  ;;  %v9064_v35 = vld [vmem:[%s10232_s3 + $0x30] sm:$0xff] }
 0xb94   :  { %v3381_v19 = vsel %vm3349_vm6, %v3345_v12, %v3379_v2  ;;  %6764 = vlog2.f32 %v4024_v39  ;;  %v4028_v4 = vadd.f32 1.0, %v4027_v50  ;;  %v3989_v59 = vmul.f32 1.442695, %v3970_v18  ;;  %v9070_v2 = vld [vmem:[%s10232_s3 + $0x38] sm:$0xff] }
 0xb95   :  { %v3380_v31 = vsel %vm3348_vm7, %v3344_v36, %v3378_v55  ;;  %v4020_v12 = vmul.f32 %v6759_v62, %v4019_v20  ;;  %v4030_v36 = vand.u32 2147483647, %v6761_v37  ;;  %v3956_v47 = vand.u32 2147483647, %v9058_v29  ;;  %v9076_v62 = vld [vmem:[%s10232_s3 + $0x40] sm:$0xff] }
 0xb96   :  { %v8950_v15 = vpack.c.bf16 %v3381_v19, %v3380_v31  ;;  %v4029_v14 = vmul.f32 %v6761_v37, %v4028_v4  ;;  %v3971_v17 = vsub.f32 0.0, %v3955_v42  ;;  %v3957_v5 = vand.u32 2147483647, %v9064_v35 }
 0xb97   :  { %vm4031_vm9 = vcmp.lt.f32.partialorder %v4030_v36, 0.0004427343  ;;  %v3972_v13 = vsub.f32 0.0, %v3956_v47  ;;  %v3958_v19 = vand.u32 2147483647, %v9070_v2  ;;  %v9108_v36 = vld [vmem:[%s10232_s3 + $0x68] sm:$0xff]  ;;  %vm3923_vm2 = vcmp.ne.f32.partialorder %v9052_v1, %v9052_v1 }
 0xb98   :  { %6288 = vmatprep.subr.bf16.mxu0 %v8950_v15  ;;  %v3991_v53 = vmul.f32 1.442695, %v3971_v17  ;;  %v3973_v31 = vsub.f32 0.0, %v3957_v5  ;;  %vm3924_vm6 = vcmp.ne.f32.partialorder %v9058_v29, %v9058_v29 }
 0xb99   :  { %6290 = vmatpush3.bf16.msra.mxu0 %v8950_v15  ;;  %v3993_v55 = vmul.f32 1.442695, %v3972_v13 }
 0xb9a   :  { %6292 = vmatprep.subr.bf16.mxu0 %v8930_v23  ;;  %v3995_v37 = vmul.f32 1.442695, %v3973_v31 }
 0xb9c   :  { %5987 = vmatmul.mubr.msk.f32.vlgmr.msra.gmra.mrb[28].mxu0 %vm3421_vm11, %v3406_v48  ;;  %v3959_v48 = vand.u32 2147483647, %v9076_v62 }
 0xb9d   :  { %6294 = vmatpush3.bf16.msra.mxu0 %v8930_v23  ;;  %5989 = vmatprep.mubr.msk.f32.mxu0 %vm3421_vm11, %v3407_v41  ;;  %v3413_v23 = vld [vmem:[%s10231_s2 + $0x40] sm:$0xff]  ;;  %v6763_v28 = vpop.eup %6762  ;;  %v9082_v41 = vld [vmem:[%s10232_s3 + $0x48] sm:$0xff] }
 0xb9e   :  { %6303 = vmatprep.subr.bf16.mxu0 %v10325_v8  ;;  %v6765_v57 = vpop.eup %6764  ;;  %v4017_v7 = vmul.f32 0.6931472, %v6763_v28  ;;  %v3975_v39 = vsub.f32 0.0, %v3959_v48 }
 0xb9f   :  { %v4026_v46 = vmul.f32 0.6931472, %v6765_v57  ;;  %v9100_v57 = vld [vmem:[%s10232_s3 + $0x60] sm:$0xff] }
 0xba0   :  { %5990 = vmatmul.mubr.msk.f32.gmra.mrb[30].mxu0 %vm3421_vm11, %v3408_v63  ;;  %v4023_v25 = vsel %vm4022_vm8, %v4020_v12, %v4017_v7  ;;  %v3960_v63 = vand.u32 2147483647, %v9082_v41  ;;  %v3999_v20 = vmul.f32 1.442695, %v3975_v39  ;;  %v3963_v12 = vand.u32 2147483647, %v9100_v57 }
 0xba1   :  { %5992 = vmatprep.mubr.msk.f32.mxu0 %vm3421_vm11, %v3409_v26  ;;  %v4159_v6 = vadd.f32 %v4023_v25, %v3903_v43  ;;  %v4032_v24 = vsel %vm4031_vm9, %v4029_v14, %v4026_v46  ;;  %v3964_v46 = vand.u32 2147483647, %v9108_v36  ;;  %vm3925_vm8 = vcmp.ne.f32.partialorder %v9064_v35, %v9064_v35 }
 0xba2   :  { %v4160_v56 = vadd.f32 %v4032_v24, %v3904_v9  ;;  %v3976_v26 = vsub.f32 0.0, %v3960_v63 }
 0xba3   :  { %v4175_v16 = vsel %vm3919_vm13, %v8941_v33, %v4159_v6  ;;  %v5008_v33 = vld [vmem:[%s10235_s6] sm:$0x3]  ;;  %vm3926_vm13 = vcmp.ne.f32.partialorder %v9070_v2, %v9070_v2 }
 0xba4   :  { %5993 = vmatmul.mubr.msk.f32.gmra.mrb[32].mxu0 %vm3421_vm11, %v3410_v51  ;;  %v4176_v38 = vsel %vm3920_vm14, %v8946_v58, %v4160_v56  ;;  %v9040_v58 = vld [vmem:[%s10232_s3 + $0x10] sm:$0xff] }
 0xba5   :  { %5995 = vmatprep.mubr.msk.f32.mxu0 %vm3421_vm11, %v3411_v40  ;;  %v3953_v34 = vand.u32 2147483647, %v9040_v58  ;;  %v9088_v51 = vld [vmem:[%s10232_s3 + $0x50] sm:$0xff]  ;;  %vm3921_vm3 = vcmp.ne.f32.partialorder %v9040_v58, %v9040_v58 }
 0xba6   :  { %v3961_v11 = vand.u32 2147483647, %v9088_v51 }
 0xba7   :  { %v3969_v60 = vsub.f32 0.0, %v3953_v34 }
 0xba8   :  { %5996 = vmatmul.mubr.msk.f32.gmra.mrb[34].mxu0 %vm3421_vm11, %v3412_v0  ;;  %v9094_v0 = vld [vmem:[%s10232_s3 + $0x58] sm:$0xff] }
 0xba9   :  { %5998 = vmatprep.mubr.msk.f32.mxu0 %vm3421_vm11, %v3413_v23  ;;  %v3987_v3 = vmul.f32 1.442695, %v3969_v60  ;;  %v3962_v28 = vand.u32 2147483647, %v9094_v0 }
 0xbab   :  { %6766 = vpow2.f32 %v3987_v3  ;;  %v3978_v4 = vsub.f32 0.0, %v3962_v28  ;;  %v3907_v28 = vmax.f32 %v9052_v1, 0.0 }
 0xbac   :  { %5999 = vmatmul.mubr.msk.f32.gmra.mrb[36].mxu0 %vm3421_vm11, %v3414_v49  ;;  %6768 = vpow2.f32 %v3989_v59  ;;  %v4001_v49 = vmul.f32 1.442695, %v3976_v26 }
 0xbad   :  { %6001 = vmatprep.mubr.msk.f32.mxu0 %vm3421_vm11, %v3415_v45  ;;  %6770 = vpow2.f32 %v3991_v53  ;;  %v3977_v45 = vsub.f32 0.0, %v3961_v11  ;;  %v4005_v25 = vmul.f32 1.442695, %v3978_v4  ;;  %v3905_v53 = vmax.f32 %v9040_v58, 0.0 }
 0xbae   :  { %6772 = vpow2.f32 %v3993_v55 }
 0xbaf   :  { %6774 = vpow2.f32 %v3995_v37  ;;  %v4003_v43 = vmul.f32 1.442695, %v3977_v45 }
 0xbb0   :  { %6002 = vmatmul.mubr.msk.f32.gmra.mrb[38].mxu0 %vm3421_vm11, %v3416_v54 }
 0xbb1   :  { %6004 = vmatprep.mubr.msk.f32.mxu0 %vm3421_vm11, %v3417_v44 }
 0xbb4   :  { %6005 = vmatmul.mubr.msk.f32.gmra.mrb[40].mxu0 %vm3421_vm11, %v3418_v52  ;;  %v3979_v52 = vsub.f32 0.0, %v3963_v12 }
 0xbb5   :  { %6007 = vmatprep.mubr.msk.f32.mxu0 %vm3421_vm11, %v3419_v22  ;;  %v6767_v40 = vpop.eup %6766 }
 0xbb6   :  { %v6769_v23 = vpop.eup %6768  ;;  %v4033_v50 = vadd.f32 1.0, %v6767_v40  ;;  %v4007_v22 = vmul.f32 1.442695, %v3979_v52  ;;  %v4036_v56 = vmul.f32 -0.5, %v6767_v40  ;;  %v4039_v27 = vand.u32 2147483647, %v6767_v40 }
 0xbb7   :  { %v4042_v32 = vadd.f32 1.0, %v6769_v23  ;;  %v9102_v7 = vpop.eup %6770  ;;  %v4048_v47 = vand.u32 2147483647, %v6769_v23 }
 0xbb8   :  { %6008 = vmatmul.mubr.msk.f32.gmra.mrb[42].mxu0 %vm3421_vm11, %v3420_v61  ;;  %v9110_v54 = vpop.eup %6772  ;;  %v4051_v44 = vadd.f32 1.0, %v9102_v7  ;;  %v3980_v61 = vsub.f32 0.0, %v3964_v46  ;;  %v4054_v17 = vmul.f32 -0.5, %v9102_v7  ;;  %vm4040_vm0 = vcmp.lt.f32.partialorder %v4039_v27, 0.0004427343 }
 0xbb9   :  { %6014 = vmatprep.mubr.msk.f32.mxu0 %vm3421_vm11, %v4175_v16  ;;  %v4060_v14 = vadd.f32 1.0, %v9110_v54  ;;  %v9115_v9 = vpop.eup %6774  ;;  %vm4049_vm4 = vcmp.lt.f32.partialorder %v4048_v47, 0.0004427343 }
 0xbba   :  { %v4069_v24 = vadd.f32 1.0, %v9115_v9  ;;  %v4009_v18 = vmul.f32 1.442695, %v3980_v61  ;;  %v4055_v37 = vadd.f32 1.0, %v4054_v17  ;;  %v4072_v46 = vmul.f32 -0.5, %v9115_v9 }
 0xbbb   :  { %v3910_v17 = vmax.f32 %v9070_v2, 0.0 }
 0xbbc   :  { %6015 = vmatmul.mubr.msk.f32.vlgmr.msra.gmra.mrb[44].mxu0 %vm3421_vm11, %v4176_v38  ;;  %v4045_v38 = vmul.f32 -0.5, %v6769_v23  ;;  %v4056_v11 = vmul.f32 %v9102_v7, %v4055_v37  ;;  %v9186_v37 = vld [vmem:[%s10232_s3 + $0x78] sm:$0xff] }
 0xbbd   :  { %6305 = vmatpush3.bf16.msra.mxu0 %v8950_v15  ;;  %6074 = vmatprep.mubr.msk.f32.mxu0 %vm7036_vm15, %v10327_v21  ;;  %v3974_v15 = vsub.f32 0.0, %v3958_v19 }
 0xbbe   :  { %6306 = vmatprep.subr.bf16.mxu0 %v10325_v8  ;;  %v4046_v60 = vadd.f32 1.0, %v4045_v38  ;;  %v3909_v38 = vmax.f32 %v9064_v35, 0.0 }
 0xbbf   :  { %v3997_v30 = vmul.f32 1.442695, %v3974_v15  ;;  %v3906_v15 = vmax.f32 %v9046_v10, 0.0 }
 0xbc0   :  { %6075 = vmatmul.mubr.msk.f32.vlgmr.msra.gmra.mrb[46].mxu0 %vm3421_vm11, %v5008_v33  ;;  %v4037_v33 = vadd.f32 1.0, %v4036_v56  ;;  %v4047_v55 = vmul.f32 %v6769_v23, %v4046_v60  ;;  %v4057_v23 = vand.u32 2147483647, %v9102_v7  ;;  %v4066_v7 = vand.u32 2147483647, %v9110_v54 }
 0xbc1   :  { %6085 = vmatprep.mubr.msk.f32.mxu0 %vm7036_vm15, %v10327_v21  ;;  %6776 = vpow2.f32 %v3997_v30  ;;  %v4073_v56 = vadd.f32 1.0, %v4072_v46 }
 0xbc2   :  { %6778 = vlog2.f32 %v4033_v50  ;;  %v4038_v59 = vmul.f32 %v6767_v40, %v4037_v33  ;;  %vm4058_vm10 = vcmp.lt.f32.partialorder %v4057_v23, 0.0004427343  ;;  %vm4067_vm5 = vcmp.lt.f32.partialorder %v4066_v7, 0.0004427343 }
 0xbc3   :  { %6780 = vlog2.f32 %v4042_v32  ;;  %v4063_v32 = vmul.f32 -0.5, %v9110_v54 }
 0xbc4   :  { %6782 = vpow2.f32 %v3999_v20 }
 0xbc5   :  { %6784 = vpow2.f32 %v4001_v49 }
 0xbc6   :  { %6786 = vlog2.f32 %v4051_v44 }
 0xbc7   :  { %6788 = vlog2.f32 %v4060_v14  ;;  %v4075_v14 = vand.u32 2147483647, %v9115_v9 }
 0xbc8   :  { %6790 = vpow2.f32 %v4003_v43  ;;  %v4064_v43 = vadd.f32 1.0, %v4063_v32 }
 0xbc9   :  { %6792 = vpow2.f32 %v4005_v25  ;;  %vm4076_vm7 = vcmp.lt.f32.partialorder %v4075_v14, 0.0004427343  ;;  %v3382_v14 = vld [vmem:[%s10239_s10] sm:$0xff] }
 0xbca   :  { %6794 = vlog2.f32 %v4069_v24  ;;  %v4065_v24 = vmul.f32 %v9110_v54, %v4064_v43 }
 0xbcb   :  { %v9117_v6 = vpop.eup %6776  ;;  %6796 = vpow2.f32 %v4007_v22 }
 0xbcc   :  { %v4078_v16 = vadd.f32 1.0, %v9117_v6  ;;  %v6779_v34 = vpop.eup %6778  ;;  %v4081_v27 = vmul.f32 -0.5, %v9117_v6  ;;  %v4084_v54 = vand.u32 2147483647, %v9117_v6 }
 0xbcd   :  { %v6781_v3 = vpop.eup %6780  ;;  %v4035_v42 = vmul.f32 0.6931472, %v6779_v34  ;;  %v4074_v34 = vmul.f32 %v9115_v9, %v4073_v56 }
 0xbce   :  { %6798 = vlog2.f32 %v4078_v16  ;;  %v9122_v13 = vpop.eup %6782  ;;  %v4044_v5 = vmul.f32 0.6931472, %v6781_v3  ;;  %vm4085_vm9 = vcmp.lt.f32.partialorder %v4084_v54, 0.0004427343 }
 0xbcf   :  { %v9125_v19 = vpop.eup %6784  ;;  %v4041_v31 = vsel %vm4040_vm0, %v4038_v59, %v4035_v42  ;;  %v4087_v49 = vadd.f32 1.0, %v9122_v13  ;;  %6800 = vpow2.f32 %v4009_v18  ;;  %v4082_v18 = vadd.f32 1.0, %v4081_v27  ;;  %v9168_v59 = vld [vmem:[%s10232_s3 + $0x70] sm:$0xff] }
 0xbd0   :  { %v6787_v48 = vpop.eup %6786  ;;  %v4161_v30 = vadd.f32 %v4041_v31, %v3905_v53  ;;  %v4050_v63 = vsel %vm4049_vm4, %v4047_v55, %v4044_v5  ;;  %v4090_v42 = vmul.f32 -0.5, %v9122_v13  ;;  %v4096_v5 = vadd.f32 1.0, %v9125_v19 }
 0xbd1   :  { %v6789_v39 = vpop.eup %6788  ;;  %v4162_v26 = vadd.f32 %v4050_v63, %v3906_v15  ;;  %v4053_v40 = vmul.f32 0.6931472, %v6787_v48  ;;  %6802 = vlog2.f32 %v4087_v49  ;;  %v4083_v53 = vmul.f32 %v9117_v6, %v4082_v18  ;;  %v3384_v18 = vld [vmem:[%s10239_s10 + $0x10] sm:$0xff] }
 0xbd2   :  { %v9134_v50 = vpop.eup %6790  ;;  %v4177_v20 = vsel %vm3921_vm3, %v9040_v58, %v4161_v30  ;;  %v4062_v12 = vmul.f32 0.6931472, %v6789_v39  ;;  %v3965_v31 = vand.u32 2147483647, %v9168_v59  ;;  %v4091_v15 = vadd.f32 1.0, %v4090_v42 }
 0xbd3   :  { %v9140_v45 = vpop.eup %6792  ;;  %6017 = vmatprep.mubr.msk.f32.mxu1 %vm3421_vm11, %v4177_v20  ;;  %v4178_v4 = vsel %vm3922_vm12, %v9046_v10, %v4162_v26  ;;  %v4059_v58 = vsel %vm4058_vm10, %v4056_v11, %v4053_v40  ;;  %v3908_v10 = vmax.f32 %v9058_v29, 0.0  ;;  %6804 = vlog2.f32 %v4096_v5 }
 0xbd4   :  { %v6795_v44 = vpop.eup %6794  ;;  %6018 = vmatmul.mubr.msk.f32.vlgmr.msra.gmra.mrb[40].mxu1 %vm3421_vm11, %v4178_v4  ;;  %v4163_v52 = vadd.f32 %v4059_v58, %v3907_v28  ;;  %v4068_v33 = vsel %vm4067_vm5, %v4065_v24, %v4062_v12  ;;  %v4093_v48 = vand.u32 2147483647, %v9122_v13  ;;  %v4105_v63 = vadd.f32 1.0, %v9134_v50 }
 0xbd5   :  { %v9148_v25 = vpop.eup %6796  ;;  %v4071_v61 = vmul.f32 0.6931472, %v6795_v44  ;;  %v4164_v60 = vadd.f32 %v4068_v33, %v3908_v10  ;;  %v3981_v26 = vsub.f32 0.0, %v3965_v31  ;;  %v3966_v40 = vand.u32 2147483647, %v9186_v37 }
 0xbd6   :  { %v4179_v16 = vsel %vm3923_vm2, %v9052_v1, %v4163_v52  ;;  %v4092_v11 = vmul.f32 %v9122_v13, %v4091_v15  ;;  %6806 = vlog2.f32 %v4105_v63  ;;  %v4108_v23 = vmul.f32 -0.5, %v9134_v50  ;;  %v3383_v52 = vld [vmem:[%s10239_s10 + $0x8] sm:$0xff] }
 0xbd7   :  { %6020 = vmatprep.mubr.msk.f32.mxu1 %vm3421_vm11, %v4179_v16  ;;  %v4077_v1 = vsel %vm4076_vm7, %v4074_v34, %v4071_v61  ;;  %v4180_v9 = vsel %vm3924_vm6, %v9058_v29, %v4164_v60  ;;  %v3911_v28 = vmax.f32 %v9076_v62, 0.0  ;;  %vm9199_vm14 = vcmp.lt.f32.partialorder %v4093_v48, 0.0004427343  ;;  %v5102_v16 = vld [vmem:[%s10241_s12 + $0x10] sm:$0xff] }
 0xbd8   :  { %v6799_v22 = vpop.eup %6798  ;;  %v4165_v47 = vadd.f32 %v4077_v1, %v3909_v38  ;;  %6021 = vmatmul.mubr.msk.f32.gmra.mrb[42].mxu1 %vm3421_vm11, %v4180_v9  ;;  %v4102_v12 = vand.u32 2147483647, %v9125_v19  ;;  %v4123_v7 = vadd.f32 1.0, %v9148_v25  ;;  %vm3927_vm0 = vcmp.ne.f32.partialorder %v9076_v62, %v9076_v62 }
 0xbd9   :  { %v4080_v3 = vmul.f32 0.6931472, %v6799_v22  ;;  %v9190_v30 = vpop.eup %6800  ;;  %v4011_v13 = vmul.f32 1.442695, %v3981_v26  ;;  %v3982_v44 = vsub.f32 0.0, %v3966_v40  ;;  %v4109_v43 = vadd.f32 1.0, %v4108_v23 }
 0xbda   :  { %v4181_v55 = vsel %vm3925_vm8, %v9064_v35, %v4165_v47  ;;  %v4099_v35 = vmul.f32 -0.5, %v9125_v19  ;;  %v4117_v46 = vmul.f32 -0.5, %v9140_v45  ;;  %v3912_v22 = vmax.f32 %v9082_v41, 0.0 }
 0xbdb   :  { %6023 = vmatprep.mubr.msk.f32.mxu1 %vm3421_vm11, %v4181_v55  ;;  %v4086_v29 = vsel %vm4085_vm9, %v4083_v53, %v4080_v3  ;;  %v6803_v20 = vpop.eup %6802  ;;  %v4126_v61 = vmul.f32 -0.5, %v9148_v25  ;;  %vm3928_vm4 = vcmp.ne.f32.partialorder %v9082_v41, %v9082_v41  ;;  %vm9222_vm3 = vcmp.lt.f32.partialorder %v4102_v12, 0.0004427343 }
 0xbdc   :  { %v4166_v6 = vadd.f32 %v4086_v29, %v3910_v17  ;;  %v4100_v49 = vadd.f32 1.0, %v4099_v35  ;;  %v4089_v4 = vmul.f32 0.6931472, %v6803_v20  ;;  %v4111_v38 = vand.u32 2147483647, %v9134_v50 }
 0xbdd   :  { %v6805_v56 = vpop.eup %6804  ;;  %v4132_v33 = vadd.f32 1.0, %v9190_v30  ;;  %v3913_v27 = vmax.f32 %v9088_v51, 0.0  ;;  %v6295_v54 = vpack.c.bf16 %v3383_v52, %v3382_v14  ;;  %v4110_v60 = vmul.f32 %v9134_v50, %v4109_v43 }
 0xbde   :  { %v4182_v39 = vsel %vm3926_vm13, %v9070_v2, %v4166_v6  ;;  %v4114_v2 = vadd.f32 1.0, %v9140_v45  ;;  %v4095_v58 = vsel %vm9199_vm14, %v4092_v11, %v4089_v4  ;;  %v4101_v24 = vmul.f32 %v9125_v19, %v4100_v49 }
 0xbdf   :  { %6024 = vmatmul.mubr.msk.f32.gmra.mrb[44].mxu1 %vm3421_vm11, %v4182_v39  ;;  %v4167_v10 = vadd.f32 %v4095_v58, %v3911_v28  ;;  %v4098_v19 = vmul.f32 0.6931472, %v6805_v56  ;;  %v4118_v3 = vadd.f32 1.0, %v4117_v46  ;;  %v4120_v1 = vand.u32 2147483647, %v9140_v45  ;;  %6296 = vmatprep.subr.bf16.mxu1 %v6295_v54  ;;  %v5101_v56 = vld [vmem:[%s10241_s12 + $0x8] sm:$0xff] }
 0xbe0   :  { %6808 = vlog2.f32 %v4114_v2  ;;  %v4127_v9 = vadd.f32 1.0, %v4126_v61  ;;  %v4135_v47 = vmul.f32 -0.5, %v9190_v30  ;;  %v6807_v50 = vpop.eup %6806  ;;  %vm9245_vm12 = vcmp.lt.f32.partialorder %v4111_v38, 0.0004427343  ;;  %6298 = vmatpush3.bf16.msra.mxu1 %v6295_v54  ;;  %v5100_v61 = vld [vmem:[%s10241_s12] sm:$0xff] }
 0xbe1   :  { %6810 = vlog2.f32 %v4123_v7  ;;  %v4183_v34 = vsel %vm3927_vm0, %v9076_v62, %v4167_v10  ;;  %v3385_v62 = vld [vmem:[%s10239_s10 + $0x18] sm:$0xff]  ;;  %v4104_v42 = vsel %vm9222_vm3, %v4101_v24, %v4098_v19  ;;  %v4129_v5 = vand.u32 2147483647, %v9148_v25 }
 0xbe2   :  { %6026 = vmatprep.mubr.msk.f32.mxu1 %vm3421_vm11, %v4183_v34  ;;  %6812 = vlog2.f32 %v4132_v33  ;;  %v4168_v17 = vadd.f32 %v4104_v42, %v3912_v22  ;;  %v4013_v55 = vmul.f32 1.442695, %v3982_v44  ;;  %vm3929_vm10 = vcmp.ne.f32.partialorder %v9088_v51, %v9088_v51 }
 0xbe3   :  { %6814 = vpow2.f32 %v4011_v13  ;;  %v4107_v31 = vmul.f32 0.6931472, %v6807_v50  ;;  %v3914_v29 = vmax.f32 %v9094_v0, 0.0  ;;  %v6299_v15 = vpack.c.bf16 %v3385_v62, %v3384_v18 }
 0xbe4   :  { %v4184_v6 = vsel %vm3928_vm4, %v9082_v41, %v4168_v17  ;;  %v4119_v48 = vmul.f32 %v9140_v45, %v4118_v3  ;;  %v3915_v35 = vmax.f32 %v9100_v57, 0.0  ;;  %6816 = vpow2.f32 %v4013_v55 }
 0xbe5   :  { %6027 = vmatmul.mubr.msk.f32.gmra.mrb[46].mxu1 %vm3421_vm11, %v4184_v6  ;;  %v4113_v39 = vsel %vm9245_vm12, %v4110_v60, %v4107_v31  ;;  %vm4121_vm2 = vcmp.lt.f32.partialorder %v4120_v1, 0.0004427343  ;;  %v4128_v26 = vmul.f32 %v9148_v25, %v4127_v9  ;;  %v4136_v40 = vadd.f32 1.0, %v4135_v47  ;;  %6300 = vmatprep.subr.bf16.mxu1 %v6299_v15 }
 0xbe6   :  { %v4169_v23 = vadd.f32 %v4113_v39, %v3913_v27  ;;  %vm4130_vm5 = vcmp.lt.f32.partialorder %v4129_v5, 0.0004427343  ;;  %v4138_v41 = vand.u32 2147483647, %v9190_v30  ;;  %6302 = vmatpush3.bf16.msra.mxu1 %v6299_v15  ;;  %vm3930_vm6 = vcmp.ne.f32.partialorder %v9094_v0, %v9094_v0 }
 0xbe7   :  { %vm3931_vm7 = vcmp.ne.f32.partialorder %v9100_v57, %v9100_v57  ;;  %v4137_v2 = vmul.f32 %v9190_v30, %v4136_v40  ;;  %v3916_v7 = vmax.f32 %v9108_v36, 0.0  ;;  %vm3932_vm9 = vcmp.ne.f32.partialorder %v9108_v36, %v9108_v36 }
 0xbe8   :  { %v4185_v28 = vsel %vm3929_vm10, %v9088_v51, %v4169_v23  ;;  %vm4139_vm8 = vcmp.lt.f32.partialorder %v4138_v41, 0.0004427343  ;;  %v6307_v38 = vpack.c.bf16 %v5101_v56, %v5100_v61  ;;  %v3917_v60 = vmax.f32 %v9168_v59, 0.0 }
 0xbe9   :  { %6029 = vmatprep.mubr.msk.f32.mxu1 %vm3421_vm11, %v4185_v28  ;;  %vm3933_vm14 = vcmp.ne.f32.partialorder %v9168_v59, %v9168_v59  ;;  %v3918_v42 = vmax.f32 %v9186_v37, 0.0  ;;  %vm3934_vm4 = vcmp.ne.f32.partialorder %v9186_v37, %v9186_v37 }
 0xbea   :  { %v6809_v63 = vpop.eup %6808  ;;  %6308 = vmatpush3.bf16.msra.mxu0 %v6307_v38 }
 0xbeb   :  { %v6811_v11 = vpop.eup %6810  ;;  %v4116_v20 = vmul.f32 0.6931472, %v6809_v63  ;;  %6309 = vmatprep.subr.bf16.mxu0 %v10325_v8 }
 0xbec   :  { %v4125_v45 = vmul.f32 0.6931472, %v6811_v11  ;;  %v6813_v4 = vpop.eup %6812 }
 0xbed   :  { %v4122_v32 = vsel %vm4121_vm2, %v4119_v48, %v4116_v20  ;;  %v6815_v13 = vpop.eup %6814  ;;  %v4134_v44 = vmul.f32 0.6931472, %v6813_v4 }
 0xbee   :  { %v4170_v25 = vadd.f32 %v4122_v32, %v3914_v29  ;;  %v4131_v49 = vsel %vm4130_vm5, %v4128_v26, %v4125_v45  ;;  %v4141_v43 = vadd.f32 1.0, %v6815_v13  ;;  %v6817_v46 = vpop.eup %6816  ;;  %v4144_v52 = vmul.f32 -0.5, %v6815_v13 }
 0xbef   :  { %v4171_v12 = vadd.f32 %v4131_v49, %v3915_v35  ;;  %v4140_v30 = vsel %vm4139_vm8, %v4137_v2, %v4134_v44  ;;  %v4150_v10 = vadd.f32 1.0, %v6817_v46  ;;  %v4156_v19 = vand.u32 2147483647, %v6817_v46 }
 0xbf0   :  { %v4186_v51 = vsel %vm3930_vm6, %v9094_v0, %v4170_v25  ;;  %v4172_v14 = vadd.f32 %v4140_v30, %v3916_v7  ;;  %6818 = vlog2.f32 %v4141_v43  ;;  %v4153_v0 = vmul.f32 -0.5, %v6817_v46 }
 0xbf1   :  { %6030 = vmatmul.mubr.msk.f32.gmra.mrb[48].mxu1 %vm3421_vm11, %v4186_v51  ;;  %v4187_v58 = vsel %vm3931_vm7, %v9100_v57, %v4171_v12  ;;  %6820 = vlog2.f32 %v4150_v10  ;;  %v4145_v24 = vadd.f32 1.0, %v4144_v52  ;;  %v4147_v57 = vand.u32 2147483647, %v6815_v13 }
 0xbf2   :  { %6032 = vmatprep.mubr.msk.f32.mxu1 %vm3421_vm11, %v4187_v58  ;;  %v4188_v22 = vsel %vm3932_vm9, %v9108_v36, %v4172_v14  ;;  %v5103_v36 = vld [vmem:[%s10241_s12 + $0x18] sm:$0xff]  ;;  %v4154_v33 = vadd.f32 1.0, %v4153_v0  ;;  %vm4157_vm0 = vcmp.lt.f32.partialorder %v4156_v19, 0.0004427343  ;;  %s7038_s12 = smov [#allocation2]  }
 0xbf3   :  { %v4146_v34 = vmul.f32 %v6815_v13, %v4145_v24  ;;  %v6310_v27 = vpack.c.bf16 %v5103_v36, %v5102_v16  ;;  %vm4148_vm13 = vcmp.lt.f32.partialorder %v4147_v57, 0.0004427343  ;;  %s5294_s2 = sshll.u32 %s7038_s12, 4  ;;  %s5295_s2 = int_to_ptr.vmem [resolvable:$true] %s5294_s2 }
 0xbf4   :  { %v4155_v1 = vmul.f32 %v6817_v46, %v4154_v33  ;;  %s7009_s21 = scalar_lea.vmem %s5295_s2, 32  ;;  %p7014_p1 = scmp.lt.s32.totalorder %s5295_s2, %s5295_s2 }
 0xbf5   :  { %6033 = vmatmul.mubr.msk.f32.gmra.mrb[50].mxu1 %vm3421_vm11, %v4188_v22  ;;  %6311 = vmatpush3.bf16.msra.mxu0 %v6310_v27  ;;  %p7010_p0 = scmp.ne.s32.totalorder %s5295_s2, %s7009_s21  ;;  %p7015_p2 = scmp.lt.s32.totalorder %s7009_s21, %s7009_s21 }
 0xbf6   :  { %6312 = vmatprep.subr.bf16.mxu0 %v10325_v8 }
 0xbf7   :  { %p7016_p3 = por %p7015_p2, %p7014_p1 }
 0xbf9   :  { %p7017_p4 = pnand %p7016_p3, %p7010_p0 }
 0xbfa   :  { %v6819_v54 = vpop.eup %6818 }
 0xbfb   :  { %v4143_v3 = vmul.f32 0.6931472, %v6819_v54  ;;  %v6821_v18 = vpop.eup %6820 }
 0xbfc   :  { %v4152_v47 = vmul.f32 0.6931472, %v6821_v18 }
 0xbfd   :  { %v4149_v62 = vsel %vm4148_vm13, %v4146_v34, %v4143_v3 }
 0xbfe   :  { %v4173_v9 = vadd.f32 %v4149_v62, %v3917_v60  ;;  %v4158_v17 = vsel %vm4157_vm0, %v4155_v1, %v4152_v47 }
 0xbff   :  { %v4174_v53 = vadd.f32 %v4158_v17, %v3918_v42 }
 0xc00   :  { %v4189_v50 = vsel %vm3933_vm14, %v9168_v59, %v4173_v9 }
 0xc01   :  { %6035 = vmatprep.mubr.msk.f32.mxu1 %vm3421_vm11, %v4189_v50  ;;  %v4190_v5 = vsel %vm3934_vm4, %v9186_v37, %v4174_v53 }
 0xc02   :  { %6036 = vmatmul.mubr.msk.f32.gmra.mrb[52].mxu1 %vm3421_vm11, %v4190_v5 }
 0xc6f   :  { %v9307_v55 = vpop.f32.mrb[28].mxu0 }
 0xc70   :  { %v3664_v31 = vand.u32 2147483647, %v9307_v55  ;;  %v9310_v29 = vpop.f32.mrb[29].mxu0  ;;  %v3616_v27 = vmax.f32 %v9307_v55, 0.0  ;;  %vm3632_vm10 = vcmp.ne.f32.partialorder %v9307_v55, %v9307_v55 }
 0xc71   :  { %v3663_v15 = vand.u32 2147483647, %v9310_v29  ;;  %v3615_v60 = vmax.f32 %v9310_v29, 0.0  ;;  %vm3631_vm8 = vcmp.ne.f32.partialorder %v9310_v29, %v9310_v29 }
 0xc72   :  { %v3680_v59 = vsub.f32 0.0, %v3664_v31 }
 0xc73   :  { %v3679_v6 = vsub.f32 0.0, %v3663_v15  ;;  %v9313_v48 = vpop.f32.mrb[30].mxu0 }
 0xc74   :  { %v3697_v35 = vmul.f32 1.442695, %v3680_v59  ;;  %v3666_v63 = vand.u32 2147483647, %v9313_v48  ;;  %v9316_v39 = vpop.f32.mrb[31].mxu0  ;;  %v3618_v18 = vmax.f32 %v9313_v48, 0.0  ;;  %vm3634_vm14 = vcmp.ne.f32.partialorder %v9313_v48, %v9313_v48 }
 0xc75   :  { %v3665_v37 = vand.u32 2147483647, %v9316_v39  ;;  %v3695_v26 = vmul.f32 1.442695, %v3679_v6  ;;  %v3617_v62 = vmax.f32 %v9316_v39, 0.0  ;;  %vm3633_vm9 = vcmp.ne.f32.partialorder %v9316_v39, %v9316_v39 }
 0xc76   :  { %v3682_v40 = vsub.f32 0.0, %v3666_v63  ;;  %6822 = vpow2.f32 %v3697_v35 }
 0xc77   :  { %v3681_v11 = vsub.f32 0.0, %v3665_v37  ;;  %v9319_v23 = vpop.f32.mrb[32].mxu0  ;;  %6824 = vpow2.f32 %v3695_v26 }
 0xc78   :  { %v3701_v20 = vmul.f32 1.442695, %v3682_v40  ;;  %v3668_v41 = vand.u32 2147483647, %v9319_v23  ;;  %v9322_v45 = vpop.f32.mrb[33].mxu0  ;;  %v3620_v9 = vmax.f32 %v9319_v23, 0.0 }
 0xc79   :  { %v3699_v28 = vmul.f32 1.442695, %v3681_v11  ;;  %v3667_v32 = vand.u32 2147483647, %v9322_v45  ;;  %v3619_v5 = vmax.f32 %v9322_v45, 0.0  ;;  %vm3635_vm13 = vcmp.ne.f32.partialorder %v9322_v45, %v9322_v45 }
 0xc7a   :  { %6826 = vpow2.f32 %v3701_v20  ;;  %v3684_v25 = vsub.f32 0.0, %v3668_v41 }
 0xc7b   :  { %v3683_v49 = vsub.f32 0.0, %v3667_v32  ;;  %v9325_v2 = vpop.f32.mrb[34].mxu0  ;;  %6828 = vpow2.f32 %v3699_v28 }
 0xc7c   :  { %v3670_v4 = vand.u32 2147483647, %v9325_v2  ;;  %v9328_v12 = vpop.f32.mrb[35].mxu0  ;;  %v3705_v51 = vmul.f32 1.442695, %v3684_v25  ;;  %v3622_v63 = vmax.f32 %v9325_v2, 0.0 }
 0xc7d   :  { %v3703_v7 = vmul.f32 1.442695, %v3683_v49  ;;  %v3669_v46 = vand.u32 2147483647, %v9328_v12  ;;  %v3621_v26 = vmax.f32 %v9328_v12, 0.0  ;;  %vm3637_vm0 = vcmp.ne.f32.partialorder %v9328_v12, %v9328_v12 }
 0xc7e   :  { %v3686_v13 = vsub.f32 0.0, %v3670_v4 }
 0xc7f   :  { %6830 = vpow2.f32 %v3703_v7  ;;  %v9330_v44 = vpop.f32.mrb[36].mxu0  ;;  %v3685_v61 = vsub.f32 0.0, %v3669_v46 }
 0xc80   :  { %v9332_v58 = vpop.f32.mrb[37].mxu0  ;;  %v6823_v43 = vpop.eup %6822  ;;  %v3709_v30 = vmul.f32 1.442695, %v3686_v13  ;;  %6832 = vpow2.f32 %v3705_v51  ;;  %v3672_v22 = vand.u32 2147483647, %v9330_v44  ;;  %v3624_v41 = vmax.f32 %v9330_v44, 0.0 }
 0xc81   :  { %v9337_v52 = vpop.eup %6824  ;;  %v3736_v10 = vadd.f32 1.0, %v6823_v43  ;;  %v3671_v33 = vand.u32 2147483647, %v9332_v58  ;;  %v3739_v54 = vmul.f32 -0.5, %v6823_v43  ;;  %v3707_v42 = vmul.f32 1.442695, %v3685_v61 }
 0xc82   :  { %6834 = vpow2.f32 %v3709_v30  ;;  %v3727_v56 = vadd.f32 1.0, %v9337_v52  ;;  %v3688_v36 = vsub.f32 0.0, %v3672_v22  ;;  %v3730_v1 = vmul.f32 -0.5, %v9337_v52 }
 0xc83   :  { %v9335_v14 = vpop.f32.mrb[38].mxu0  ;;  %6836 = vlog2.f32 %v3736_v10  ;;  %v3687_v50 = vsub.f32 0.0, %v3671_v33  ;;  %v3742_v53 = vand.u32 2147483647, %v6823_v43  ;;  %v3740_v6 = vadd.f32 1.0, %v3739_v54 }
 0xc84   :  { %v9340_v0 = vpop.f32.mrb[39].mxu0  ;;  %v9342_v24 = vpop.eup %6826  ;;  %6838 = vlog2.f32 %v3727_v56  ;;  %v3713_v31 = vmul.f32 1.442695, %v3688_v36  ;;  %v3731_v37 = vadd.f32 1.0, %v3730_v1  ;;  %v3733_v11 = vand.u32 2147483647, %v9337_v52 }
 0xc85   :  { %v9344_v57 = vpop.eup %6828  ;;  %v3754_v38 = vadd.f32 1.0, %v9342_v24  ;;  %v3757_v35 = vmul.f32 -0.5, %v9342_v24  ;;  %v3711_v40 = vmul.f32 1.442695, %v3687_v50  ;;  %vm9380_vm11 = vcmp.lt.f32.partialorder %v3742_v53, 0.0004427343 }
 0xc86   :  { %v3745_v3 = vadd.f32 1.0, %v9344_v57  ;;  %v3748_v20 = vmul.f32 -0.5, %v9344_v57  ;;  %v3623_v4 = vmax.f32 %v9332_v58, 0.0  ;;  %v3674_v7 = vand.u32 2147483647, %v9335_v14 }
 0xc87   :  { %v9347_v16 = vpop.f32.mrb[40].mxu0  ;;  %6840 = vlog2.f32 %v3754_v38  ;;  %v3741_v51 = vmul.f32 %v6823_v43, %v3740_v6  ;;  %v3758_v30 = vadd.f32 1.0, %v3757_v35  ;;  %v3760_v46 = vand.u32 2147483647, %v9342_v24 }
 0xc88   :  { %v9351_v34 = vpop.f32.mrb[41].mxu0  ;;  %6842 = vlog2.f32 %v3745_v3  ;;  %v9391_v22 = vmul.f32 %v9337_v52, %v3731_v37  ;;  %v3751_v61 = vand.u32 2147483647, %v9344_v57  ;;  %v3690_v56 = vsub.f32 0.0, %v3674_v7 }
 0xc89   :  { %v9353_v19 = vpop.eup %6830  ;;  %6844 = vpow2.f32 %v3707_v42  ;;  %v3673_v38 = vand.u32 2147483647, %v9340_v0  ;;  %v3749_v36 = vadd.f32 1.0, %v3748_v20  ;;  %v3676_v43 = vand.u32 2147483647, %v9347_v16 }
 0xc8a   :  { %v3763_v47 = vadd.f32 1.0, %v9353_v19  ;;  %v9368_v59 = vpop.eup %6832  ;;  %vm9400_vm3 = vcmp.lt.f32.partialorder %v3733_v11, 0.0004427343  ;;  %v3766_v52 = vmul.f32 -0.5, %v9353_v19  ;;  %v3717_v42 = vmul.f32 1.442695, %v3690_v56 }
 0xc8b   :  { %v9363_v17 = vpop.f32.mrb[42].mxu0  ;;  %v3772_v49 = vadd.f32 1.0, %v9368_v59  ;;  %v3775_v33 = vmul.f32 -0.5, %v9368_v59  ;;  %v3759_v6 = vmul.f32 %v9342_v24, %v3758_v30  ;;  %vm9406_vm12 = vcmp.lt.f32.partialorder %v3760_v46, 0.0004427343 }
 0xc8c   :  { %v9366_v15 = vpop.f32.mrb[43].mxu0  ;;  %6846 = vlog2.f32 %v3763_v47  ;;  %v9378_v32 = vpop.eup %6834  ;;  %v3689_v47 = vsub.f32 0.0, %v3673_v38  ;;  %v3692_v37 = vsub.f32 0.0, %v3676_v43  ;;  %v3778_v11 = vand.u32 2147483647, %v9368_v59 }
 0xc8d   :  { %6848 = vpow2.f32 %v3713_v31  ;;  %v6837_v10 = vpop.eup %6836  ;;  %v3790_v54 = vadd.f32 1.0, %v9378_v32  ;;  %v3769_v20 = vand.u32 2147483647, %v9353_v19  ;;  %v3675_v30 = vand.u32 2147483647, %v9351_v34 }
 0xc8e   :  { %6850 = vpow2.f32 %v3711_v40  ;;  %v6839_v53 = vpop.eup %6838  ;;  %v3738_v31 = vmul.f32 0.6931472, %v6837_v10  ;;  %v3793_v10 = vmul.f32 -0.5, %v9378_v32  ;;  %v3721_v24 = vmul.f32 1.442695, %v3692_v37 }
 0xc8f   :  { %v9376_v28 = vpop.f32.mrb[44].mxu0  ;;  %6852 = vlog2.f32 %v3772_v49  ;;  %v3715_v49 = vmul.f32 1.442695, %v3689_v47  ;;  %v9419_v56 = vmul.f32 %v9344_v57, %v3749_v36  ;;  %vm9421_vm2 = vcmp.lt.f32.partialorder %v3751_v61, 0.0004427343 }
 0xc90   :  { %v9387_v13 = vpop.f32.mrb[45].mxu0  ;;  %6854 = vpow2.f32 %v3717_v42  ;;  %v3776_v43 = vadd.f32 1.0, %v3775_v33  ;;  %v3767_v42 = vadd.f32 1.0, %v3766_v52  ;;  %vm9430_vm5 = vcmp.lt.f32.partialorder %v3769_v20, 0.0004427343 }
 0xc91   :  { %v6841_v40 = vpop.eup %6840  ;;  %6856 = vlog2.f32 %v3790_v54  ;;  %v3744_v54 = vsel %vm9380_vm11, %v3741_v51, %v3738_v31  ;;  %v3796_v61 = vand.u32 2147483647, %v9378_v32  ;;  %v3794_v52 = vadd.f32 1.0, %v3793_v10 }
 0xc92   :  { %v6843_v7 = vpop.eup %6842  ;;  %6858 = vpow2.f32 %v3715_v49  ;;  %v3756_v37 = vmul.f32 0.6931472, %v6841_v40  ;;  %v3691_v25 = vsub.f32 0.0, %v3675_v30  ;;  %v3678_v51 = vand.u32 2147483647, %v9363_v17 }
 0xc93   :  { %v9398_v3 = vpop.f32.mrb[46].mxu0  ;;  %v9416_v46 = vpop.eup %6844  ;;  %6860 = vpow2.f32 %v3721_v24  ;;  %v9442_v31 = vmul.f32 %v9368_v59, %v3776_v43  ;;  %vm9444_vm6 = vcmp.lt.f32.partialorder %v3778_v11, 0.0004427343  ;;  %v3747_v24 = vmul.f32 0.6931472, %v6843_v7 }
 0xc94   :  { %v6076_v50 = vpop.f32.mrb[47].mxu0  ;;  %v3781_v8 = vadd.f32 1.0, %v9416_v46  ;;  %v3762_v10 = vsel %vm9406_vm12, %v3759_v6, %v3756_v37  ;;  %v3784_v11 = vmul.f32 -0.5, %v9416_v46  ;;  %v3625_v43 = vmax.f32 %v9340_v0, 0.0 }
 0xc95   :  { %v3729_v50 = vmul.f32 0.6931472, %v6839_v53  ;;  %v3872_v53 = vadd.f32 %v3744_v54, %v3616_v27  ;;  %v3768_v27 = vmul.f32 %v9353_v19, %v3767_v42  ;;  %v9459_v54 = vmul.f32 %v9378_v32, %v3794_v52 }
 0xc96   :  { %v6847_v47 = vpop.eup %6846  ;;  %6862 = vlog2.f32 %v3781_v8  ;;  %vm9461_vm7 = vcmp.lt.f32.partialorder %v3796_v61, 0.0004427343  ;;  %v3694_v1 = vsub.f32 0.0, %v3678_v51  ;;  %v3677_v6 = vand.u32 2147483647, %v9366_v15 }
 0xc97   :  { %v9428_v21 = vpop.eup %6848  ;;  %v3735_v8 = vsel %vm9400_vm3, %v9391_v22, %v3729_v50  ;;  %v3765_v30 = vmul.f32 0.6931472, %v6847_v47  ;;  %v3719_v22 = vmul.f32 1.442695, %v3691_v25  ;;  %v3888_v35 = vsel %vm3632_vm10, %v9307_v55, %v3872_v53 }
 0xc98   :  { %v9436_v33 = vpop.eup %6850  ;;  %v3808_v20 = vadd.f32 1.0, %v9428_v21  ;;  %v3871_v32 = vadd.f32 %v3735_v8, %v3615_v60  ;;  %v9478_v7 = vadd.f32 %v3762_v10, %v3618_v18  ;;  %v3753_v47 = vsel %vm9421_vm2, %v9419_v56, %v3747_v24 }
 0xc99   :  { %v3799_v49 = vadd.f32 1.0, %v9436_v33  ;;  %v6853_v59 = vpop.eup %6852  ;;  %v3771_v60 = vsel %vm9430_vm5, %v3768_v27, %v3765_v30  ;;  %v3785_v18 = vadd.f32 1.0, %v3784_v11  ;;  %v3725_v61 = vmul.f32 1.442695, %v3694_v1 }
 0xc9a   :  { %v9468_v19 = vpop.eup %6854  ;;  %v3774_v50 = vmul.f32 0.6931472, %v6853_v59  ;;  %v3693_v52 = vsub.f32 0.0, %v3677_v6  ;;  %v3802_v25 = vmul.f32 -0.5, %v9436_v33  ;;  %v5085_v38 = vand.u32 2147483647, %v9398_v3 }
 0xc9b   :  { %6864 = vlog2.f32 %v3799_v49  ;;  %v6857_v42 = vpop.eup %6856  ;;  %v3826_v37 = vadd.f32 1.0, %v9468_v19  ;;  %v3873_v8 = vadd.f32 %v3753_v47, %v3617_v62  ;;  %v3875_v27 = vadd.f32 %v3771_v60, %v3619_v5 }
 0xc9c   :  { %6866 = vlog2.f32 %v3808_v20  ;;  %v9486_v55 = vpop.eup %6858  ;;  %v3792_v53 = vmul.f32 0.6931472, %v6857_v42  ;;  %v3787_v20 = vand.u32 2147483647, %v9416_v46  ;;  %v3723_v57 = vmul.f32 1.442695, %v3693_v52 }
 0xc9d   :  { %6868 = vpow2.f32 %v3719_v22  ;;  %v3817_v56 = vadd.f32 1.0, %v9486_v55  ;;  %v9495_v51 = vpop.eup %6860  ;;  %v3780_v10 = vsel %vm9444_vm6, %v9442_v31, %v3774_v50  ;;  %v3811_v30 = vmul.f32 -0.5, %v9428_v21 }
 0xc9e   :  { %6870 = vlog2.f32 %v3826_v37  ;;  %v3844_v24 = vadd.f32 1.0, %v9495_v51  ;;  %v3786_v11 = vmul.f32 %v9416_v46, %v3785_v18  ;;  %v3803_v22 = vadd.f32 1.0, %v3802_v25 }
 0xc9f   :  { %6872 = vpow2.f32 %v3725_v61  ;;  %v3805_v1 = vand.u32 2147483647, %v9436_v33  ;;  %v5086_v62 = vsub.f32 0.0, %v5085_v38  ;;  %v3798_v40 = vsel %vm9461_vm7, %v9459_v54, %v3792_v53 }
 0xca0   :  { %v6863_v49 = vpop.eup %6862  ;;  %6874 = vlog2.f32 %v3817_v56  ;;  %vm9516_vm4 = vcmp.lt.f32.partialorder %v3787_v20, 0.0004427343  ;;  %v3820_v6 = vmul.f32 -0.5, %v9486_v55  ;;  %v3887_v46 = vsel %vm3631_vm8, %v9310_v29, %v3871_v32 }
 0xca1   :  { %v3783_v59 = vmul.f32 0.6931472, %v6863_v49  ;;  %6876 = vpow2.f32 %v3723_v57  ;;  %vm3636_vm11 = vcmp.ne.f32.partialorder %v9319_v23, %v9319_v23  ;;  %v3876_v42 = vadd.f32 %v3780_v10, %v3620_v9  ;;  %6046 = vmatprep.mubr.msk.f32.mxu1 %vm204_vm1, %v3887_v46 }
 0xca2   :  { %6878 = vlog2.f32 %v3844_v24  ;;  %v3812_v50 = vadd.f32 1.0, %v3811_v30  ;;  %v3814_v37 = vand.u32 2147483647, %v9428_v21  ;;  %v5087_v60 = vmul.f32 1.442695, %v5086_v62  ;;  %6047 = vmatmul.mubr.msk.f32.vlgmr.msra.gmra.mrb[54].mxu1 %vm204_vm1, %v3888_v35 }
 0xca3   :  { %v3789_v36 = vsel %vm9516_vm4, %v3786_v11, %v3783_v59  ;;  %v3889_v29 = vsel %vm3633_vm9, %v9316_v39, %v3873_v8  ;;  %v3878_v32 = vadd.f32 %v3798_v40, %v3622_v63  ;;  %v3804_v18 = vmul.f32 %v9436_v33, %v3803_v22 }
 0xca4   :  { %vm9543_vm3 = vcmp.lt.f32.partialorder %v3805_v1, 0.0004427343  ;;  %v3829_v52 = vmul.f32 -0.5, %v9468_v19  ;;  %6049 = vmatprep.mubr.msk.f32.mxu1 %vm204_vm1, %v3889_v29  ;;  %v3877_v35 = vadd.f32 %v3789_v36, %v3621_v26  ;;  %v3821_v25 = vadd.f32 1.0, %v3820_v6 }
 0xca5   :  { %v6865_v31 = vpop.eup %6864  ;;  %v3891_v63 = vsel %vm3635_vm13, %v9322_v45, %v3875_v27  ;;  %vm3638_vm12 = vcmp.ne.f32.partialorder %v9325_v2, %v9325_v2  ;;  %v3823_v38 = vand.u32 2147483647, %v9486_v55  ;;  %6880 = vpow2.f32 %v5087_v60 }
 0xca6   :  { %v3801_v54 = vmul.f32 0.6931472, %v6865_v31  ;;  %v6867_v47 = vpop.eup %6866  ;;  %v3890_v26 = vsel %vm3634_vm14, %v9313_v48, %v9478_v7  ;;  %v3813_v45 = vmul.f32 %v9428_v21, %v3812_v50  ;;  %vm9569_vm10 = vcmp.lt.f32.partialorder %v3814_v37, 0.0004427343 }
 0xca7   :  { %v9538_v9 = vpop.eup %6868  ;;  %v3810_v20 = vmul.f32 0.6931472, %v6867_v47  ;;  %6050 = vmatmul.mubr.msk.f32.gmra.mrb[40].mxu1 %vm204_vm1, %v3890_v26  ;;  %v3830_v8 = vadd.f32 1.0, %v3829_v52  ;;  %v3832_v10 = vand.u32 2147483647, %v9468_v19  ;;  %v3847_v24 = vmul.f32 -0.5, %v9495_v51 }
 0xca8   :  { %v3835_v39 = vadd.f32 1.0, %v9538_v9  ;;  %v6871_v33 = vpop.eup %6870  ;;  %v3807_v56 = vsel %vm9543_vm3, %v3804_v18, %v3801_v54  ;;  %6052 = vmatprep.mubr.msk.f32.mxu1 %vm204_vm1, %v3891_v63  ;;  %v3822_v59 = vmul.f32 %v9486_v55, %v3821_v25  ;;  %v3893_v30 = vsel %vm3637_vm0, %v9328_v12, %v3877_v35 }
 0xca9   :  { %v9566_v53 = vpop.eup %6872  ;;  %v3879_v21 = vadd.f32 %v3807_v56, %v3623_v4  ;;  %vm3640_vm2 = vcmp.ne.f32.partialorder %v9330_v44, %v9330_v44  ;;  %vm3824_vm5 = vcmp.lt.f32.partialorder %v3823_v38, 0.0004427343  ;;  %v3838_v11 = vmul.f32 -0.5, %v9538_v9 }
 0xcaa   :  { %6882 = vlog2.f32 %v3835_v39  ;;  %v6875_v49 = vpop.eup %6874  ;;  %v3862_v48 = vadd.f32 1.0, %v9566_v53  ;;  %v3892_v4 = vsel %vm3636_vm11, %v9319_v23, %v3876_v42  ;;  %v3816_v55 = vsel %vm9569_vm10, %v3813_v45, %v3810_v20 }
 0xcab   :  { %v9578_v7 = vpop.eup %6876  ;;  %v3819_v27 = vmul.f32 0.6931472, %v6875_v49  ;;  %v3828_v22 = vmul.f32 0.6931472, %v6871_v33  ;;  %6053 = vmatmul.mubr.msk.f32.gmra.mrb[42].mxu1 %vm204_vm1, %v3892_v4  ;;  %v3831_v31 = vmul.f32 %v9468_v19, %v3830_v8  ;;  %v3848_v40 = vadd.f32 1.0, %v3847_v24  ;;  %v5202_v19 = vld [vmem:[%s10242_s13 + $0x18] sm:$0xff] }
 0xcac   :  { %6884 = vlog2.f32 %v3862_v48  ;;  %v3853_v62 = vadd.f32 1.0, %v9578_v7  ;;  %v6879_v12 = vpop.eup %6878  ;;  %v3865_v5 = vmul.f32 -0.5, %v9566_v53  ;;  %6055 = vmatprep.mubr.msk.f32.mxu1 %vm204_vm1, %v3893_v30  ;;  %vm3639_vm6 = vcmp.ne.f32.partialorder %v9332_v58, %v9332_v58 }
 0xcad   :  { %v3825_v1 = vsel %vm3824_vm5, %v3822_v59, %v3819_v27  ;;  %v3850_v6 = vand.u32 2147483647, %v9495_v51  ;;  %v3895_v46 = vsel %vm3639_vm6, %v9332_v58, %v3879_v21  ;;  %v3880_v42 = vadd.f32 %v3816_v55, %v3624_v41 }
 0xcae   :  { %v3881_v23 = vadd.f32 %v3825_v1, %v3625_v43  ;;  %6886 = vlog2.f32 %v3853_v62  ;;  %vm9609_vm7 = vcmp.lt.f32.partialorder %v3832_v10, 0.0004427343  ;;  %v3839_v36 = vadd.f32 1.0, %v3838_v11 }
 0xcaf   :  { %v3894_v54 = vsel %vm3638_vm12, %v9325_v2, %v3878_v32  ;;  %v3834_v43 = vsel %vm9609_vm7, %v3831_v31, %v3828_v22  ;;  %v3628_v47 = vmax.f32 %v9347_v16, 0.0  ;;  %v3846_v50 = vmul.f32 0.6931472, %v6879_v12  ;;  %v6881_v41 = vpop.eup %6880 }
 0xcb0   :  { %v3841_v58 = vand.u32 2147483647, %v9538_v9  ;;  %6056 = vmatmul.mubr.msk.f32.gmra.mrb[44].mxu1 %vm204_vm1, %v3894_v54  ;;  %v3866_v37 = vadd.f32 1.0, %v3865_v5  ;;  %v3868_v60 = vand.u32 2147483647, %v9566_v53  ;;  %v3856_v29 = vmul.f32 -0.5, %v9578_v7 }
 0xcb1   :  { %6058 = vmatprep.mubr.msk.f32.mxu1 %vm204_vm1, %v3895_v46  ;;  %vm3641_vm8 = vcmp.ne.f32.partialorder %v9340_v0, %v9340_v0  ;;  %v3849_v32 = vmul.f32 %v9495_v51, %v3848_v40  ;;  %vm9628_vm9 = vcmp.lt.f32.partialorder %v3850_v6, 0.0004427343  ;;  %v5089_v61 = vadd.f32 1.0, %v6881_v41  ;;  %v5200_v6 = vld [vmem:[%s10242_s13 + $0x8] sm:$0xff]  ;;  %v5203_v54 = vld [vmem:[%s10242_s13 + $0x20] sm:$0xff] }
 0xcb2   :  { %v3897_v52 = vsel %vm3641_vm8, %v9340_v0, %v3881_v23  ;;  %v10519_v35 = vmax.f32 %v9335_v14, 0.0  ;;  %v3840_v63 = vmul.f32 %v9538_v9, %v3839_v36  ;;  %v3896_v33 = vsel %vm3640_vm2, %v9330_v44, %v3880_v42 }
 0xcb3   :  { %v3852_v51 = vsel %vm9628_vm9, %v3849_v32, %v3846_v50  ;;  %v3627_v56 = vmax.f32 %v9351_v34, 0.0  ;;  %vm3842_vm13 = vcmp.lt.f32.partialorder %v3841_v58, 0.0004427343  ;;  %6888 = vlog2.f32 %v5089_v61  ;;  %v5205_v50 = vld [vmem:[%s10242_s13 + $0x30] sm:$0xff]  ;;  %v5206_v58 = vld [vmem:[%s10242_s13 + $0x38] sm:$0xff] }
 0xcb4   :  { %v6883_v2 = vpop.eup %6882  ;;  %v3882_v25 = vadd.f32 %v3834_v43, %v10519_v35  ;;  %6059 = vmatmul.mubr.msk.f32.gmra.mrb[46].mxu1 %vm204_vm1, %v3896_v33  ;;  %v3867_v26 = vmul.f32 %v9566_v53, %v3866_v37  ;;  %vm9645_vm14 = vcmp.lt.f32.partialorder %v3868_v60, 0.0004427343  ;;  %v3857_v20 = vadd.f32 1.0, %v3856_v29  ;;  %v5204_v43 = vld [vmem:[%s10242_s13 + $0x28] sm:$0xff]  ;;  %v9713_v37 = vld [vmem:[%s10240_s11] sm:$0x7] }
 0xcb5   :  { %v3837_v39 = vmul.f32 0.6931472, %v6883_v2  ;;  %6061 = vmatprep.mubr.msk.f32.mxu1 %vm204_vm1, %v3897_v52  ;;  %v3859_v57 = vand.u32 2147483647, %v9578_v7  ;;  %vm3642_vm0 = vcmp.ne.f32.partialorder %v9335_v14, %v9335_v14  ;;  %v3884_v49 = vadd.f32 %v3852_v51, %v3628_v47  ;;  %v10524_v60 = vld [vmem:[#allocation13_spill] sm:$0xff] }
 0xcb6   :  { %v6885_v0 = vpop.eup %6884  ;;  %v5092_v8 = vmul.f32 -0.5, %v6881_v41  ;;  %v3898_v10 = vsel %vm3642_vm0, %v9335_v14, %v3882_v25  ;;  %vm3643_vm4 = vcmp.ne.f32.partialorder %v9351_v34, %v9351_v34  ;;  %v3630_v21 = vmax.f32 %v9363_v17, 0.0 }
 0xcb7   :  { %v3843_v38 = vsel %vm3842_vm13, %v3840_v63, %v3837_v39  ;;  %v3864_v45 = vmul.f32 0.6931472, %v6885_v0  ;;  %v3858_v59 = vmul.f32 %v9578_v7, %v3857_v20  ;;  %v3629_v14 = vmax.f32 %v9366_v15, 0.0 }
 0xcb8   :  { %v3883_v44 = vadd.f32 %v3843_v38, %v3627_v56  ;;  %v6887_v53 = vpop.eup %6886  ;;  %6062 = vmatmul.mubr.msk.f32.gmra.mrb[48].mxu1 %vm204_vm1, %v3898_v10  ;;  %vm3860_vm11 = vcmp.lt.f32.partialorder %v3859_v57, 0.0004427343  ;;  %vm3644_vm3 = vcmp.ne.f32.partialorder %v9347_v16, %v9347_v16  ;;  %v5093_v4 = vadd.f32 1.0, %v5092_v8 }
 0xcb9   :  { %v3870_v24 = vsel %vm9645_vm14, %v3867_v26, %v3864_v45  ;;  %v3855_v27 = vmul.f32 0.6931472, %v6887_v53  ;;  %v3900_v55 = vsel %vm3644_vm3, %v9347_v16, %v3884_v49  ;;  %vm3645_vm12 = vcmp.ne.f32.partialorder %v9366_v15, %v9366_v15 }
 0xcba   :  { %v3899_v48 = vsel %vm3643_vm4, %v9351_v34, %v3883_v44  ;;  %v3886_v30 = vadd.f32 %v3870_v24, %v3630_v21  ;;  %v5095_v34 = vand.u32 2147483647, %v6881_v41  ;;  %vm3646_vm10 = vcmp.ne.f32.partialorder %v9363_v17, %v9363_v17 }
 0xcbb   :  { %6064 = vmatprep.mubr.msk.f32.mxu1 %vm204_vm1, %v3899_v48  ;;  %v3861_v11 = vsel %vm3860_vm11, %v3858_v59, %v3855_v27  ;;  %v5094_v12 = vmul.f32 %v6881_v41, %v5093_v4  ;;  %v5082_v16 = vmax.f32 %v9398_v3, 0.0  ;;  %vm5083_vm5 = vcmp.ne.f32.partialorder %v9398_v3, %v9398_v3 }
 0xcbc   :  { %v3885_v22 = vadd.f32 %v3861_v11, %v3629_v14  ;;  %6065 = vmatmul.mubr.msk.f32.gmra.mrb[50].mxu1 %vm204_vm1, %v3900_v55  ;;  %v3902_v31 = vsel %vm3646_vm10, %v9363_v17, %v3886_v30  ;;  %vm5096_vm2 = vcmp.lt.f32.partialorder %v5095_v34, 0.0004427343  ;;  %v10522_v23 = vmov 0.0   ;;  %v5199_v17 = vld [vmem:[%s10242_s13] sm:$0xff] }
 0xcbd   :  { %v6889_v7 = vpop.eup %6888  ;;  %v6313_v46 = vpack.c.bf16 %v5200_v6, %v5199_v17  ;;  %v10523_v42 = vmov 0.0|0.0   ;;  %v6319_v47 = vpack.c.bf16 %v5204_v43, %v5203_v54  ;;  %v6322_v41 = vpack.c.bf16 %v5206_v58, %v5205_v50  ;;  %v9756_v11 = vld [vmem:[%s10243_s14] sm:$0x3]  ;;  %v10525_v17 = vld [vmem:[#allocation9_spill] sm:$0xff] }
 0xcbe   :  { %v3901_v1 = vsel %vm3645_vm12, %v9366_v15, %v3885_v22  ;;  %v5091_v62 = vmul.f32 0.6931472, %v6889_v7  ;;  %v9717_v29 = vrot.slane %v9713_v37, %v10524_v60  ;;  %v9771_v6 = vrot.slane %v9713_v37, %v10525_v17 }
 0xcbf   :  { %6067 = vmatprep.mubr.msk.f32.mxu1 %vm204_vm1, %v3901_v1 }
 0xcc0   :  { %6068 = vmatmul.mubr.msk.f32.gmra.mrb[52].mxu1 %vm204_vm1, %v3902_v31  ;;  %v5097_v40 = vsel %vm5096_vm2, %v5094_v12, %v5091_v62 }
 0xcc1   :  { %v5098_v5 = vadd.f32 %v5097_v40, %v5082_v16  ;;  %v5107_v16 = vrot.slane %v9756_v11, %v10524_v60 }
 0xcc3   :  { %v5099_v15 = vsel %vm5083_vm5, %v9398_v3, %v5098_v5  ;;  %v5201_v3 = vld [vmem:[%s10242_s13 + $0x10] sm:$0xff] }
 0xcc4   :  { %6086 = vmatmul.mubr.msk.f32.vlgmr.msra.gmra.mrb[48].mxu0 %vm204_vm1, %v5099_v15  ;;  %v6316_v36 = vpack.c.bf16 %v5202_v19, %v5201_v3 }
 0xcc5   :  { %6104 = vmatprep.mubr.msk.f32.mxu0 %vm7036_vm15, %v10522_v23  ;;  %6314 = vmatpush3.bf16.msra.mxu0 %v6313_v46  ;;  %vm4905_vm15 = vcmask 523264  }
 0xcc6   :  { %6315 = vmatprep.subr.bf16.mxu0 %v10523_v42 }
 0xcc9   :  { %6317 = vmatpush3.bf16.msra.mxu0 %v6316_v36 }
 0xcca   :  { %6318 = vmatprep.subr.bf16.mxu0 %v10523_v42 }
 0xccd   :  { %6320 = vmatpush3.bf16.msra.mxu0 %v6319_v47 }
 0xcce   :  { %6321 = vmatprep.subr.bf16.mxu0 %v10523_v42 }
 0xcd1   :  { %6323 = vmatpush3.bf16.msra.mxu0 %v6322_v41 }
 0xd75   :  { %v6048_v2 = vpop.f32.mrb[54].mxu1 }
 0xd76   :  { %v4504_v32 = vadd.f32 %v6048_v2, %v9376_v28  ;;  %v4498_v18 = vpop.f32.mrb[55].mxu1 }
 0xd77   :  { %v4499_v61 = vadd.f32 %v4498_v18, %v9387_v13 }
 0xd78   :  { %v9722_v52 = vadd.f32 %v9717_v29, %v4504_v32 }
 0xd79   :  { %v9725_v35 = vadd.f32 %v9717_v29, %v4499_v61 }
 0xd7a   :  { %v6051_v25 = vpop.f32.mrb[40].mxu1  ;;  %v4646_v39 = vand.u32 2147483647, %v9722_v52  ;;  %v4598_v23 = vmax.f32 %v9722_v52, 0.0  ;;  %vm4614_vm1 = vcmp.ne.f32.partialorder %v9722_v52, %v9722_v52 }
 0xd7b   :  { %v4508_v63 = vpop.f32.mrb[41].mxu1  ;;  %v4645_v33 = vand.u32 2147483647, %v9725_v35  ;;  %v9733_v28 = vadd.f32 %v6051_v25, %v9717_v29  ;;  %v4597_v2 = vmax.f32 %v9725_v35, 0.0  ;;  %vm4613_vm7 = vcmp.ne.f32.partialorder %v9725_v35, %v9725_v35 }
 0xd7c   :  { %v9730_v51 = vadd.f32 %v9717_v29, %v4508_v63  ;;  %v4662_v56 = vsub.f32 0.0, %v4646_v39 }
 0xd7d   :  { %v4661_v38 = vsub.f32 0.0, %v4645_v33  ;;  %v4648_v45 = vand.u32 2147483647, %v9733_v28  ;;  %v4600_v32 = vmax.f32 %v9733_v28, 0.0  ;;  %vm4616_vm0 = vcmp.ne.f32.partialorder %v9733_v28, %v9733_v28 }
 0xd7e   :  { %v6054_v13 = vpop.f32.mrb[42].mxu1  ;;  %v4679_v0 = vmul.f32 1.442695, %v4662_v56  ;;  %v4647_v26 = vand.u32 2147483647, %v9730_v51  ;;  %vm4615_vm8 = vcmp.ne.f32.partialorder %v9730_v51, %v9730_v51 }
 0xd7f   :  { %v9737_v9 = vadd.f32 %v6054_v13, %v9717_v29  ;;  %v4518_v20 = vpop.f32.mrb[43].mxu1  ;;  %v4677_v49 = vmul.f32 1.442695, %v4661_v38  ;;  %v4664_v27 = vsub.f32 0.0, %v4648_v45 }
 0xd80   :  { %v9740_v44 = vadd.f32 %v9717_v29, %v4518_v20  ;;  %6890 = vpow2.f32 %v4679_v0  ;;  %v4663_v8 = vsub.f32 0.0, %v4647_v26 }
 0xd81   :  { %v4650_v10 = vand.u32 2147483647, %v9737_v9  ;;  %6892 = vpow2.f32 %v4677_v49  ;;  %v4683_v62 = vmul.f32 1.442695, %v4664_v27  ;;  %v4599_v49 = vmax.f32 %v9730_v51, 0.0 }
 0xd82   :  { %v4649_v48 = vand.u32 2147483647, %v9740_v44  ;;  %v4681_v4 = vmul.f32 1.442695, %v4663_v8  ;;  %v4602_v8 = vmax.f32 %v9737_v9, 0.0  ;;  %vm4617_vm11 = vcmp.ne.f32.partialorder %v9740_v44, %v9740_v44 }
 0xd83   :  { %v6057_v57 = vpop.f32.mrb[44].mxu1  ;;  %v4666_v55 = vsub.f32 0.0, %v4650_v10  ;;  %vm4618_vm3 = vcmp.ne.f32.partialorder %v9737_v9, %v9737_v9 }
 0xd84   :  { %v9745_v53 = vadd.f32 %v6057_v57, %v9717_v29  ;;  %v4528_v24 = vpop.f32.mrb[45].mxu1  ;;  %v4665_v7 = vsub.f32 0.0, %v4649_v48  ;;  %6894 = vpow2.f32 %v4681_v4 }
 0xd85   :  { %v9749_v21 = vadd.f32 %v9717_v29, %v4528_v24  ;;  %v4687_v42 = vmul.f32 1.442695, %v4666_v55  ;;  %6896 = vpow2.f32 %v4683_v62 }
 0xd86   :  { %v4652_v59 = vand.u32 2147483647, %v9745_v53  ;;  %v4685_v54 = vmul.f32 1.442695, %v4665_v7 }
 0xd87   :  { %v4651_v14 = vand.u32 2147483647, %v9749_v21  ;;  %v6060_v30 = vpop.f32.mrb[46].mxu1  ;;  %vm4619_vm10 = vcmp.ne.f32.partialorder %v9749_v21, %v9749_v21 }
 0xd88   :  { %v9759_v22 = vadd.f32 %v6060_v30, %v9717_v29  ;;  %v4538_v34 = vpop.f32.mrb[47].mxu1  ;;  %v4668_v12 = vsub.f32 0.0, %v4652_v59 }
 0xd89   :  { %v9762_v1 = vadd.f32 %v9717_v29, %v4538_v34  ;;  %v4667_v40 = vsub.f32 0.0, %v4651_v14 }
 0xd8a   :  { %v4654_v31 = vand.u32 2147483647, %v9759_v22  ;;  %v9773_v46 = vpop.eup %6890  ;;  %v4691_v58 = vmul.f32 1.442695, %v4668_v12 }
 0xd8b   :  { %v4653_v5 = vand.u32 2147483647, %v9762_v1  ;;  %v6063_v15 = vpop.f32.mrb[48].mxu1  ;;  %v4718_v50 = vadd.f32 1.0, %v9773_v46  ;;  %v4689_v18 = vmul.f32 1.442695, %v4667_v40  ;;  %v9792_v26 = vpop.eup %6892 }
 0xd8c   :  { %v4670_v3 = vsub.f32 0.0, %v4654_v31  ;;  %v9776_v19 = vadd.f32 %v6063_v15, %v9717_v29  ;;  %v4548_v36 = vpop.f32.mrb[49].mxu1  ;;  %v4721_v57 = vmul.f32 -0.5, %v9773_v46  ;;  %v4709_v55 = vadd.f32 1.0, %v9792_v26 }
 0xd8d   :  { %v4669_v43 = vsub.f32 0.0, %v4653_v5  ;;  %v9779_v47 = vadd.f32 %v9717_v29, %v4548_v36  ;;  %6898 = vlog2.f32 %v4718_v50  ;;  %v4601_v31 = vmax.f32 %v9740_v44, 0.0 }
 0xd8e   :  { %v4656_v41 = vand.u32 2147483647, %v9776_v19  ;;  %6900 = vpow2.f32 %v4687_v42  ;;  %v4695_v39 = vmul.f32 1.442695, %v4670_v3  ;;  %v9806_v34 = vpop.eup %6894  ;;  %v4722_v12 = vadd.f32 1.0, %v4721_v57 }
 0xd8f   :  { %v4655_v61 = vand.u32 2147483647, %v9779_v47  ;;  %v6066_v25 = vpop.f32.mrb[50].mxu1  ;;  %6902 = vpow2.f32 %v4685_v54  ;;  %v4693_v13 = vmul.f32 1.442695, %v4669_v43  ;;  %v4604_v15 = vmax.f32 %v9745_v53, 0.0 }
 0xd90   :  { %v4672_v63 = vsub.f32 0.0, %v4656_v41  ;;  %v9787_v33 = vadd.f32 %v6066_v25, %v9717_v29  ;;  %v4558_v56 = vpop.f32.mrb[51].mxu1  ;;  %6904 = vpow2.f32 %v4691_v58  ;;  %v4724_v5 = vand.u32 2147483647, %v9773_v46 }
 0xd91   :  { %v4671_v0 = vsub.f32 0.0, %v4655_v61  ;;  %v9790_v38 = vadd.f32 %v9717_v29, %v4558_v56  ;;  %6906 = vpow2.f32 %v4689_v18  ;;  %v4712_v36 = vmul.f32 -0.5, %v9792_v26 }
 0xd92   :  { %v4699_v20 = vmul.f32 1.442695, %v4672_v63  ;;  %v4658_v45 = vand.u32 2147483647, %v9787_v33  ;;  %6908 = vpow2.f32 %v4695_v39  ;;  %v4727_v18 = vadd.f32 1.0, %v9806_v34 }
 0xd93   :  { %v4657_v10 = vand.u32 2147483647, %v9790_v38  ;;  %v6069_v24 = vpop.f32.mrb[52].mxu1  ;;  %v4697_v48 = vmul.f32 1.442695, %v4671_v0  ;;  %6910 = vpow2.f32 %v4693_v13  ;;  %v4723_v63 = vmul.f32 %v9773_v46, %v4722_v12 }
 0xd94   :  { %v4674_v27 = vsub.f32 0.0, %v4658_v45  ;;  %v9800_v59 = vadd.f32 %v6069_v24, %v9717_v29  ;;  %v4568_v14 = vpop.f32.mrb[53].mxu1  ;;  %6912 = vpow2.f32 %v4699_v20  ;;  %v4603_v13 = vmax.f32 %v9749_v21, 0.0 }
 0xd95   :  { %v4673_v30 = vsub.f32 0.0, %v4657_v10  ;;  %v9803_v4 = vadd.f32 %v9717_v29, %v4568_v14  ;;  %6914 = vlog2.f32 %v4709_v55  ;;  %v9814_v29 = vpop.eup %6896  ;;  %vm4725_vm6 = vcmp.lt.f32.partialorder %v4724_v5, 0.0004427343 }
 0xd96   :  { %v4703_v7 = vmul.f32 1.442695, %v4674_v27  ;;  %v4660_v62 = vand.u32 2147483647, %v9800_v59  ;;  %6916 = vpow2.f32 %v4697_v48  ;;  %v4713_v45 = vadd.f32 1.0, %v4712_v36 }
 0xd97   :  { %v4659_v40 = vand.u32 2147483647, %v9803_v4  ;;  %v5177_v3 = vpop.f32.mrb[48].mxu0  ;;  %v6899_v54 = vpop.eup %6898  ;;  %v4701_v43 = vmul.f32 1.442695, %v4673_v30  ;;  %v4730_v57 = vmul.f32 -0.5, %v9806_v34 }
 0xd98   :  { %v4676_v42 = vsub.f32 0.0, %v4660_v62  ;;  %v9821_v58 = vadd.f32 %v5177_v3, %v5107_v16  ;;  %v6087_v41 = vpop.f32.mrb[49].mxu0  ;;  %v9824_v61 = vpop.eup %6900  ;;  %6918 = vpow2.f32 %v4703_v7  ;;  %v4720_v39 = vmul.f32 0.6931472, %v6899_v54 }
 0xd99   :  { %v4675_v50 = vsub.f32 0.0, %v4659_v40  ;;  %v9827_v56 = vpop.eup %6902  ;;  %6920 = vlog2.f32 %v4727_v18  ;;  %v4736_v48 = vadd.f32 1.0, %v9814_v29  ;;  %v4605_v14 = vmax.f32 %v9762_v1, 0.0 }
 0xd9a   :  { %v4707_v25 = vmul.f32 1.442695, %v4676_v42  ;;  %v5184_v0 = vand.u32 2147483647, %v9821_v58  ;;  %v9831_v60 = vpop.eup %6904  ;;  %v4726_v20 = vsel %vm4725_vm6, %v4723_v63, %v4720_v39  ;;  %6922 = vpow2.f32 %v4701_v43 }
 0xd9b   :  { %v4705_v16 = vmul.f32 1.442695, %v4675_v50  ;;  %v9834_v10 = vpop.eup %6906  ;;  %v4854_v46 = vadd.f32 %v4726_v20, %v4598_v23  ;;  %v4715_v30 = vand.u32 2147483647, %v9792_v26  ;;  %v4739_v55 = vmul.f32 -0.5, %v9814_v29 }
 0xd9c   :  { %v5185_v24 = vsub.f32 0.0, %v5184_v0  ;;  %v9839_v27 = vpop.eup %6908  ;;  %6924 = vpow2.f32 %v4707_v25  ;;  %v4733_v62 = vand.u32 2147483647, %v9806_v34  ;;  %v4745_v12 = vadd.f32 1.0, %v9827_v56 }
 0xd9d   :  { %v9846_v7 = vpop.eup %6910  ;;  %v4870_v23 = vsel %vm4614_vm1, %v9722_v52, %v4854_v46  ;;  %6926 = vlog2.f32 %v4736_v48  ;;  %v4714_v42 = vmul.f32 %v9792_v26, %v4713_v45  ;;  %v4731_v3 = vadd.f32 1.0, %v4730_v57 }
 0xd9e   :  { %v9854_v40 = vpop.eup %6912  ;;  %6928 = vpow2.f32 %v4705_v16  ;;  %v4890_v5 = vmul.f32 %v9771_v6, %v4870_v23  ;;  %v5186_v54 = vmul.f32 1.442695, %v5185_v24  ;;  %v4742_v43 = vand.u32 2147483647, %v9814_v29 }
 0xd9f   :  { %v6915_v36 = vpop.eup %6914  ;;  %v4748_v50 = vmul.f32 -0.5, %v9827_v56  ;;  %v4754_v52 = vadd.f32 1.0, %v9824_v61  ;;  %v4740_v39 = vadd.f32 1.0, %v4739_v55  ;;  %6930 = vlog2.f32 %v4745_v12 }
 0xda0   :  { %v9861_v41 = vpop.eup %6916  ;;  %v4909_v18 = vsel %vm4905_vm15, %v4890_v5, 0.0  ;;  %v4711_v25 = vmul.f32 0.6931472, %v6915_v36  ;;  %vm4716_vm9 = vcmp.lt.f32.partialorder %v4715_v30, 0.0004427343  ;;  %v4757_v45 = vmul.f32 -0.5, %v9824_v61 }
 0xda1   :  { %4910 = vadd.xlane.f32.xlu0 %v4909_v18  ;;  %vm9866_vm13 = vcmp.lt.f32.partialorder %v4733_v62, 0.0004427343  ;;  %v4751_v63 = vand.u32 2147483647, %v9827_v56  ;;  %6932 = vlog2.f32 %v4754_v52  ;;  %v4749_v20 = vadd.f32 1.0, %v4748_v50 }
 0xda2   :  { %v9871_v0 = vpop.eup %6918  ;;  %v4717_v16 = vsel %vm4716_vm9, %v4714_v42, %v4711_v25  ;;  %v4763_v57 = vadd.f32 1.0, %v9834_v10  ;;  %6934 = vpow2.f32 %v5186_v54  ;;  %v4732_v48 = vmul.f32 %v9806_v34, %v4731_v3 }
 0xda3   :  { %v6921_v24 = vpop.eup %6920  ;;  %v4853_v46 = vadd.f32 %v4717_v16, %v4597_v2  ;;  %vm9878_vm14 = vcmp.lt.f32.partialorder %v4742_v43, 0.0004427343  ;;  %v4741_v23 = vmul.f32 %v9814_v29, %v4740_v39  ;;  %v4766_v62 = vmul.f32 -0.5, %v9834_v10 }
 0xda4   :  { %v4729_v55 = vmul.f32 0.6931472, %v6921_v24  ;;  %6936 = vlog2.f32 %v4763_v57  ;;  %v9886_v12 = vpop.eup %6922  ;;  %vm9892_vm4 = vcmp.lt.f32.partialorder %v4751_v63, 0.0004427343  ;;  %v4760_v5 = vand.u32 2147483647, %v9824_v61 }
 0xda5   :  { %v4869_v2 = vsel %vm4613_vm7, %v9725_v35, %v4853_v46  ;;  %v4772_v42 = vadd.f32 1.0, %v9831_v60  ;;  %v4750_v54 = vmul.f32 %v9827_v56, %v4749_v20  ;;  %v4758_v43 = vadd.f32 1.0, %v4757_v45 }
 0xda6   :  { %v9898_v3 = vpop.eup %6924  ;;  %v4889_v29 = vmul.f32 %v9771_v6, %v4869_v2  ;;  %v4735_v36 = vsel %vm9866_vm13, %v4732_v48, %v4729_v55  ;;  %v4769_v52 = vand.u32 2147483647, %v9834_v10  ;;  %v4781_v18 = vadd.f32 1.0, %v9846_v7 }
 0xda7   :  { %v6927_v50 = vpop.eup %6926  ;;  %v4855_v35 = vadd.f32 %v4735_v36, %v4599_v49  ;;  %6938 = vlog2.f32 %v4772_v42  ;;  %v4767_v56 = vadd.f32 1.0, %v4766_v62  ;;  %v4775_v63 = vmul.f32 -0.5, %v9831_v60 }
 0xda8   :  { %v9910_v25 = vpop.eup %6928  ;;  %v4906_v39 = vsel %vm4905_vm15, %v4889_v29, 0.0  ;;  %v4738_v26 = vmul.f32 0.6931472, %v6927_v50  ;;  %vm9920_vm12 = vcmp.lt.f32.partialorder %v4760_v5, 0.0004427343  ;;  %6940 = vlog2.f32 %v4781_v18 }
 0xda9   :  { %4907 = vadd.xlane.f32.xlu1 %v4906_v39  ;;  %v4871_v49 = vsel %vm4615_vm8, %v9730_v51, %v4855_v35  ;;  %v4778_v20 = vand.u32 2147483647, %v9831_v60  ;;  %v6931_v45 = vpop.eup %6930  ;;  %v4759_v46 = vmul.f32 %v9824_v61, %v4758_v43  ;;  %v4784_v48 = vmul.f32 -0.5, %v9846_v7 }
 0xdaa   :  { %v4891_v57 = vmul.f32 %v9771_v6, %v4871_v49  ;;  %v4744_v24 = vsel %vm9878_vm14, %v4741_v23, %v4738_v26  ;;  %v4747_v62 = vmul.f32 0.6931472, %v6931_v45  ;;  %vm9934_vm2 = vcmp.lt.f32.partialorder %v4769_v52, 0.0004427343 }
 0xdab   :  { %v6933_v55 = vpop.eup %6932  ;;  %v4856_v51 = vadd.f32 %v4744_v24, %v4600_v32  ;;  %v4790_v5 = vadd.f32 1.0, %v9839_v27  ;;  %v4768_v61 = vmul.f32 %v9834_v10, %v4767_v56  ;;  %v4776_v42 = vadd.f32 1.0, %v4775_v63 }
 0xdac   :  { %v4912_v30 = vsel %vm4905_vm15, %v4891_v57, 0.0  ;;  %v4756_v23 = vmul.f32 0.6931472, %v6933_v55  ;;  %v9941_v29 = vpop.eup %6934  ;;  %v4753_v36 = vsel %vm9892_vm4, %v4750_v54, %v4747_v62  ;;  %vm9949_vm5 = vcmp.lt.f32.partialorder %v4778_v20, 0.0004427343 }
 0xdad   :  { %4913 = vadd.xlane.f32.xlu0 %v4912_v30  ;;  %v4872_v32 = vsel %vm4616_vm0, %v9733_v28, %v4856_v51  ;;  %6942 = vlog2.f32 %v4790_v5  ;;  %v4857_v35 = vadd.f32 %v4753_v36, %v4601_v31  ;;  %vm4620_vm1 = vcmp.ne.f32.partialorder %v9745_v53, %v9745_v53 }
 0xdae   :  { %v6937_v50 = vpop.eup %6936  ;;  %v4892_v10 = vmul.f32 %v9771_v6, %v4872_v32  ;;  %v4762_v52 = vsel %vm9920_vm12, %v4759_v46, %v4756_v23  ;;  %v4785_v28 = vadd.f32 1.0, %v4784_v48  ;;  %v4793_v18 = vmul.f32 -0.5, %v9839_v27 }
 0xdaf   :  { %v4858_v34 = vadd.f32 %v4762_v52, %v4602_v8  ;;  %v4765_v54 = vmul.f32 0.6931472, %v6937_v50  ;;  %v4799_v39 = vadd.f32 1.0, %v9861_v41  ;;  %v4873_v31 = vsel %vm4617_vm11, %v9740_v44, %v4857_v35 }
 0xdb0   :  { %v4915_v26 = vsel %vm4905_vm15, %v4892_v10, 0.0  ;;  %v4777_v56 = vmul.f32 %v9831_v60, %v4776_v42  ;;  %v4787_v63 = vand.u32 2147483647, %v9846_v7  ;;  %v4893_v8 = vmul.f32 %v9771_v6, %v4873_v31 }
 0xdb1   :  { %v6939_v49 = vpop.eup %6938  ;;  %4916 = vadd.xlane.f32.xlu1 %v4915_v26  ;;  %v4874_v16 = vsel %vm4618_vm3, %v9737_v9, %v4858_v34  ;;  %v4771_v20 = vsel %vm9934_vm2, %v4768_v61, %v4765_v54  ;;  %6944 = vlog2.f32 %v4799_v39  ;;  %v4786_v57 = vmul.f32 %v9846_v7, %v4785_v28 }
 0xdb2   :  { %v4894_v45 = vmul.f32 %v9771_v6, %v4874_v16  ;;  %v4859_v44 = vadd.f32 %v4771_v20, %v4603_v13  ;;  %v4774_v60 = vmul.f32 0.6931472, %v6939_v49  ;;  %v6941_v24 = vpop.eup %6940  ;;  %v4918_v46 = vsel %vm4905_vm15, %v4893_v8, 0.0 }
 0xdb3   :  { %v4794_v48 = vadd.f32 1.0, %v4793_v18  ;;  %v4802_v55 = vmul.f32 -0.5, %v9861_v41  ;;  %v4808_v9 = vadd.f32 1.0, %v9854_v40  ;;  %4919 = vadd.xlane.f32.xlu0 %v4918_v46  ;;  %v4783_v7 = vmul.f32 0.6931472, %v6941_v24 }
 0xdb4   :  { %v4921_v51 = vsel %vm4905_vm15, %v4894_v45, 0.0  ;;  %v4875_v62 = vsel %vm4619_vm10, %v9749_v21, %v4859_v44  ;;  %v4780_v13 = vsel %vm9949_vm5, %v4777_v56, %v4774_v60  ;;  %vm4788_vm6 = vcmp.lt.f32.partialorder %v4787_v63, 0.0004427343 }
 0xdb5   :  { %4922 = vadd.xlane.f32.xlu1 %v4921_v51  ;;  %v4895_v2 = vmul.f32 %v9771_v6, %v4875_v62  ;;  %v4860_v5 = vadd.f32 %v4780_v13, %v4604_v15  ;;  %v4796_v30 = vand.u32 2147483647, %v9839_v27  ;;  %v4606_v23 = vmax.f32 %v9759_v22, 0.0 }
 0xdb6   :  { %vm4621_vm7 = vcmp.ne.f32.partialorder %v9762_v1, %v9762_v1  ;;  %v4789_v61 = vsel %vm4788_vm6, %v4786_v57, %v4783_v7  ;;  %6946 = vlog2.f32 %v4808_v9  ;;  %v4803_v36 = vadd.f32 1.0, %v4802_v55 }
 0xdb7   :  { %v6943_v21 = vpop.eup %6942  ;;  %v4924_v42 = vsel %vm4905_vm15, %v4895_v2, 0.0  ;;  %v4876_v32 = vsel %vm4620_vm1, %v9745_v53, %v4860_v5  ;;  %v4861_v15 = vadd.f32 %v4789_v61, %v4605_v14  ;;  %v4795_v10 = vmul.f32 %v9839_v27, %v4794_v48 }
 0xdb8   :  { %4925 = vadd.xlane.f32.xlu0 %v4924_v42  ;;  %v4896_v43 = vmul.f32 %v9771_v6, %v4876_v32  ;;  %v4792_v50 = vmul.f32 0.6931472, %v6943_v21  ;;  %v4811_v35 = vmul.f32 -0.5, %v9854_v40  ;;  %vm4797_vm8 = vcmp.lt.f32.partialorder %v4796_v30, 0.0004427343 }
 0xdb9   :  { %v4877_v52 = vsel %vm4621_vm7, %v9762_v1, %v4861_v15  ;;  %v4805_v28 = vand.u32 2147483647, %v9861_v41  ;;  %v4817_v34 = vadd.f32 1.0, %v9886_v12  ;;  %vm4622_vm9 = vcmp.ne.f32.partialorder %v9759_v22, %v9759_v22 }
 0xdba   :  { %v4927_v53 = vsel %vm4905_vm15, %v4896_v43, 0.0  ;;  %v4897_v14 = vmul.f32 %v9771_v6, %v4877_v52  ;;  %v4798_v54 = vsel %vm4797_vm8, %v4795_v10, %v4792_v50  ;;  %v4804_v39 = vmul.f32 %v9861_v41, %v4803_v36 }
 0xdbb   :  { %v6945_v18 = vpop.eup %6944  ;;  %4928 = vadd.xlane.f32.xlu1 %v4927_v53  ;;  %v4862_v27 = vadd.f32 %v4798_v54, %v4606_v23  ;;  %6948 = vlog2.f32 %v4817_v34  ;;  %v4812_v31 = vadd.f32 1.0, %v4811_v35  ;;  %v4826_v56 = vadd.f32 1.0, %v9871_v0 }
 0xdbc   :  { %v4930_v1 = vsel %vm4905_vm15, %v4897_v14, 0.0  ;;  %v4801_v26 = vmul.f32 0.6931472, %v6945_v18  ;;  %v4607_v63 = vmax.f32 %v9779_v47, 0.0  ;;  %vm4806_vm13 = vcmp.lt.f32.partialorder %v4805_v28, 0.0004427343 }
 0xdbd   :  { %4931 = vadd.xlane.f32.xlu0 %v4930_v1  ;;  %v4878_v49 = vsel %vm4622_vm9, %v9759_v22, %v4862_v27  ;;  %v4814_v8 = vand.u32 2147483647, %v9854_v40  ;;  %v4820_v41 = vmul.f32 -0.5, %v9886_v12  ;;  %6950 = vlog2.f32 %v4826_v56 }
 0xdbe   :  { %v4898_v16 = vmul.f32 %v9771_v6, %v4878_v49  ;;  %v4807_v20 = vsel %vm4806_vm13, %v4804_v39, %v4801_v26  ;;  %v4835_v44 = vadd.f32 1.0, %v9910_v25  ;;  %v4608_v57 = vmax.f32 %v9776_v19, 0.0 }
 0xdbf   :  { %v4863_v45 = vadd.f32 %v4807_v20, %v4607_v63  ;;  %vm4623_vm14 = vcmp.ne.f32.partialorder %v9779_v47, %v9779_v47  ;;  %v4813_v22 = vmul.f32 %v9854_v40, %v4812_v31  ;;  %v4829_v55 = vmul.f32 -0.5, %v9871_v0 }
 0xdc0   :  { %v6947_v60 = vpop.eup %6946  ;;  %v4933_v24 = vsel %vm4905_vm15, %v4898_v16, 0.0  ;;  %6952 = vlog2.f32 %v4835_v44  ;;  %vm4815_vm0 = vcmp.lt.f32.partialorder %v4814_v8, 0.0004427343  ;;  %v4821_v51 = vadd.f32 1.0, %v4820_v41 }
 0xdc1   :  { %4934 = vadd.xlane.f32.xlu1 %v4933_v24  ;;  %v4879_v46 = vsel %vm4623_vm14, %v9779_v47, %v4863_v45  ;;  %v4810_v48 = vmul.f32 0.6931472, %v6947_v60  ;;  %v5188_v62 = vadd.f32 1.0, %v9941_v29  ;;  %v4823_v7 = vand.u32 2147483647, %v9886_v12 }
 0xdc2   :  { %v4899_v9 = vmul.f32 %v9771_v6, %v4879_v46  ;;  %v4838_v40 = vmul.f32 -0.5, %v9910_v25  ;;  %v4609_v30 = vmax.f32 %v9790_v38, 0.0  ;;  %vm4624_vm4 = vcmp.ne.f32.partialorder %v9776_v19, %v9776_v19 }
 0xdc3   :  { %v4816_v13 = vsel %vm4815_vm0, %v4813_v22, %v4810_v48  ;;  %6954 = vlog2.f32 %v5188_v62  ;;  %v4830_v23 = vadd.f32 1.0, %v4829_v55  ;;  %v4844_v61 = vadd.f32 1.0, %v9898_v3 }
 0xdc4   :  { %v4936_v2 = vsel %vm4905_vm15, %v4899_v9, 0.0  ;;  %v4864_v5 = vadd.f32 %v4816_v13, %v4608_v57  ;;  %v4822_v32 = vmul.f32 %v9886_v12, %v4821_v51  ;;  %v4832_v15 = vand.u32 2147483647, %v9871_v0 }
 0xdc5   :  { %v6949_v47 = vpop.eup %6948  ;;  %4937 = vadd.xlane.f32.xlu0 %v4936_v2  ;;  %vm4824_vm11 = vcmp.lt.f32.partialorder %v4823_v7, 0.0004427343  ;;  %v5191_v43 = vmul.f32 -0.5, %v9941_v29  ;;  %6956 = vlog2.f32 %v4844_v61  ;;  %v4839_v35 = vadd.f32 1.0, %v4838_v40  ;;  %v10538_v40 = vld [vmem:[#allocation11_spill] sm:$0xff] }
 0xdc6   :  { %v4880_v21 = vsel %vm4624_vm4, %v9776_v19, %v4864_v5  ;;  %v4819_v42 = vmul.f32 0.6931472, %v6949_v47  ;;  %v4841_v52 = vand.u32 2147483647, %v9910_v25  ;;  %v4831_v53 = vmul.f32 %v9871_v0, %v4830_v23  ;;  %v6993_v23 = vld [vmem:[%s10234_s5 + $0x8] sm:$0xff] }
 0xdc7   :  { %v4900_v36 = vmul.f32 %v9771_v6, %v4880_v21  ;;  %v6951_v50 = vpop.eup %6950  ;;  %v4610_v12 = vmax.f32 %v9787_v33, 0.0  ;;  %vm4625_vm3 = vcmp.ne.f32.partialorder %v9790_v38, %v9790_v38  ;;  %vm4833_vm12 = vcmp.lt.f32.partialorder %v4832_v15, 0.0004427343  ;;  %v6995_v15 = vld [vmem:[%s10234_s5 + $0x10] sm:$0xff] }
 0xdc8   :  { %v4825_v10 = vsel %vm4824_vm11, %v4822_v32, %v4819_v42  ;;  %v4828_v19 = vmul.f32 0.6931472, %v6951_v50  ;;  %v4847_v14 = vmul.f32 -0.5, %v9898_v3  ;;  %v5192_v39 = vadd.f32 1.0, %v5191_v43 }
 0xdc9   :  { %v4939_v28 = vsel %vm4905_vm15, %v4900_v36, 0.0  ;;  %v4865_v34 = vadd.f32 %v4825_v10, %v4609_v30  ;;  %v5194_v1 = vand.u32 2147483647, %v9941_v29  ;;  %v4840_v56 = vmul.f32 %v9910_v25, %v4839_v35  ;;  %v6996_v10 = vld [vmem:[%s10234_s5 + $0x18] sm:$0xff] }
 0xdca   :  { %4940 = vadd.xlane.f32.xlu1 %v4939_v28  ;;  %v6953_v54 = vpop.eup %6952  ;;  %v4834_v27 = vsel %vm4833_vm12, %v4831_v53, %v4828_v19  ;;  %v4611_v63 = vmax.f32 %v9803_v4, 0.0  ;;  %vm4626_vm10 = vcmp.ne.f32.partialorder %v9787_v33, %v9787_v33  ;;  %vm4842_vm2 = vcmp.lt.f32.partialorder %v4841_v52, 0.0004427343  ;;  %v6997_v53 = vld [vmem:[%s10234_s5 + $0x20] sm:$0xff] }
 0xdcb   :  { %v4881_v18 = vsel %vm4625_vm3, %v9790_v38, %v4865_v34  ;;  %v4866_v31 = vadd.f32 %v4834_v27, %v4610_v12  ;;  %v4837_v0 = vmul.f32 0.6931472, %v6953_v54  ;;  %v4850_v49 = vand.u32 2147483647, %v9898_v3 }
 0xdcc   :  { %v4901_v26 = vmul.f32 %v9771_v6, %v4881_v18  ;;  %v4848_v41 = vadd.f32 1.0, %v4847_v14  ;;  %v5193_v60 = vmul.f32 %v9941_v29, %v5192_v39  ;;  %v5181_v57 = vmax.f32 %v9821_v58, 0.0  ;;  %v6998_v14 = vld [vmem:[%s10234_s5 + $0x28] sm:$0xff]  ;;  %v6999_v39 = vld [vmem:[%s10234_s5 + $0x30] sm:$0xff] }
 0xdcd   :  { %v6955_v8 = vpop.eup %6954  ;;  %v4882_v16 = vsel %vm4626_vm10, %v9787_v33, %v4866_v31  ;;  %v4843_v20 = vsel %vm4842_vm2, %v4840_v56, %v4837_v0  ;;  %vm4627_vm5 = vcmp.ne.f32.partialorder %v9803_v4, %v9803_v4  ;;  %vm5195_vm1 = vcmp.lt.f32.partialorder %v5194_v1, 0.0004427343  ;;  %v7000_v56 = vld [vmem:[%s10234_s5 + $0x38] sm:$0xff] }
 0xdce   :  { %v4942_v38 = vsel %vm4905_vm15, %v4901_v26, 0.0  ;;  %v4902_v45 = vmul.f32 %v9771_v6, %v4882_v16  ;;  %v4867_v44 = vadd.f32 %v4843_v20, %v4611_v63  ;;  %v5190_v25 = vmul.f32 0.6931472, %v6955_v8  ;;  %v7001_v8 = vld [vmem:[%s10234_s5 + $0x40] sm:$0xff] }
 0xdcf   :  { %4943 = vadd.xlane.f32.xlu0 %v4942_v38  ;;  %v6957_v24 = vpop.eup %6956  ;;  %v4849_v51 = vmul.f32 %v9898_v3, %v4848_v41  ;;  %v4612_v29 = vmax.f32 %v9800_v59, 0.0  ;;  %vm5182_vm6 = vcmp.ne.f32.partialorder %v9821_v58, %v9821_v58  ;;  %vm4851_vm7 = vcmp.lt.f32.partialorder %v4850_v49, 0.0004427343  ;;  %v7002_v41 = vld [vmem:[%s10234_s5 + $0x48] sm:$0xff] }
 0xdd0   :  { %v4945_v22 = vsel %vm4905_vm15, %v4902_v45, 0.0  ;;  %v4883_v33 = vsel %vm4627_vm5, %v9803_v4, %v4867_v44  ;;  %v5196_v46 = vsel %vm5195_vm1, %v5193_v60, %v5190_v25  ;;  %v4846_v9 = vmul.f32 0.6931472, %v6957_v24  ;;  %v7003_v60 = vld [vmem:[%s10234_s5 + $0x50] sm:$0xff] }
 0xdd1   :  { %4946 = vadd.xlane.f32.xlu1 %v4945_v22  ;;  %v4903_v48 = vmul.f32 %v9771_v6, %v4883_v33  ;;  %v5197_v55 = vadd.f32 %v5196_v46, %v5181_v57  ;;  %vm4628_vm8 = vcmp.ne.f32.partialorder %v9800_v59, %v9800_v59  ;;  %v10085_v47 = vrot.slane %v9713_v37, %v10538_v40  ;;  %v6994_v37 = vld [vmem:[%s10234_s5] sm:$0xff]  ;;  %v7004_v33 = vld [vmem:[%s10234_s5 + $0x58] sm:$0xff] }
 0xdd2   :  { %v4852_v7 = vsel %vm4851_vm7, %v4849_v51, %v4846_v9  ;;  %vm4990_vm9 = vcmask 7168   ;;  %v7005_v9 = vld [vmem:[%s10234_s5 + $0x60] sm:$0xff] }
 0xdd3   :  { %v4948_v62 = vsel %vm4905_vm15, %v4903_v48, 0.0  ;;  %v5198_v13 = vsel %vm5182_vm6, %v9821_v58, %v5197_v55  ;;  %v4868_v4 = vadd.f32 %v4852_v7, %v4612_v29 }
 0xdd4   :  { %4949 = vadd.xlane.f32.xlu0 %v4948_v62  ;;  %6105 = vmatmul.mubr.msk.f32.vlgmr.msra.gmra.mrb[50].mxu0 %vm4905_vm15, %v5198_v13  ;;  %v7006_v13 = vld [vmem:[%s10234_s5 + $0x68] sm:$0xff] }
 0xdd5   :  { %v4884_v3 = vsel %vm4628_vm8, %v9800_v59, %v4868_v4 }
 0xdd6   :  { %v4904_v2 = vmul.f32 %v9771_v6, %v4884_v3 }
 0xdd8   :  { %v4951_v5 = vsel %vm4905_vm15, %v4904_v2, 0.0  ;;  %v7007_v2 = vld [vmem:[%s10234_s5 + $0x70] sm:$0xff]  ;;  %vm5284_vm15 = vcmask 9216  }
 0xdd9   :  { %4952 = vadd.xlane.f32.xlu1 %v4951_v5 }
 0xe2e   :  { %v4911_v58 = vpop.xlane.xlu0 %4910 }
 0xe2f   :  { %v4959_v30 = vadd.f32 %v10085_v47, %v4911_v58 }
 0xe31   :  { %v4975_v61 = vmul.f32 %v6993_v23, %v4959_v30  ;;  %v7008_v30 = vld [vmem:[%s10234_s5 + $0x78] sm:$0xff] }
 0xe33   :  { %4992 = vst.msk [vmem:[%s10244_s15 + $0x8] sm:$0xff] %vm4990_vm9, %v4975_v61  ;;  %v5210_v61 = vrot.slane %v9756_v11, %v10525_v17 }
 0xe36   :  { %v4908_v6 = vpop.xlane.xlu1 %4907 }
 0xe37   :  { %v4958_v59 = vadd.f32 %v10085_v47, %v4908_v6 }
 0xe39   :  { %v4974_v21 = vmul.f32 %v6994_v37, %v4958_v59 }
 0xe3a   :  { %v4914_v42 = vpop.xlane.xlu0 %4913 }
 0xe3b   :  { %4991 = vst.msk [vmem:[%s10244_s15] sm:$0xff] %vm4990_vm9, %v4974_v21  ;;  %v4960_v32 = vadd.f32 %v10085_v47, %v4914_v42 }
 0xe3d   :  { %v4976_v36 = vmul.f32 %v6995_v15, %v4960_v32 }
 0xe3e   :  { %v4917_v43 = vpop.xlane.xlu1 %4916 }
 0xe3f   :  { %4993 = vst.msk [vmem:[%s10244_s15 + $0x10] sm:$0xff] %vm4990_vm9, %v4976_v36  ;;  %v4961_v50 = vadd.f32 %v10085_v47, %v4917_v43 }
 0xe40   :  { %v4920_v52 = vpop.xlane.xlu0 %4919 }
 0xe41   :  { %v4977_v35 = vmul.f32 %v6996_v10, %v4961_v50  ;;  %v4962_v28 = vadd.f32 %v10085_v47, %v4920_v52 }
 0xe42   :  { %v4923_v34 = vpop.xlane.xlu1 %4922 }
 0xe43   :  { %4994 = vst.msk [vmem:[%s10244_s15 + $0x18] sm:$0xff] %vm4990_vm9, %v4977_v35  ;;  %v4963_v19 = vadd.f32 %v10085_v47, %v4923_v34  ;;  %v4978_v12 = vmul.f32 %v6997_v53, %v4962_v28 }
 0xe45   :  { %v4979_v54 = vmul.f32 %v6998_v14, %v4963_v19  ;;  %v4926_v18 = vpop.xlane.xlu0 %4925  ;;  %4995 = vst.msk [vmem:[%s10244_s15 + $0x20] sm:$0xff] %vm4990_vm9, %v4978_v12 }
 0xe46   :  { %v4964_v27 = vadd.f32 %v10085_v47, %v4926_v18 }
 0xe47   :  { %4996 = vst.msk [vmem:[%s10244_s15 + $0x28] sm:$0xff] %vm4990_vm9, %v4979_v54 }
 0xe48   :  { %v4980_v1 = vmul.f32 %v6999_v39, %v4964_v27  ;;  %v4929_v26 = vpop.xlane.xlu1 %4928 }
 0xe49   :  { %v4965_v31 = vadd.f32 %v10085_v47, %v4929_v26 }
 0xe4a   :  { %4997 = vst.msk [vmem:[%s10244_s15 + $0x30] sm:$0xff] %vm4990_vm9, %v4980_v1  ;;  %v4932_v0 = vpop.xlane.xlu0 %4931 }
 0xe4b   :  { %v4981_v63 = vmul.f32 %v7000_v56, %v4965_v31  ;;  %v4966_v49 = vadd.f32 %v10085_v47, %v4932_v0 }
 0xe4d   :  { %4998 = vst.msk [vmem:[%s10244_s15 + $0x38] sm:$0xff] %vm4990_vm9, %v4981_v63  ;;  %v4982_v38 = vmul.f32 %v7001_v8, %v4966_v49 }
 0xe4e   :  { %v4935_v16 = vpop.xlane.xlu1 %4934 }
 0xe4f   :  { %4999 = vst.msk [vmem:[%s10244_s15 + $0x40] sm:$0xff] %vm4990_vm9, %v4982_v38  ;;  %v4967_v20 = vadd.f32 %v10085_v47, %v4935_v16 }
 0xe51   :  { %v4983_v45 = vmul.f32 %v7002_v41, %v4967_v20 }
 0xe52   :  { %v4938_v44 = vpop.xlane.xlu0 %4937 }
 0xe53   :  { %5000 = vst.msk [vmem:[%s10244_s15 + $0x48] sm:$0xff] %vm4990_vm9, %v4983_v45  ;;  %v4968_v25 = vadd.f32 %v10085_v47, %v4938_v44 }
 0xe55   :  { %v4984_v57 = vmul.f32 %v7003_v60, %v4968_v25 }
 0xe57   :  { %5001 = vst.msk [vmem:[%s10244_s15 + $0x50] sm:$0xff] %vm4990_vm9, %v4984_v57  ;;  %v4941_v24 = vpop.xlane.xlu1 %4940 }
 0xe58   :  { %v4969_v22 = vadd.f32 %v10085_v47, %v4941_v24 }
 0xe5a   :  { %v4985_v46 = vmul.f32 %v7004_v33, %v4969_v22 }
 0xe5c   :  { %5002 = vst.msk [vmem:[%s10244_s15 + $0x58] sm:$0xff] %vm4990_vm9, %v4985_v46  ;;  %v4944_v48 = vpop.xlane.xlu0 %4943 }
 0xe5d   :  { %v4970_v55 = vadd.f32 %v10085_v47, %v4944_v48 }
 0xe5e   :  { %v4947_v29 = vpop.xlane.xlu1 %4946 }
 0xe5f   :  { %v4986_v51 = vmul.f32 %v7005_v9, %v4970_v55  ;;  %v4971_v62 = vadd.f32 %v10085_v47, %v4947_v29 }
 0xe61   :  { %5003 = vst.msk [vmem:[%s10244_s15 + $0x60] sm:$0xff] %vm4990_vm9, %v4986_v51  ;;  %v4987_v7 = vmul.f32 %v7006_v13, %v4971_v62  ;;  %v4950_v4 = vpop.xlane.xlu0 %4949 }
 0xe62   :  { %v4972_v3 = vadd.f32 %v10085_v47, %v4950_v4 }
 0xe63   :  { %5004 = vst.msk [vmem:[%s10244_s15 + $0x68] sm:$0xff] %vm4990_vm9, %v4987_v7 }
 0xe64   :  { %v4988_v5 = vmul.f32 %v7007_v2, %v4972_v3 }
 0xe66   :  { %5005 = vst.msk [vmem:[%s10244_s15 + $0x70] sm:$0xff] %vm4990_vm9, %v4988_v5  ;;  %v4953_v40 = vpop.xlane.xlu1 %4952 }
 0xe67   :  { %v4973_v58 = vadd.f32 %v10085_v47, %v4953_v40 }
 0xe69   :  { %v4989_v23 = vmul.f32 %v7008_v30, %v4973_v58 }
 0xe6b   :  { %5006 = vst.msk [vmem:[%s10244_s15 + $0x78] sm:$0xff] %vm4990_vm9, %v4989_v23 }
 0xea7   :  { %v5280_v6 = vpop.f32.mrb[50].mxu0 }
 0xea8   :  { %v5281_v59 = vadd.f32 %v5280_v6, %v5210_v61  ;;  %v6106_v37 = vpop.f32.mrb[51].mxu0 }
 0xeaa   :  { %5285 = vst.msk [vmem:[#allocation2] sm:$0x3] %vm5284_vm15, %v5281_v59 }
 0xeab   :  { %7020 = shalt.err (!%p7017_p4)
}
 0xeac   :  { %s7021_s7 = scalar_lea.hbm %s10245_s16, 32 }
 0xead   :  { %p7022_p5 = scmp.ne.s32.totalorder %s10245_s16, %s7021_s7  ;;  %p7025_p6 = scmp.lt.u32.totalorder %s7021_s7, %s10245_s16 }
 0xeaf   :  { %p7027_p7 = pnand %p7025_p6, %p7022_p5 }
 0xeb1   :  { %7030 = shalt.err (!%p7027_p7)
}
 0xeb2   :  { %5297 = dma.vmem_to_hbm [thread:$0]  %s5295_s2, 32, %s10245_s16, [#allocation3]  }
 0xeb3   :  { %7031 = dma.done.wait [#allocation3], 32  }
 0xeb4   :  { %7032 = vsyncadd [#allocation3], 4294967264 }
 0xeb5   :  { %5303 = vsyncpa [#allocation3], 1 }

</bundles_post_ra>
